<compile_context>
chip_gen: v7x
topology: tpu7x:2x2x1
jax: 0.10.0
libtpu: 0.0.40
codegen_flags: <defaults>
</compile_context>

<pallas_src>
import jax
import jax.numpy as jnp
from jax import lax
from jax.experimental import pallas as pl
from jax.experimental.pallas import tpu as pltpu


def _round_up(n, m):
    return ((n + m - 1) // m) * m


def _epilogue_dtype():
    """bf16 epilogue on v6e/v7x (native bf16 VPU/EUP); f32 on v5e and older."""
    try:
        kind = jax.devices()[0].device_kind.lower()
    except Exception:
        return jnp.float32
    if any(t in kind for t in ("v2", "v3", "v4", "v5")):
        return jnp.float32
    return jnp.bfloat16


# ------------------------------ Pallas kernel --------------------------------

def _make_kernel(tb, epi_dtype):
    """Full discriminator for one batch tile; activations never leave VMEM."""

    def kernel(p1_ref, w1_ref, b1_ref, w2_ref, b2_ref,
               wf1_ref, bf1_ref, wf2_ref, bf2_ref, o_ref):
        # p1_ref : [1,13,13,tb,64] bf16  conv1 im2col patches (host-built)
        # w1_ref : [64,16]  conv1, row = kh*8+kw
        # w2_ref : [256,32] conv2, row = (dh*2+dw)*64 + (ph*2+pw)*16 + ci
        # wf1_ref: [512,32] fc1,   row = (h*4+w)*32 + ci (matches flatten order)

        # ---- layer1: Conv2d(1,16,k=8,s=2,p=2) as matmul + Tanh ---------------
        p1 = p1_ref[...].reshape(13 * 13 * tb, 64)          # bf16, no f32 trip
        a1 = jnp.dot(p1, w1_ref[...], preferred_element_type=jnp.float32)
        a1 = jnp.tanh(a1 + b1_ref[...]).astype(epi_dtype)   # [13*13*tb,16]
        # TODO(synk): if a bundle dump shows EUP/VALU binding, do bias+tanh on a
        # lane-dense [-1,128] view with pre-tiled biases.
        a1 = a1.reshape(13, 13, tb, 16)

        # ---- MaxPool2d(k=2, s=1) (epilogue dtype) ----------------------------
        m1 = jnp.maximum(jnp.maximum(a1[:12, :12], a1[:12, 1:]),
                         jnp.maximum(a1[1:, :12], a1[1:, 1:]))   # [12,12,tb,16]

        # ---- space-to-depth to fold conv2's stride 2 -------------------------
        m1h = m1.reshape(6, 2, 12, tb, 16)                   # (ho, ph, w, b, c)
        parts = []
        for ph in range(2):
            mw = m1h[:, ph].reshape(6, 6, 2, tb, 16)         # (ho, wo, pw, b, c)
            for pw in range(2):
                parts.append(mw[:, :, pw])                   # [6,6,tb,16]
        p1s = jnp.concatenate(parts, axis=-1)                # [6,6,tb,64]

        # ---- layer2: Conv2d(16,32,k=4,s=2,p=0) + Tanh ------------------------
        p2 = jnp.concatenate(
            [p1s[dh:dh + 5, dw:dw + 5] for dh in range(2) for dw in range(2)],
            axis=-1)                                         # [5,5,tb,256]
        p2 = p2.reshape(5 * 5 * tb, 256).astype(jnp.bfloat16)
        a2 = jnp.dot(p2, w2_ref[...], preferred_element_type=jnp.float32)
        a2 = jnp.tanh(a2 + b2_ref[...]).astype(epi_dtype)    # [5*5*tb,32]
        a2 = a2.reshape(5, 5, tb, 32)

        # ---- MaxPool2d(k=2, s=1) ---------------------------------------------
        m2 = jnp.maximum(jnp.maximum(a2[:4, :4], a2[:4, 1:]),
                         jnp.maximum(a2[1:, :4], a2[1:, 1:]))    # [4,4,tb,32]

        # ---- flatten (fc1 rows pre-permuted to this (h,w,ci) order) ----------
        flat = jnp.concatenate([m2[h, w] for h in range(4) for w in range(4)],
                               axis=-1)                      # [tb,512]

        # ---- fc1: Linear(512,32) + Tanh --------------------------------------
        h1 = jnp.dot(flat.astype(jnp.bfloat16), wf1_ref[...],
                     preferred_element_type=jnp.float32)
        h1 = jnp.tanh(h1 + bf1_ref[...])                     # [tb,32] f32

        # ---- fc2: Linear(32,1) + Sigmoid, lane-dense [1,tb] row --------------
        # dot_general with rhs-contraction = h1 @ wf2^T transposed result, i.e.
        # one tiny M=1 MXU pass producing batch-on-lanes (unmasked vst).
        z = lax.dot_general(wf2_ref[...], h1.astype(jnp.bfloat16),
                            (((1,), (1,)), ((), ())),
                            preferred_element_type=jnp.float32)  # [1,tb]
        z = z + bf2_ref[...]
        o_ref[...] = (1.0 / (1.0 + jnp.exp(-z))).reshape(1, 1, tb)

    return kernel


# ------------------------------ host-side prep --------------------------------

def prepare_params(params):
    """One-time weight repacking (hoisted out of the forward hot path)."""
    # conv1: (co,1,kh,kw) -> rows kh*8+kw, cols co   (matches host im2col order)
    w1 = params["conv1_w"].reshape(16, 64).T                      # [64,16]
    # conv2: (co,ci,kh,kw) -> rows (dh*2+dw)*64 + (ph*2+pw)*16 + ci, cols co
    w2 = params["conv2_w"].reshape(32, 16, 2, 2, 2, 2)
    w2 = w2.transpose(2, 4, 3, 5, 1, 0).reshape(256, 32)
    # fc1: (out, ci*16+h*4+w) -> rows (h*4+w)*32 + ci, cols out
    wf1 = params["fc1_w"].reshape(32, 32, 4, 4).transpose(2, 3, 1, 0).reshape(512, 32)
    return dict(
        w1=w1.astype(jnp.bfloat16),
        b1=params["conv1_b"].reshape(1, 16).astype(jnp.float32),
        w2=w2.astype(jnp.bfloat16),
        b2=params["conv2_b"].reshape(1, 32).astype(jnp.float32),
        wf1=wf1.astype(jnp.bfloat16),
        bf1=params["fc1_b"].reshape(1, 32).astype(jnp.float32),
        wf2=params["fc2_w"].reshape(1, 32).astype(jnp.bfloat16),
        bf2=params["fc2_b"].reshape(1, 1).astype(jnp.float32),
    )


@jax.jit
def mnist_gan_discriminator(x_nchw, prep):
    """x_nchw: [B, 1, 28, 28] float32 -> [B, 1] sigmoid scores."""
    B = x_nchw.shape[0]
    # Batch tile: big (up to 128, multiple of 16) but split so >=2 grid steps
    # exist where possible (keeps both v7x TensorCores busy).
    tb = min(128, _round_up(B, 16))
    if _round_up(B, 16) // tb < 2 and tb >= 32:
        tb = _round_up(tb // 2, 16)
    padB = _round_up(B, tb)
    nT = padB // tb

    # conv1 im2col hoisted to XLA: patches[b,ho,wo,kh*8+kw] = xpad[b,2ho+kh,2wo+kw]
    x = x_nchw.reshape(B, 28, 28).astype(jnp.float32)
    x = jnp.pad(x, ((0, padB - B), (2, 2), (2, 2)))              # [padB,32,32]
    patches = jnp.stack(
        [x[:, kh:kh + 25:2, kw:kw + 25:2] for kh in range(8) for kw in range(8)],
        axis=-1)                                                 # [padB,13,13,64]
    # Tile-contiguous layout: [nT, 13, 13, tb, 64]; bf16 straight into the MXU.
    patches = patches.reshape(nT, tb, 13, 13, 64).transpose(0, 2, 3, 1, 4)
    patches = patches.astype(jnp.bfloat16)

    kernel = _make_kernel(tb, _epilogue_dtype())

    def _const(shape):
        return pl.BlockSpec(shape, lambda i, _z=(0,) * len(shape): _z)

    out = pl.pallas_call(
        kernel,
        grid=(nT,),
        in_specs=[
            pl.BlockSpec((1, 13, 13, tb, 64), lambda i: (i, 0, 0, 0, 0)),
            _const(prep["w1"].shape), _const(prep["b1"].shape),
            _const(prep["w2"].shape), _const(prep["b2"].shape),
            _const(prep["wf1"].shape), _const(prep["bf1"].shape),
            _const(prep["wf2"].shape), _const(prep["bf2"].shape),
        ],
        out_specs=pl.BlockSpec((1, 1, tb), lambda i: (i, 0, 0)),
        out_shape=jax.ShapeDtypeStruct((nT, 1, tb), jnp.float32),
        compiler_params=pltpu.CompilerParams(
            dimension_semantics=("parallel",),
            vmem_limit_bytes=48 * 1024 * 1024,
        ),
    )(patches, prep["w1"], prep["b1"], prep["w2"], prep["b2"],
      prep["wf1"], prep["bf1"], prep["wf2"], prep["bf2"])
    return out.reshape(padB)[:B][:, None]


# ------------------------------ reference & init ------------------------------

def reference_forward(x_nchw, params):
    """Plain-JAX (f32) reference with PyTorch semantics."""
    y = lax.conv_general_dilated(
        x_nchw.astype(jnp.float32), params["conv1_w"], window_strides=(2, 2),
        padding=((2, 2), (2, 2)), dimension_numbers=("NCHW", "OIHW", "NCHW"))
    y = jnp.tanh(y + params["conv1_b"][None, :, None, None])
    y = lax.reduce_window(y, -jnp.inf, lax.max, (1, 1, 2, 2), (1, 1, 1, 1), "VALID")
    y = lax.conv_general_dilated(
        y, params["conv2_w"], window_strides=(2, 2),
        padding=((0, 0), (0, 0)), dimension_numbers=("NCHW", "OIHW", "NCHW"))
    y = jnp.tanh(y + params["conv2_b"][None, :, None, None])
    y = lax.reduce_window(y, -jnp.inf, lax.max, (1, 1, 2, 2), (1, 1, 1, 1), "VALID")
    y = y.reshape(y.shape[0], -1)
    y = jnp.tanh(y @ params["fc1_w"].T + params["fc1_b"][None, :])
    y = y @ params["fc2_w"].T + params["fc2_b"][None, :]
    return 1.0 / (1.0 + jnp.exp(-y))


def init_params(key):
    ks = jax.random.split(key, 8)
    s = 0.05
    return {
        "conv1_w": jax.random.normal(ks[0], (16, 1, 8, 8), jnp.float32) * s,
        "conv1_b": jax.random.normal(ks[1], (16,), jnp.float32) * s,
        "conv2_w": jax.random.normal(ks[2], (32, 16, 4, 4), jnp.float32) * s,
        "conv2_b": jax.random.normal(ks[3], (32,), jnp.float32) * s,
        "fc1_w": jax.random.normal(ks[4], (32, 4 * 4 * 32), jnp.float32) * s,
        "fc1_b": jax.random.normal(ks[5], (32,), jnp.float32) * s,
        "fc2_w": jax.random.normal(ks[6], (1, 32), jnp.float32) * s,
        "fc2_b": jax.random.normal(ks[7], (1,), jnp.float32) * s,
    }


if __name__ == "__main__":
    key = jax.random.PRNGKey(0)
    pkey, xkey = jax.random.split(key)
    params = init_params(pkey)
    # MNIST discriminator implies 1x28x28 inputs (fc expects 4*4*32 flat features).
    x = jax.random.normal(xkey, (2, 1, 28, 28), jnp.float32)

    prep = prepare_params(params)          # hoisted, one-time weight repack
    out = mnist_gan_discriminator(x, prep)
    out = jax.block_until_ready(out)

    assert out.shape == (2, 1), out.shape
    assert bool(jnp.all(jnp.isfinite(out)))
    assert bool(jnp.all((out >= 0.0) & (out <= 1.0)))

    ref = reference_forward(x, params)     # bf16 operands -> loose tolerance
    assert bool(jnp.allclose(out, ref, atol=3e-2, rtol=0.0)), (out, ref)
    print("KERNEL_OK")
</pallas_src>

<mosaic_0001>
module attributes {stable_mosaic.version = 11 : i64} {
  func.func @kernel(%arg0: i32, %arg1: memref<1x13x13x16x64xbf16, #tpu.memory_space<vmem>>, %arg2: memref<64x16xbf16, #tpu.memory_space<vmem>>, %arg3: memref<1x16xf32, #tpu.memory_space<vmem>>, %arg4: memref<256x32xbf16, #tpu.memory_space<vmem>>, %arg5: memref<1x32xf32, #tpu.memory_space<vmem>>, %arg6: memref<512x32xbf16, #tpu.memory_space<vmem>>, %arg7: memref<1x32xf32, #tpu.memory_space<vmem>>, %arg8: memref<1x32xbf16, #tpu.memory_space<vmem>>, %arg9: memref<1x1xf32, #tpu.memory_space<vmem>>, %arg10: memref<1x1x16xf32, #tpu.memory_space<vmem>>) attributes {dimension_semantics = [#tpu.dimension_semantics<parallel>], iteration_bounds = array<i64: 1>, scalar_prefetch = 0 : i64, scratch_operands = 0 : i64, tpu.core_type = #tpu.core_type<tc>, window_params = [{transform_indices = @transform_0, window_bounds = array<i64: 1, 13, 13, 16, 64>}, {pipeline_mode = #tpu.pipeline_mode<synchronous>, transform_indices = @transform_1, window_bounds = array<i64: 64, 16>}, {pipeline_mode = #tpu.pipeline_mode<synchronous>, transform_indices = @transform_2, window_bounds = array<i64: 1, 16>}, {pipeline_mode = #tpu.pipeline_mode<synchronous>, transform_indices = @transform_3, window_bounds = array<i64: 256, 32>}, {pipeline_mode = #tpu.pipeline_mode<synchronous>, transform_indices = @transform_4, window_bounds = array<i64: 1, 32>}, {pipeline_mode = #tpu.pipeline_mode<synchronous>, transform_indices = @transform_5, window_bounds = array<i64: 512, 32>}, {pipeline_mode = #tpu.pipeline_mode<synchronous>, transform_indices = @transform_6, window_bounds = array<i64: 1, 32>}, {pipeline_mode = #tpu.pipeline_mode<synchronous>, transform_indices = @transform_7, window_bounds = array<i64: 1, 32>}, {pipeline_mode = #tpu.pipeline_mode<synchronous>, transform_indices = @transform_8, window_bounds = array<i64: 1, 1>}, {transform_indices = @transform_9, window_bounds = array<i64: 1, 1, 16>}]} {
    %c0 = arith.constant 0 : index
    %c0_0 = arith.constant 0 : index
    %c0_1 = arith.constant 0 : index
    %c0_2 = arith.constant 0 : index
    %c0_3 = arith.constant 0 : index
    %0 = vector.load %arg1[%c0, %c0_0, %c0_1, %c0_2, %c0_3] : memref<1x13x13x16x64xbf16, #tpu.memory_space<vmem>>, vector<1x13x13x16x64xbf16>
    %1 = vector.shape_cast %0 : vector<1x13x13x16x64xbf16> to vector<2704x64xbf16>
    %c0_4 = arith.constant 0 : index
    %c0_5 = arith.constant 0 : index
    %2 = vector.load %arg2[%c0_4, %c0_5] : memref<64x16xbf16, #tpu.memory_space<vmem>>, vector<64x16xbf16>
    %cst = arith.constant dense<0.000000e+00> : vector<2704x16xf32>
    %3 = tpu.matmul %1, %2, %cst {dimension_numbers = #tpu.dot_dimension_numbers<[1], [0], [0], [1], [0, 0, 1, 1], [], []>} : vector<2704x64xbf16>, vector<64x16xbf16>, vector<2704x16xf32> -> vector<2704x16xf32>
    %c0_6 = arith.constant 0 : index
    %c0_7 = arith.constant 0 : index
    %4 = vector.load %arg3[%c0_6, %c0_7] : memref<1x16xf32, #tpu.memory_space<vmem>>, vector<1x16xf32>
    %5 = vector.broadcast %4 : vector<1x16xf32> to vector<2704x16xf32>
    %6 = arith.addf %3, %5 : vector<2704x16xf32>
    %7 = math.tanh %6 : vector<2704x16xf32>
    %8 = arith.truncf %7 : vector<2704x16xf32> to vector<2704x16xbf16>
    %9 = vector.shape_cast %8 : vector<2704x16xbf16> to vector<13x13x16x16xbf16>
    %10 = vector.extract_strided_slice %9 {offsets = [0, 0, 0, 0], sizes = [12, 12, 16, 16], strides = [1, 1, 1, 1]} : vector<13x13x16x16xbf16> to vector<12x12x16x16xbf16>
    %11 = vector.extract_strided_slice %9 {offsets = [0, 1, 0, 0], sizes = [12, 12, 16, 16], strides = [1, 1, 1, 1]} : vector<13x13x16x16xbf16> to vector<12x12x16x16xbf16>
    %12 = arith.maximumf %10, %11 : vector<12x12x16x16xbf16>
    %13 = vector.extract_strided_slice %9 {offsets = [1, 0, 0, 0], sizes = [12, 12, 16, 16], strides = [1, 1, 1, 1]} : vector<13x13x16x16xbf16> to vector<12x12x16x16xbf16>
    %14 = vector.extract_strided_slice %9 {offsets = [1, 1, 0, 0], sizes = [12, 12, 16, 16], strides = [1, 1, 1, 1]} : vector<13x13x16x16xbf16> to vector<12x12x16x16xbf16>
    %15 = arith.maximumf %13, %14 : vector<12x12x16x16xbf16>
    %16 = arith.maximumf %12, %15 : vector<12x12x16x16xbf16>
    %17 = vector.shape_cast %16 : vector<12x12x16x16xbf16> to vector<6x2x12x16x16xbf16>
    %18 = vector.extract_strided_slice %17 {offsets = [0, 0, 0, 0, 0], sizes = [6, 1, 12, 16, 16], strides = [1, 1, 1, 1, 1]} : vector<6x2x12x16x16xbf16> to vector<6x1x12x16x16xbf16>
    %19 = vector.shape_cast %18 : vector<6x1x12x16x16xbf16> to vector<6x12x16x16xbf16>
    %20 = vector.shape_cast %19 : vector<6x12x16x16xbf16> to vector<6x6x2x16x16xbf16>
    %21 = vector.extract_strided_slice %20 {offsets = [0, 0, 0, 0, 0], sizes = [6, 6, 1, 16, 16], strides = [1, 1, 1, 1, 1]} : vector<6x6x2x16x16xbf16> to vector<6x6x1x16x16xbf16>
    %22 = vector.shape_cast %21 : vector<6x6x1x16x16xbf16> to vector<6x6x16x16xbf16>
    %23 = vector.extract_strided_slice %20 {offsets = [0, 0, 1, 0, 0], sizes = [6, 6, 1, 16, 16], strides = [1, 1, 1, 1, 1]} : vector<6x6x2x16x16xbf16> to vector<6x6x1x16x16xbf16>
    %24 = vector.shape_cast %23 : vector<6x6x1x16x16xbf16> to vector<6x6x16x16xbf16>
    %25 = vector.extract_strided_slice %17 {offsets = [0, 1, 0, 0, 0], sizes = [6, 1, 12, 16, 16], strides = [1, 1, 1, 1, 1]} : vector<6x2x12x16x16xbf16> to vector<6x1x12x16x16xbf16>
    %26 = vector.shape_cast %25 : vector<6x1x12x16x16xbf16> to vector<6x12x16x16xbf16>
    %27 = vector.shape_cast %26 : vector<6x12x16x16xbf16> to vector<6x6x2x16x16xbf16>
    %28 = vector.extract_strided_slice %27 {offsets = [0, 0, 0, 0, 0], sizes = [6, 6, 1, 16, 16], strides = [1, 1, 1, 1, 1]} : vector<6x6x2x16x16xbf16> to vector<6x6x1x16x16xbf16>
    %29 = vector.shape_cast %28 : vector<6x6x1x16x16xbf16> to vector<6x6x16x16xbf16>
    %30 = vector.extract_strided_slice %27 {offsets = [0, 0, 1, 0, 0], sizes = [6, 6, 1, 16, 16], strides = [1, 1, 1, 1, 1]} : vector<6x6x2x16x16xbf16> to vector<6x6x1x16x16xbf16>
    %31 = vector.shape_cast %30 : vector<6x6x1x16x16xbf16> to vector<6x6x16x16xbf16>
    %32 = tpu.concatenate %22, %24, %29, %31 in 3 : vector<6x6x16x16xbf16>, vector<6x6x16x16xbf16>, vector<6x6x16x16xbf16>, vector<6x6x16x16xbf16> -> vector<6x6x16x64xbf16>
    %33 = vector.extract_strided_slice %32 {offsets = [0, 0, 0, 0], sizes = [5, 5, 16, 64], strides = [1, 1, 1, 1]} : vector<6x6x16x64xbf16> to vector<5x5x16x64xbf16>
    %34 = vector.extract_strided_slice %32 {offsets = [0, 1, 0, 0], sizes = [5, 5, 16, 64], strides = [1, 1, 1, 1]} : vector<6x6x16x64xbf16> to vector<5x5x16x64xbf16>
    %35 = vector.extract_strided_slice %32 {offsets = [1, 0, 0, 0], sizes = [5, 5, 16, 64], strides = [1, 1, 1, 1]} : vector<6x6x16x64xbf16> to vector<5x5x16x64xbf16>
    %36 = vector.extract_strided_slice %32 {offsets = [1, 1, 0, 0], sizes = [5, 5, 16, 64], strides = [1, 1, 1, 1]} : vector<6x6x16x64xbf16> to vector<5x5x16x64xbf16>
    %37 = tpu.concatenate %33, %34, %35, %36 in 3 : vector<5x5x16x64xbf16>, vector<5x5x16x64xbf16>, vector<5x5x16x64xbf16>, vector<5x5x16x64xbf16> -> vector<5x5x16x256xbf16>
    %38 = vector.shape_cast %37 : vector<5x5x16x256xbf16> to vector<400x256xbf16>
    %c0_8 = arith.constant 0 : index
    %c0_9 = arith.constant 0 : index
    %39 = vector.load %arg4[%c0_8, %c0_9] : memref<256x32xbf16, #tpu.memory_space<vmem>>, vector<256x32xbf16>
    %cst_10 = arith.constant dense<0.000000e+00> : vector<400x32xf32>
    %40 = tpu.matmul %38, %39, %cst_10 {dimension_numbers = #tpu.dot_dimension_numbers<[1], [0], [0], [1], [0, 0, 1, 1], [], []>} : vector<400x256xbf16>, vector<256x32xbf16>, vector<400x32xf32> -> vector<400x32xf32>
    %c0_11 = arith.constant 0 : index
    %c0_12 = arith.constant 0 : index
    %41 = vector.load %arg5[%c0_11, %c0_12] : memref<1x32xf32, #tpu.memory_space<vmem>>, vector<1x32xf32>
    %42 = vector.broadcast %41 : vector<1x32xf32> to vector<400x32xf32>
    %43 = arith.addf %40, %42 : vector<400x32xf32>
    %44 = math.tanh %43 : vector<400x32xf32>
    %45 = arith.truncf %44 : vector<400x32xf32> to vector<400x32xbf16>
    %46 = vector.shape_cast %45 : vector<400x32xbf16> to vector<5x5x16x32xbf16>
    %47 = vector.extract_strided_slice %46 {offsets = [0, 0, 0, 0], sizes = [4, 4, 16, 32], strides = [1, 1, 1, 1]} : vector<5x5x16x32xbf16> to vector<4x4x16x32xbf16>
    %48 = vector.extract_strided_slice %46 {offsets = [0, 1, 0, 0], sizes = [4, 4, 16, 32], strides = [1, 1, 1, 1]} : vector<5x5x16x32xbf16> to vector<4x4x16x32xbf16>
    %49 = arith.maximumf %47, %48 : vector<4x4x16x32xbf16>
    %50 = vector.extract_strided_slice %46 {offsets = [1, 0, 0, 0], sizes = [4, 4, 16, 32], strides = [1, 1, 1, 1]} : vector<5x5x16x32xbf16> to vector<4x4x16x32xbf16>
    %51 = vector.extract_strided_slice %46 {offsets = [1, 1, 0, 0], sizes = [4, 4, 16, 32], strides = [1, 1, 1, 1]} : vector<5x5x16x32xbf16> to vector<4x4x16x32xbf16>
    %52 = arith.maximumf %50, %51 : vector<4x4x16x32xbf16>
    %53 = arith.maximumf %49, %52 : vector<4x4x16x32xbf16>
    %54 = vector.extract_strided_slice %53 {offsets = [0, 0, 0, 0], sizes = [1, 1, 16, 32], strides = [1, 1, 1, 1]} : vector<4x4x16x32xbf16> to vector<1x1x16x32xbf16>
    %55 = vector.shape_cast %54 : vector<1x1x16x32xbf16> to vector<16x32xbf16>
    %56 = vector.extract_strided_slice %53 {offsets = [0, 1, 0, 0], sizes = [1, 1, 16, 32], strides = [1, 1, 1, 1]} : vector<4x4x16x32xbf16> to vector<1x1x16x32xbf16>
    %57 = vector.shape_cast %56 : vector<1x1x16x32xbf16> to vector<16x32xbf16>
    %58 = vector.extract_strided_slice %53 {offsets = [0, 2, 0, 0], sizes = [1, 1, 16, 32], strides = [1, 1, 1, 1]} : vector<4x4x16x32xbf16> to vector<1x1x16x32xbf16>
    %59 = vector.shape_cast %58 : vector<1x1x16x32xbf16> to vector<16x32xbf16>
    %60 = vector.extract_strided_slice %53 {offsets = [0, 3, 0, 0], sizes = [1, 1, 16, 32], strides = [1, 1, 1, 1]} : vector<4x4x16x32xbf16> to vector<1x1x16x32xbf16>
    %61 = vector.shape_cast %60 : vector<1x1x16x32xbf16> to vector<16x32xbf16>
    %62 = vector.extract_strided_slice %53 {offsets = [1, 0, 0, 0], sizes = [1, 1, 16, 32], strides = [1, 1, 1, 1]} : vector<4x4x16x32xbf16> to vector<1x1x16x32xbf16>
    %63 = vector.shape_cast %62 : vector<1x1x16x32xbf16> to vector<16x32xbf16>
    %64 = vector.extract_strided_slice %53 {offsets = [1, 1, 0, 0], sizes = [1, 1, 16, 32], strides = [1, 1, 1, 1]} : vector<4x4x16x32xbf16> to vector<1x1x16x32xbf16>
    %65 = vector.shape_cast %64 : vector<1x1x16x32xbf16> to vector<16x32xbf16>
    %66 = vector.extract_strided_slice %53 {offsets = [1, 2, 0, 0], sizes = [1, 1, 16, 32], strides = [1, 1, 1, 1]} : vector<4x4x16x32xbf16> to vector<1x1x16x32xbf16>
    %67 = vector.shape_cast %66 : vector<1x1x16x32xbf16> to vector<16x32xbf16>
    %68 = vector.extract_strided_slice %53 {offsets = [1, 3, 0, 0], sizes = [1, 1, 16, 32], strides = [1, 1, 1, 1]} : vector<4x4x16x32xbf16> to vector<1x1x16x32xbf16>
    %69 = vector.shape_cast %68 : vector<1x1x16x32xbf16> to vector<16x32xbf16>
    %70 = vector.extract_strided_slice %53 {offsets = [2, 0, 0, 0], sizes = [1, 1, 16, 32], strides = [1, 1, 1, 1]} : vector<4x4x16x32xbf16> to vector<1x1x16x32xbf16>
    %71 = vector.shape_cast %70 : vector<1x1x16x32xbf16> to vector<16x32xbf16>
    %72 = vector.extract_strided_slice %53 {offsets = [2, 1, 0, 0], sizes = [1, 1, 16, 32], strides = [1, 1, 1, 1]} : vector<4x4x16x32xbf16> to vector<1x1x16x32xbf16>
    %73 = vector.shape_cast %72 : vector<1x1x16x32xbf16> to vector<16x32xbf16>
    %74 = vector.extract_strided_slice %53 {offsets = [2, 2, 0, 0], sizes = [1, 1, 16, 32], strides = [1, 1, 1, 1]} : vector<4x4x16x32xbf16> to vector<1x1x16x32xbf16>
    %75 = vector.shape_cast %74 : vector<1x1x16x32xbf16> to vector<16x32xbf16>
    %76 = vector.extract_strided_slice %53 {offsets = [2, 3, 0, 0], sizes = [1, 1, 16, 32], strides = [1, 1, 1, 1]} : vector<4x4x16x32xbf16> to vector<1x1x16x32xbf16>
    %77 = vector.shape_cast %76 : vector<1x1x16x32xbf16> to vector<16x32xbf16>
    %78 = vector.extract_strided_slice %53 {offsets = [3, 0, 0, 0], sizes = [1, 1, 16, 32], strides = [1, 1, 1, 1]} : vector<4x4x16x32xbf16> to vector<1x1x16x32xbf16>
    %79 = vector.shape_cast %78 : vector<1x1x16x32xbf16> to vector<16x32xbf16>
    %80 = vector.extract_strided_slice %53 {offsets = [3, 1, 0, 0], sizes = [1, 1, 16, 32], strides = [1, 1, 1, 1]} : vector<4x4x16x32xbf16> to vector<1x1x16x32xbf16>
    %81 = vector.shape_cast %80 : vector<1x1x16x32xbf16> to vector<16x32xbf16>
    %82 = vector.extract_strided_slice %53 {offsets = [3, 2, 0, 0], sizes = [1, 1, 16, 32], strides = [1, 1, 1, 1]} : vector<4x4x16x32xbf16> to vector<1x1x16x32xbf16>
    %83 = vector.shape_cast %82 : vector<1x1x16x32xbf16> to vector<16x32xbf16>
    %84 = vector.extract_strided_slice %53 {offsets = [3, 3, 0, 0], sizes = [1, 1, 16, 32], strides = [1, 1, 1, 1]} : vector<4x4x16x32xbf16> to vector<1x1x16x32xbf16>
    %85 = vector.shape_cast %84 : vector<1x1x16x32xbf16> to vector<16x32xbf16>
    %86 = tpu.concatenate %55, %57, %59, %61, %63, %65, %67, %69, %71, %73, %75, %77, %79, %81, %83, %85 in 1 : vector<16x32xbf16>, vector<16x32xbf16>, vector<16x32xbf16>, vector<16x32xbf16>, vector<16x32xbf16>, vector<16x32xbf16>, vector<16x32xbf16>, vector<16x32xbf16>, vector<16x32xbf16>, vector<16x32xbf16>, vector<16x32xbf16>, vector<16x32xbf16>, vector<16x32xbf16>, vector<16x32xbf16>, vector<16x32xbf16>, vector<16x32xbf16> -> vector<16x512xbf16>
    %c0_13 = arith.constant 0 : index
    %c0_14 = arith.constant 0 : index
    %87 = vector.load %arg6[%c0_13, %c0_14] : memref<512x32xbf16, #tpu.memory_space<vmem>>, vector<512x32xbf16>
    %cst_15 = arith.constant dense<0.000000e+00> : vector<16x32xf32>
    %88 = tpu.matmul %86, %87, %cst_15 {dimension_numbers = #tpu.dot_dimension_numbers<[1], [0], [0], [1], [0, 0, 1, 1], [], []>} : vector<16x512xbf16>, vector<512x32xbf16>, vector<16x32xf32> -> vector<16x32xf32>
    %c0_16 = arith.constant 0 : index
    %c0_17 = arith.constant 0 : index
    %89 = vector.load %arg7[%c0_16, %c0_17] : memref<1x32xf32, #tpu.memory_space<vmem>>, vector<1x32xf32>
    %90 = vector.broadcast %89 : vector<1x32xf32> to vector<16x32xf32>
    %91 = arith.addf %88, %90 : vector<16x32xf32>
    %92 = math.tanh %91 : vector<16x32xf32>
    %c0_18 = arith.constant 0 : index
    %c0_19 = arith.constant 0 : index
    %93 = vector.load %arg8[%c0_18, %c0_19] : memref<1x32xbf16, #tpu.memory_space<vmem>>, vector<1x32xbf16>
    %94 = arith.truncf %92 : vector<16x32xf32> to vector<16x32xbf16>
    %cst_20 = arith.constant dense<0.000000e+00> : vector<1x16xf32>
    %95 = tpu.matmul %93, %94, %cst_20 {dimension_numbers = #tpu.dot_dimension_numbers<[1], [1], [0], [0], [0, 0, 1, 0], [], []>} : vector<1x32xbf16>, vector<16x32xbf16>, vector<1x16xf32> -> vector<1x16xf32>
    %c0_21 = arith.constant 0 : index
    %c0_22 = arith.constant 0 : index
    %96 = vector.load %arg9[%c0_21, %c0_22] : memref<1x1xf32, #tpu.memory_space<vmem>>, vector<1x1xf32>
    %97 = vector.broadcast %96 : vector<1x1xf32> to vector<1x16xf32>
    %98 = arith.addf %95, %97 : vector<1x16xf32>
    %cst_23 = arith.constant 0.000000e+00 : f32
    %99 = vector.broadcast %cst_23 : f32 to vector<1x16xf32>
    %100 = arith.subf %99, %98 : vector<1x16xf32>
    %101 = math.exp %100 : vector<1x16xf32>
    %cst_24 = arith.constant 1.000000e+00 : f32
    %102 = vector.broadcast %cst_24 : f32 to vector<1x16xf32>
    %103 = arith.addf %102, %101 : vector<1x16xf32>
    %cst_25 = arith.constant 1.000000e+00 : f32
    %104 = vector.broadcast %cst_25 : f32 to vector<1x16xf32>
    %105 = arith.divf %104, %103 : vector<1x16xf32>
    %106 = vector.shape_cast %105 : vector<1x16xf32> to vector<1x1x16xf32>
    %c0_26 = arith.constant 0 : index
    %c0_27 = arith.constant 0 : index
    %c0_28 = arith.constant 0 : index
    %107 = vector.load %arg10[%c0_26, %c0_27, %c0_28] : memref<1x1x16xf32, #tpu.memory_space<vmem>>, vector<1x1x16xf32>
    tpu.vector_store %arg10[%c0_26, %c0_27, %c0_28], %106 {strides = array<i32>} : memref<1x1x16xf32, #tpu.memory_space<vmem>>, vector<1x1x16xf32>,
    return
  }
  func.func @transform_0(%arg0: i32) -> (i32, i32, i32, i32, i32) {
    %c0_i32 = arith.constant 0 : i32
    %c0_i32_0 = arith.constant 0 : i32
    %c0_i32_1 = arith.constant 0 : i32
    %c0_i32_2 = arith.constant 0 : i32
    %c0_i32_3 = arith.constant 0 : i32
    return %arg0, %c0_i32, %c0_i32_0, %c0_i32_1, %c0_i32_2 : i32, i32, i32, i32, i32
  }
  func.func @transform_1(%arg0: i32) -> (i32, i32) {
    %c0_i32 = arith.constant 0 : i32
    %c0_i32_0 = arith.constant 0 : i32
    %c0_i32_1 = arith.constant 0 : i32
    return %c0_i32, %c0_i32_0 : i32, i32
  }
  func.func @transform_2(%arg0: i32) -> (i32, i32) {
    %c0_i32 = arith.constant 0 : i32
    %c0_i32_0 = arith.constant 0 : i32
    %c0_i32_1 = arith.constant 0 : i32
    return %c0_i32, %c0_i32_0 : i32, i32
  }
  func.func @transform_3(%arg0: i32) -> (i32, i32) {
    %c0_i32 = arith.constant 0 : i32
    %c0_i32_0 = arith.constant 0 : i32
    %c0_i32_1 = arith.constant 0 : i32
    return %c0_i32, %c0_i32_0 : i32, i32
  }
  func.func @transform_4(%arg0: i32) -> (i32, i32) {
    %c0_i32 = arith.constant 0 : i32
    %c0_i32_0 = arith.constant 0 : i32
    %c0_i32_1 = arith.constant 0 : i32
    return %c0_i32, %c0_i32_0 : i32, i32
  }
  func.func @transform_5(%arg0: i32) -> (i32, i32) {
    %c0_i32 = arith.constant 0 : i32
    %c0_i32_0 = arith.constant 0 : i32
    %c0_i32_1 = arith.constant 0 : i32
    return %c0_i32, %c0_i32_0 : i32, i32
  }
  func.func @transform_6(%arg0: i32) -> (i32, i32) {
    %c0_i32 = arith.constant 0 : i32
    %c0_i32_0 = arith.constant 0 : i32
    %c0_i32_1 = arith.constant 0 : i32
    return %c0_i32, %c0_i32_0 : i32, i32
  }
  func.func @transform_7(%arg0: i32) -> (i32, i32) {
    %c0_i32 = arith.constant 0 : i32
    %c0_i32_0 = arith.constant 0 : i32
    %c0_i32_1 = arith.constant 0 : i32
    return %c0_i32, %c0_i32_0 : i32, i32
  }
  func.func @transform_8(%arg0: i32) -> (i32, i32) {
    %c0_i32 = arith.constant 0 : i32
    %c0_i32_0 = arith.constant 0 : i32
    %c0_i32_1 = arith.constant 0 : i32
    return %c0_i32, %c0_i32_0 : i32, i32
  }
  func.func @transform_9(%arg0: i32) -> (i32, i32, i32) {
    %c0_i32 = arith.constant 0 : i32
    %c0_i32_0 = arith.constant 0 : i32
    %c0_i32_1 = arith.constant 0 : i32
    return %arg0, %c0_i32, %c0_i32_0 : i32, i32, i32
  }
}

</mosaic_0001>

<bundles_post_ra>
// kernel: mnist_gan_discriminator.1
= control target key start
LH: loop header
LB: loop body
LE: loop exit
PB: predicated region body
PF: predicated region fallthrough
CT: control target
= control target key end

     0   :  { %s10731_s0 = inlined_call_operand.hbm [shape: bf16[1,13,13,16,64], index: 0, kind: input, shape index: {}]   ;;  %s10732_s1 = inlined_call_operand.vmem [shape: bf16[64,16], index: 1, kind: input, shape index: {}]   ;;  %s10733_s2 = inlined_call_operand.vmem [shape: f32[1,16], index: 2, kind: input, shape index: {}]   ;;  %s10734_s3 = inlined_call_operand.vmem [shape: bf16[256,32], index: 3, kind: input, shape index: {}]   ;;  %s10735_s4 = inlined_call_operand.vmem [shape: f32[1,32], index: 4, kind: input, shape index: {}]   ;;  %s10736_s5 = inlined_call_operand.vmem [shape: bf16[512,32], index: 5, kind: input, shape index: {}]   ;;  %s10737_s6 = inlined_call_operand.vmem [shape: f32[1,32], index: 6, kind: input, shape index: {}]   ;;  %s10738_s7 = inlined_call_operand.vmem [shape: bf16[1,32], index: 7, kind: input, shape index: {}]   ;;  %s10739_s8 = inlined_call_operand.<no memory space> [shape: f32[1,1], index: 8, kind: input, shape index: {}]   ;;  %s10740_s9 = inlined_call_operand.vmem [shape: f32[1,1,16], index: 9, kind: output, shape index: {}]  }
   0x1   :  { %v14_v0 = vstv %s10739_s8 }
   0x2   :  { %15 = vst [vmem:[#allocation2] sm:$0x1] %v14_v0 }
   0x3   :  { %16 = vsyncpa [#allocation4], 0  ;;  %s8053_s11 = smov [#allocation3]   ;;  %s8029_s15 = scalar_lea.hbm %s10731_s0, 21632 }
   0x4   :  { %s22_s12 = sshll.u32 %s8053_s11, 4  ;;  %p8030_p0 = scmp.ne.s32.totalorder %s10731_s0, %s8029_s15  ;;  %s23_s12 = int_to_ptr.vmem [resolvable:$true] %s22_s12 }
   0x5   :  { %p8033_p1 = scmp.lt.u32.totalorder %s8029_s15, %s10731_s0 }
   0x7   :  { %p8035_p2 = pnand %p8033_p1, %p8030_p0 }
   0x9   :  { %8038 = shalt.err (!%p8035_p2)
}
   0xa   :  { %s8039_s8 = scalar_lea.vmem %s23_s12, 21632  ;;  %p8044_p4 = scmp.lt.s32.totalorder %s23_s12, %s23_s12 }
   0xb   :  { %p8040_p3 = scmp.ne.s32.totalorder %s23_s12, %s8039_s8  ;;  %p8045_p5 = scmp.lt.s32.totalorder %s8039_s8, %s8039_s8 }
   0xd   :  { %p8046_p6 = por %p8045_p5, %p8044_p4 }
   0xf   :  { %p8047_p7 = pnand %p8046_p6, %p8040_p3 }
  0x11   :  { %8050 = shalt.err (!%p8047_p7)
}
  0x12   :  { %s8054_s20 = smov 64   ;;  %s8055_s21 = smov 4  }
  0x13   :  { %28 = dma.hbm_to_vmem [thread:$0]  %s10731_s0, 21632, %s23_s12, [#allocation4], %s8054_s20, %s8054_s20, %s8055_s21  }
  0x14   :  { %8051 = dma.done.wait [#allocation4], 21632  }
  0x15   :  { %8052 = vsyncadd [#allocation4], 4294945664  ;;  %v10743_v1 = vmov 0.0   ;;  %vm8057_vm0 = vmmov 0   ;;  %v7018_v2 = vld [vmem:[%s10732_s1] sm:$0xff]   ;;  %v7019_v3 = vld [vmem:[%s10732_s1 + $0x8] sm:$0xff]  }
  0x16   :  { %6309 = vmatprep.subr.bf16.mxu0 %v10743_v1  ;;  %6317 = vmatprep.mubr.msk.bf16.mxu0 %vm8057_vm0, %v10743_v1  ;;  %v7020_v4 = vld [vmem:[%s10732_s1 + $0x10] sm:$0xff]   ;;  %v7021_v5 = vld [vmem:[%s10732_s1 + $0x18] sm:$0xff]   ;;  %vm1271_vm1 = vcmask 523264   ;;  %v7023_v7 = vld [vmem:[#allocation3 + $0x8] sm:$0xff]   ;;  %s8058_s11 = smov 16   ;;  %s8059_s14 = smov 32  }
  0x17   :  { %6999 = vmatprep.subr.bf16.mxu1 %v10743_v1  ;;  %6717 = vmatprep.mubr.msk.bf16.mxu1 %vm8057_vm0, %v10743_v1  ;;  %v7022_v6 = vld [vmem:[#allocation3] sm:$0xff]   ;;  %v7024_v8 = vld [vmem:[#allocation3 + $0x10] sm:$0xff]   ;;  %v7025_v9 = vld [vmem:[#allocation3 + $0x18] sm:$0xff]   ;;  %s8060_s15 = smov 48   ;;  %vm4404_vm2 = vcmask 261120   ;;  %vm4295_vm3 = vcmask 130048  }
  0x18   :  { %6310 = vmatpush3.bf16.msra.mxu0 %v7018_v2  ;;  %7003 = vmatpush3.bf16.msra.mxu1 %v7018_v2  ;;  %v7026_v10 = vld [vmem:[#allocation3 + $0x20] sm:$0xff]   ;;  %v7027_v11 = vld [vmem:[#allocation3 + $0x28] sm:$0xff]   ;;  %v7028_v12 = vld [vmem:[#allocation3 + $0x30] sm:$0xff]   ;;  %vm4477_vm4 = vcmask 392192   ;;  %s8062_s18 = smov 96   ;;  %vm5250_vm5 = vcmask 785408  }
  0x19   :  { %6311 = vmatprep.subr.bf16.mxu0 %v10743_v1  ;;  %7000 = vmatprep.subr.bf16.mxu1 %v10743_v1  ;;  %v7029_v13 = vld [vmem:[#allocation3 + $0x38] sm:$0xff]   ;;  %v7030_v14 = vld [vmem:[#allocation3 + $0x40] sm:$0xff]   ;;  %v7031_v15 = vld [vmem:[#allocation3 + $0x48] sm:$0xff]   ;;  %vm5689_vm6 = vcmask 122880  }
  0x1a   :  { %v7032_v16 = vld [vmem:[#allocation3 + $0x50] sm:$0xff]   ;;  %v7033_v17 = vld [vmem:[#allocation3 + $0x58] sm:$0xff]   ;;  %v7034_v18 = vld [vmem:[#allocation3 + $0x60] sm:$0xff]  }
  0x1b   :  { %v7035_v19 = vld [vmem:[#allocation3 + $0x68] sm:$0xff]   ;;  %v7036_v20 = vld [vmem:[#allocation3 + $0x70] sm:$0xff]   ;;  %v7037_v21 = vld [vmem:[#allocation3 + $0x78] sm:$0xff]  }
  0x1c   :  { %6312 = vmatpush3.bf16.msra.mxu0 %v7019_v3  ;;  %7004 = vmatpush3.bf16.msra.mxu1 %v7019_v3  ;;  %v7038_v22 = vld [vmem:[#allocation3 + $0x80] sm:$0xff]   ;;  %v7039_v23 = vld [vmem:[#allocation3 + $0x88] sm:$0xff]   ;;  %v7040_v24 = vld [vmem:[#allocation3 + $0x90] sm:$0xff]  }
  0x1d   :  { %6313 = vmatprep.subr.bf16.mxu0 %v10743_v1  ;;  %7001 = vmatprep.subr.bf16.mxu1 %v10743_v1  ;;  %v7041_v25 = vld [vmem:[#allocation3 + $0x98] sm:$0xff]   ;;  %v7042_v26 = vld [vmem:[#allocation3 + $0xa0] sm:$0xff]   ;;  %v7043_v27 = vld [vmem:[#allocation3 + $0xa8] sm:$0xff]  }
  0x1e   :  { %v7060_v28 = vld [vmem:[#allocation3 + $0x320] sm:$0xff]   ;;  %v7044_v29 = vld [vmem:[#allocation3 + $0xb0] sm:$0xff]   ;;  %v7062_v30 = vld [vmem:[#allocation3 + $0x328] sm:$0xff]  }
  0x1f   :  { %v7045_v31 = vld [vmem:[#allocation3 + $0xb8] sm:$0xff]   ;;  %v7064_v32 = vld [vmem:[#allocation3 + $0x330] sm:$0xff]   ;;  %v7046_v33 = vld [vmem:[#allocation3 + $0xc0] sm:$0xff]  }
  0x20   :  { %6314 = vmatpush3.bf16.msra.mxu0 %v7020_v4  ;;  %7005 = vmatpush3.bf16.msra.mxu1 %v7020_v4  ;;  %v7066_v34 = vld [vmem:[#allocation3 + $0x338] sm:$0xff]   ;;  %v7047_v35 = vld [vmem:[#allocation3 + $0xc8] sm:$0xff]   ;;  %v7068_v36 = vld [vmem:[#allocation3 + $0x340] sm:$0xff]  }
  0x21   :  { %6315 = vmatprep.subr.bf16.mxu0 %v10743_v1  ;;  %7002 = vmatprep.subr.bf16.mxu1 %v10743_v1  ;;  %v7048_v37 = vld [vmem:[#allocation3 + $0xd0] sm:$0xff]   ;;  %v8251_v38 = vld [vmem:[%s10733_s2] ss:$0 sm:$0xff]  ;;  %v7070_v39 = vld [vmem:[#allocation3 + $0x348] sm:$0xff]  }
  0x22   :  { %v7049_v43 = vld [vmem:[#allocation3 + $0xd8] sm:$0xff]   ;;  %v7072_v47 = vld [vmem:[#allocation3 + $0x350] sm:$0xff]   ;;  %v7050_v51 = vld [vmem:[#allocation3 + $0xe0] sm:$0xff]  }
  0x23   :  { %v7074_v56 = vld [vmem:[#allocation3 + $0x358] sm:$0xff]   ;;  %v7051_v62 = vld [vmem:[#allocation3 + $0xe8] sm:$0xff]   ;;  %v7076_v4 = vld [vmem:[#allocation3 + $0x360] sm:$0xff]  }
  0x24   :  { %6316 = vmatpush3.bf16.msra.mxu0 %v7021_v5  ;;  %7006 = vmatpush3.bf16.msra.mxu1 %v7021_v5 }
  0x27   :  { %6318 = vmatmul.mubr.msk.bf16.vlgmr.msra.gmra.mrb[0].mxu0 %vm1271_vm1, %v7022_v6  ;;  %6718 = vmatmul.mubr.msk.bf16.vlgmr.msra.gmra.mrb[0].mxu1 %vm1271_vm1, %v7060_v28  ;;  %v7080_v28 = vld [vmem:[#allocation3 + $0x370] sm:$0xff]  }
  0x28   :  { %6321 = vmatprep.mubr.msk.bf16.mxu0 %vm8057_vm0, %v10743_v1  ;;  %6721 = vmatprep.mubr.msk.bf16.mxu1 %vm8057_vm0, %v10743_v1 }
  0x2f   :  { %6322 = vmatmul.mubr.msk.bf16.gmra.mrb[4].mxu0 %vm1271_vm1, %v7023_v7  ;;  %6722 = vmatmul.mubr.msk.bf16.gmra.mrb[4].mxu1 %vm1271_vm1, %v7062_v30 }
  0x30   :  { %6325 = vmatprep.mubr.msk.bf16.mxu0 %vm8057_vm0, %v10743_v1  ;;  %6725 = vmatprep.mubr.msk.bf16.mxu1 %vm8057_vm0, %v10743_v1 }
  0x37   :  { %6326 = vmatmul.mubr.msk.bf16.gmra.mrb[8].mxu0 %vm1271_vm1, %v7024_v8  ;;  %6726 = vmatmul.mubr.msk.bf16.gmra.mrb[8].mxu1 %vm1271_vm1, %v7064_v32 }
  0x38   :  { %6329 = vmatprep.mubr.msk.bf16.mxu0 %vm8057_vm0, %v10743_v1  ;;  %6729 = vmatprep.mubr.msk.bf16.mxu1 %vm8057_vm0, %v10743_v1 }
  0x3f   :  { %6330 = vmatmul.mubr.msk.bf16.gmra.mrb[12].mxu0 %vm1271_vm1, %v7025_v9  ;;  %6730 = vmatmul.mubr.msk.bf16.gmra.mrb[12].mxu1 %vm1271_vm1, %v7066_v34  ;;  %v7054_v34 = vld [vmem:[#allocation3 + $0x100] sm:$0xff]  }
  0x40   :  { %6333 = vmatprep.mubr.msk.bf16.mxu0 %vm8057_vm0, %v10743_v1  ;;  %6733 = vmatprep.mubr.msk.bf16.mxu1 %vm8057_vm0, %v10743_v1 }
  0x47   :  { %6334 = vmatmul.mubr.msk.bf16.gmra.mrb[16].mxu0 %vm1271_vm1, %v7026_v10  ;;  %6734 = vmatmul.mubr.msk.bf16.gmra.mrb[16].mxu1 %vm1271_vm1, %v7068_v36  ;;  %v7052_v10 = vld [vmem:[#allocation3 + $0xf0] sm:$0xff]  }
  0x48   :  { %6337 = vmatprep.mubr.msk.bf16.mxu0 %vm8057_vm0, %v10743_v1  ;;  %6737 = vmatprep.mubr.msk.bf16.mxu1 %vm8057_vm0, %v10743_v1 }
  0x4f   :  { %6338 = vmatmul.mubr.msk.bf16.gmra.mrb[20].mxu0 %vm1271_vm1, %v7027_v11  ;;  %6738 = vmatmul.mubr.msk.bf16.gmra.mrb[20].mxu1 %vm1271_vm1, %v7070_v39 }
  0x50   :  { %6341 = vmatprep.mubr.msk.bf16.mxu0 %vm8057_vm0, %v10743_v1  ;;  %6741 = vmatprep.mubr.msk.bf16.mxu1 %vm8057_vm0, %v10743_v1 }
  0x57   :  { %6342 = vmatmul.mubr.msk.bf16.gmra.mrb[24].mxu0 %vm1271_vm1, %v7028_v12  ;;  %6742 = vmatmul.mubr.msk.bf16.gmra.mrb[24].mxu1 %vm1271_vm1, %v7072_v47  ;;  %v7055_v47 = vld [vmem:[#allocation3 + $0x108] sm:$0xff]  }
  0x58   :  { %6345 = vmatprep.mubr.msk.bf16.mxu0 %vm8057_vm0, %v10743_v1  ;;  %6745 = vmatprep.mubr.msk.bf16.mxu1 %vm8057_vm0, %v10743_v1 }
  0x5f   :  { %6346 = vmatmul.mubr.msk.bf16.gmra.mrb[28].mxu0 %vm1271_vm1, %v7029_v13  ;;  %6746 = vmatmul.mubr.msk.bf16.gmra.mrb[28].mxu1 %vm1271_vm1, %v7074_v56 }
  0x60   :  { %6349 = vmatprep.mubr.msk.bf16.mxu0 %vm8057_vm0, %v10743_v1  ;;  %6749 = vmatprep.mubr.msk.bf16.mxu1 %vm8057_vm0, %v10743_v1 }
  0x67   :  { %6350 = vmatmul.mubr.msk.bf16.gmra.mrb[32].mxu0 %vm1271_vm1, %v7030_v14  ;;  %6750 = vmatmul.mubr.msk.bf16.gmra.mrb[32].mxu1 %vm1271_vm1, %v7076_v4 }
  0x68   :  { %6353 = vmatprep.mubr.msk.bf16.mxu0 %vm8057_vm0, %v10743_v1  ;;  %6753 = vmatprep.mubr.msk.bf16.mxu1 %vm8057_vm0, %v10743_v1 }
  0x6f   :  { %6354 = vmatmul.mubr.msk.bf16.gmra.mrb[36].mxu0 %vm1271_vm1, %v7031_v15 }
  0x70   :  { %6357 = vmatprep.mubr.msk.bf16.mxu0 %vm8057_vm0, %v10743_v1 }
  0x77   :  { %6358 = vmatmul.mubr.msk.bf16.gmra.mrb[40].mxu0 %vm1271_vm1, %v7032_v16  ;;  %v7078_v16 = vld [vmem:[#allocation3 + $0x368] sm:$0xff]  }
  0x78   :  { %6361 = vmatprep.mubr.msk.bf16.mxu0 %vm8057_vm0, %v10743_v1  ;;  %6754 = vmatmul.mubr.msk.bf16.gmra.mrb[36].mxu1 %vm1271_vm1, %v7078_v16  ;;  %v7088_v16 = vld [vmem:[#allocation3 + $0x390] sm:$0xff]  }
  0x79   :  { %6757 = vmatprep.mubr.msk.bf16.mxu1 %vm8057_vm0, %v10743_v1 }
  0x7f   :  { %6362 = vmatmul.mubr.msk.bf16.gmra.mrb[44].mxu0 %vm1271_vm1, %v7033_v17 }
  0x80   :  { %6365 = vmatprep.mubr.msk.bf16.mxu0 %vm8057_vm0, %v10743_v1  ;;  %6758 = vmatmul.mubr.msk.bf16.gmra.mrb[40].mxu1 %vm1271_vm1, %v7080_v28 }
  0x81   :  { %6761 = vmatprep.mubr.msk.bf16.mxu1 %vm8057_vm0, %v10743_v1 }
  0x87   :  { %6366 = vmatmul.mubr.msk.bf16.gmra.mrb[48].mxu0 %vm1271_vm1, %v7034_v18 }
  0x88   :  { %6369 = vmatprep.mubr.msk.bf16.mxu0 %vm8057_vm0, %v10743_v1 }
  0x8f   :  { %6370 = vmatmul.mubr.msk.bf16.gmra.mrb[52].mxu0 %vm1271_vm1, %v7035_v19 }
  0x90   :  { %6373 = vmatprep.mubr.msk.bf16.mxu0 %vm8057_vm0, %v10743_v1 }
  0x97   :  { %6374 = vmatmul.mubr.msk.bf16.gmra.mrb[56].mxu0 %vm1271_vm1, %v7036_v20 }
  0x98   :  { %6377 = vmatprep.mubr.msk.bf16.mxu0 %vm8057_vm0, %v10743_v1 }
  0x9f   :  { %6378 = vmatmul.mubr.msk.bf16.gmra.mrb[60].mxu0 %vm1271_vm1, %v7037_v21 }
  0xa0   :  { %6381 = vmatprep.mubr.msk.bf16.mxu0 %vm8057_vm0, %v10743_v1 }
  0xa7   :  { %6382 = vmatmul.mubr.msk.bf16.gmra.mrb[64].mxu0 %vm1271_vm1, %v7038_v22  ;;  %v7053_v22 = vld [vmem:[#allocation3 + $0xf8] sm:$0xff]  }
  0xa8   :  { %6385 = vmatprep.mubr.msk.bf16.mxu0 %vm8057_vm0, %v10743_v1 }
  0xaf   :  { %6386 = vmatmul.mubr.msk.bf16.gmra.mrb[68].mxu0 %vm1271_vm1, %v7039_v23 }
  0xb0   :  { %6389 = vmatprep.mubr.msk.bf16.mxu0 %vm8057_vm0, %v10743_v1 }
  0xb7   :  { %6390 = vmatmul.mubr.msk.bf16.gmra.mrb[72].mxu0 %vm1271_vm1, %v7040_v24 }
  0xb8   :  { %6393 = vmatprep.mubr.msk.bf16.mxu0 %vm8057_vm0, %v10743_v1 }
  0xbf   :  { %6394 = vmatmul.mubr.msk.bf16.gmra.mrb[76].mxu0 %vm1271_vm1, %v7041_v25 }
  0xc0   :  { %6397 = vmatprep.mubr.msk.bf16.mxu0 %vm8057_vm0, %v10743_v1 }
  0xc7   :  { %6398 = vmatmul.mubr.msk.bf16.gmra.mrb[80].mxu0 %vm1271_vm1, %v7042_v26 }
  0xc8   :  { %6401 = vmatprep.mubr.msk.bf16.mxu0 %vm8057_vm0, %v10743_v1 }
  0xcf   :  { %6402 = vmatmul.mubr.msk.bf16.gmra.mrb[84].mxu0 %vm1271_vm1, %v7043_v27 }
  0xd0   :  { %6405 = vmatprep.mubr.msk.bf16.mxu0 %vm8057_vm0, %v10743_v1 }
  0xd7   :  { %6406 = vmatmul.mubr.msk.bf16.gmra.mrb[88].mxu0 %vm1271_vm1, %v7044_v29 }
  0xd8   :  { %6409 = vmatprep.mubr.msk.bf16.mxu0 %vm8057_vm0, %v10743_v1 }
  0xdf   :  { %6410 = vmatmul.mubr.msk.bf16.gmra.mrb[92].mxu0 %vm1271_vm1, %v7045_v31 }
  0xe0   :  { %6413 = vmatprep.mubr.msk.bf16.mxu0 %vm8057_vm0, %v10743_v1 }
  0xe7   :  { %6414 = vmatmul.mubr.msk.bf16.gmra.mrb[96].mxu0 %vm1271_vm1, %v7046_v33 }
  0xe8   :  { %6417 = vmatprep.mubr.msk.bf16.mxu0 %vm8057_vm0, %v10743_v1 }
  0xef   :  { %6418 = vmatmul.mubr.msk.bf16.gmra.mrb[100].mxu0 %vm1271_vm1, %v7047_v35 }
  0xf0   :  { %6421 = vmatprep.mubr.msk.bf16.mxu0 %vm8057_vm0, %v10743_v1 }
  0xf7   :  { %6422 = vmatmul.mubr.msk.bf16.gmra.mrb[104].mxu0 %vm1271_vm1, %v7048_v37 }
  0xf8   :  { %6425 = vmatprep.mubr.msk.bf16.mxu0 %vm8057_vm0, %v10743_v1 }
  0xfa   :  { %v1813_v40 = vpop.f32.mrb[0].mxu0 }
  0xfb   :  { %v1814_v41 = vadd.f32 %v8251_v38, %v1813_v40  ;;  %v6319_v42 = vpop.f32.mrb[1].mxu0 }
  0xfc   :  { %v1816_v44 = vpop.f32.mrb[2].mxu0 }
  0xfd   :  { %v1817_v45 = vadd.f32 %v8251_v38, %v1816_v44  ;;  %v6320_v46 = vpop.f32.mrb[3].mxu0  ;;  %7239 = vtanh.f32 %v1814_v41  ;;  %v7082_v41 = vld [vmem:[#allocation3 + $0x378] sm:$0xff]  }
  0xfe   :  { %6762 = vmatmul.mubr.msk.bf16.gmra.mrb[44].mxu1 %vm1271_vm1, %v7082_v41 }
  0xff   :  { %7241 = vtanh.f32 %v1817_v45  ;;  %6426 = vmatmul.mubr.msk.bf16.gmra.mrb[108].mxu0 %vm1271_vm1, %v7049_v43  ;;  %6765 = vmatprep.mubr.msk.bf16.mxu1 %vm8057_vm0, %v10743_v1 }
 0x100   :  { %6429 = vmatprep.mubr.msk.bf16.mxu0 %vm8057_vm0, %v10743_v1 }
 0x102   :  { %v1821_v48 = vpop.f32.mrb[4].mxu0 }
 0x103   :  { %v1822_v49 = vadd.f32 %v8251_v38, %v1821_v48  ;;  %v6323_v50 = vpop.f32.mrb[5].mxu0 }
 0x104   :  { %v1824_v52 = vpop.f32.mrb[6].mxu0 }
 0x105   :  { %v1825_v53 = vadd.f32 %v8251_v38, %v1824_v52  ;;  %v6324_v54 = vpop.f32.mrb[7].mxu0  ;;  %7243 = vtanh.f32 %v1822_v49 }
 0x107   :  { %7245 = vtanh.f32 %v1825_v53  ;;  %6430 = vmatmul.mubr.msk.bf16.gmra.mrb[112].mxu0 %vm1271_vm1, %v7050_v51  ;;  %v7240_v55 = vpop.eup %7239  ;;  %v7084_v53 = vld [vmem:[#allocation3 + $0x380] sm:$0xff]  }
 0x108   :  { %6433 = vmatprep.mubr.msk.bf16.mxu0 %vm8057_vm0, %v10743_v1  ;;  %6766 = vmatmul.mubr.msk.bf16.gmra.mrb[48].mxu1 %vm1271_vm1, %v7084_v53  ;;  %v7061_v53 = vld [vmem:[#allocation3 + $0x130] sm:$0xff]  }
 0x109   :  { %v7242_v57 = vpop.eup %7241  ;;  %6769 = vmatprep.mubr.msk.bf16.mxu1 %vm8057_vm0, %v10743_v1 }
 0x10a   :  { %v1829_v58 = vpop.f32.mrb[8].mxu0  ;;  %v3502_v59 = vpack.c.bf16 %v7242_v57, %v7240_v55 }
 0x10b   :  { %v1830_v60 = vadd.f32 %v8251_v38, %v1829_v58  ;;  %v6327_v61 = vpop.f32.mrb[9].mxu0 }
 0x10c   :  { %v1832_v63 = vpop.f32.mrb[10].mxu0 }
 0x10d   :  { %v1833_v0 = vadd.f32 %v8251_v38, %v1832_v63  ;;  %v6328_v2 = vpop.f32.mrb[11].mxu0  ;;  %7247 = vtanh.f32 %v1830_v60 }
 0x10e   :  { %v7086_v2 = vld [vmem:[#allocation3 + $0x388] sm:$0xff]  }
 0x10f   :  { %7249 = vtanh.f32 %v1833_v0  ;;  %6434 = vmatmul.mubr.msk.bf16.gmra.mrb[116].mxu0 %vm1271_vm1, %v7051_v62  ;;  %v7244_v3 = vpop.eup %7243 }
 0x110   :  { %6437 = vmatprep.mubr.msk.bf16.mxu0 %vm8057_vm0, %v10743_v1  ;;  %6770 = vmatmul.mubr.msk.bf16.gmra.mrb[52].mxu1 %vm1271_vm1, %v7086_v2 }
 0x111   :  { %v7246_v5 = vpop.eup %7245  ;;  %6773 = vmatprep.mubr.msk.bf16.mxu1 %vm8057_vm0, %v10743_v1 }
 0x112   :  { %v1837_v6 = vpop.f32.mrb[12].mxu0  ;;  %v8279_v7 = vpack.c.bf16 %v7246_v5, %v7244_v3 }
 0x113   :  { %v1838_v8 = vadd.f32 %v8251_v38, %v1837_v6  ;;  %v6331_v9 = vpop.f32.mrb[13].mxu0 }
 0x114   :  { %v1840_v11 = vpop.f32.mrb[14].mxu0  ;;  %v8286_v12 = vmax.bf16 %v8279_v7, %v3502_v59  ;;  %v7056_v59 = vld [vmem:[#allocation3 + $0x110] sm:$0xff]   ;;  %v7057_v9 = vld [vmem:[#allocation3 + $0x118] sm:$0xff]  }
 0x115   :  { %v1841_v13 = vadd.f32 %v8251_v38, %v1840_v11  ;;  %v6332_v14 = vpop.f32.mrb[15].mxu0  ;;  %7251 = vtanh.f32 %v1838_v8 }
 0x116   :  { %10833 = vst [vmem:[#allocation6_spill] sm:$0xff] %v8286_v12 }
 0x117   :  { %7253 = vtanh.f32 %v1841_v13  ;;  %6438 = vmatmul.mubr.msk.bf16.gmra.mrb[120].mxu0 %vm1271_vm1, %v7052_v10  ;;  %v7248_v15 = vpop.eup %7247 }
 0x118   :  { %6441 = vmatprep.mubr.msk.bf16.mxu0 %vm8057_vm0, %v10743_v1  ;;  %6774 = vmatmul.mubr.msk.bf16.gmra.mrb[56].mxu1 %vm1271_vm1, %v7088_v16 }
 0x119   :  { %v7250_v17 = vpop.eup %7249  ;;  %6777 = vmatprep.mubr.msk.bf16.mxu1 %vm8057_vm0, %v10743_v1 }
 0x11a   :  { %v1845_v18 = vpop.f32.mrb[16].mxu0  ;;  %v8292_v19 = vpack.c.bf16 %v7250_v17, %v7248_v15 }
 0x11b   :  { %v1846_v20 = vadd.f32 %v8251_v38, %v1845_v18  ;;  %v6335_v21 = vpop.f32.mrb[17].mxu0 }
 0x11c   :  { %v1848_v23 = vpop.f32.mrb[18].mxu0  ;;  %v3672_v24 = vmax.bf16 %v8292_v19, %v8279_v7 }
 0x11d   :  { %v1849_v25 = vadd.f32 %v8251_v38, %v1848_v23  ;;  %v6336_v26 = vpop.f32.mrb[19].mxu0  ;;  %7255 = vtanh.f32 %v1846_v20  ;;  %v7058_v23 = vld [vmem:[#allocation3 + $0x120] sm:$0xff]  }
 0x11f   :  { %7257 = vtanh.f32 %v1849_v25  ;;  %6442 = vmatmul.mubr.msk.bf16.gmra.mrb[124].mxu0 %vm1271_vm1, %v7053_v22  ;;  %v7252_v27 = vpop.eup %7251 }
 0x120   :  { %6445 = vmatprep.mubr.msk.bf16.mxu0 %vm8057_vm0, %v10743_v1 }
 0x121   :  { %v7254_v29 = vpop.eup %7253 }
 0x122   :  { %v1853_v30 = vpop.f32.mrb[20].mxu0  ;;  %v8304_v31 = vpack.c.bf16 %v7254_v29, %v7252_v27 }
 0x123   :  { %v1854_v32 = vadd.f32 %v8251_v38, %v1853_v30  ;;  %v6339_v33 = vpop.f32.mrb[21].mxu0  ;;  %v7090_v30 = vld [vmem:[#allocation3 + $0x398] sm:$0xff]  }
 0x124   :  { %v1856_v35 = vpop.f32.mrb[22].mxu0  ;;  %6778 = vmatmul.mubr.msk.bf16.gmra.mrb[60].mxu1 %vm1271_vm1, %v7090_v30  ;;  %v7098_v30 = vld [vmem:[#allocation3 + $0x3b8] sm:$0xff]  }
 0x125   :  { %v1857_v37 = vadd.f32 %v8251_v38, %v1856_v35  ;;  %v6340_v39 = vpop.f32.mrb[23].mxu0  ;;  %7259 = vtanh.f32 %v1854_v32  ;;  %6781 = vmatprep.mubr.msk.bf16.mxu1 %vm8057_vm0, %v10743_v1 }
 0x126   :  { %v7059_v39 = vld [vmem:[#allocation3 + $0x128] sm:$0xff]  }
 0x127   :  { %7261 = vtanh.f32 %v1857_v37  ;;  %6446 = vmatmul.mubr.msk.bf16.gmra.mrb[128].mxu0 %vm1271_vm1, %v7054_v34  ;;  %v7256_v40 = vpop.eup %7255 }
 0x128   :  { %6449 = vmatprep.mubr.msk.bf16.mxu0 %vm8057_vm0, %v10743_v1 }
 0x129   :  { %v7258_v42 = vpop.eup %7257 }
 0x12a   :  { %v1861_v43 = vpop.f32.mrb[24].mxu0  ;;  %v8316_v44 = vpack.c.bf16 %v7258_v42, %v7256_v40 }
 0x12b   :  { %v1862_v45 = vadd.f32 %v8251_v38, %v1861_v43  ;;  %v6343_v46 = vpop.f32.mrb[25].mxu0 }
 0x12c   :  { %v1864_v48 = vpop.f32.mrb[26].mxu0  ;;  %v3674_v49 = vmax.bf16 %v8316_v44, %v8304_v31  ;;  %v7092_v46 = vld [vmem:[#allocation3 + $0x3a0] sm:$0xff]  }
 0x12d   :  { %v1865_v50 = vadd.f32 %v8251_v38, %v1864_v48  ;;  %v6344_v51 = vpop.f32.mrb[27].mxu0  ;;  %7263 = vtanh.f32 %v1862_v45  ;;  %6782 = vmatmul.mubr.msk.bf16.gmra.mrb[64].mxu1 %vm1271_vm1, %v7092_v46 }
 0x12e   :  { %6785 = vmatprep.mubr.msk.bf16.mxu1 %vm8057_vm0, %v10743_v1 }
 0x12f   :  { %7265 = vtanh.f32 %v1865_v50  ;;  %6450 = vmatmul.mubr.msk.bf16.gmra.mrb[132].mxu0 %vm1271_vm1, %v7055_v47  ;;  %v7260_v52 = vpop.eup %7259 }
 0x130   :  { %6453 = vmatprep.mubr.msk.bf16.mxu0 %vm8057_vm0, %v10743_v1 }
 0x131   :  { %v7262_v54 = vpop.eup %7261 }
 0x132   :  { %v1869_v55 = vpop.f32.mrb[28].mxu0  ;;  %v8328_v56 = vpack.c.bf16 %v7262_v54, %v7260_v52 }
 0x133   :  { %v1870_v57 = vadd.f32 %v8251_v38, %v1869_v55  ;;  %v6347_v58 = vpop.f32.mrb[29].mxu0 }
 0x134   :  { %v1872_v60 = vpop.f32.mrb[30].mxu0 }
 0x135   :  { %v1873_v62 = vadd.f32 %v8251_v38, %v1872_v60  ;;  %v6348_v63 = vpop.f32.mrb[31].mxu0  ;;  %7267 = vtanh.f32 %v1870_v57  ;;  %v7094_v60 = vld [vmem:[#allocation3 + $0x3a8] sm:$0xff]  }
 0x136   :  { %6786 = vmatmul.mubr.msk.bf16.gmra.mrb[68].mxu1 %vm1271_vm1, %v7094_v60 }
 0x137   :  { %7269 = vtanh.f32 %v1873_v62  ;;  %6454 = vmatmul.mubr.msk.bf16.gmra.mrb[136].mxu0 %vm1271_vm1, %v7056_v59  ;;  %v7264_v0 = vpop.eup %7263  ;;  %6789 = vmatprep.mubr.msk.bf16.mxu1 %vm8057_vm0, %v10743_v1 }
 0x138   :  { %6457 = vmatprep.mubr.msk.bf16.mxu0 %vm8057_vm0, %v10743_v1 }
 0x139   :  { %v7266_v3 = vpop.eup %7265 }
 0x13a   :  { %v1877_v4 = vpop.f32.mrb[32].mxu0  ;;  %v8340_v5 = vpack.c.bf16 %v7266_v3, %v7264_v0 }
 0x13b   :  { %v1878_v6 = vadd.f32 %v8251_v38, %v1877_v4  ;;  %v6351_v8 = vpop.f32.mrb[33].mxu0  ;;  %v7063_v4 = vld [vmem:[#allocation3 + $0x138] sm:$0xff]  }
 0x13c   :  { %v1880_v10 = vpop.f32.mrb[34].mxu0  ;;  %v3676_v11 = vmax.bf16 %v8340_v5, %v8328_v56 }
 0x13d   :  { %v1881_v13 = vadd.f32 %v8251_v38, %v1880_v10  ;;  %v6352_v14 = vpop.f32.mrb[35].mxu0  ;;  %7271 = vtanh.f32 %v1878_v6 }
 0x13e   :  { %v7096_v14 = vld [vmem:[#allocation3 + $0x3b0] sm:$0xff]  }
 0x13f   :  { %7273 = vtanh.f32 %v1881_v13  ;;  %6458 = vmatmul.mubr.msk.bf16.gmra.mrb[140].mxu0 %vm1271_vm1, %v7057_v9  ;;  %v7268_v15 = vpop.eup %7267  ;;  %6790 = vmatmul.mubr.msk.bf16.gmra.mrb[72].mxu1 %vm1271_vm1, %v7096_v14 }
 0x140   :  { %6461 = vmatprep.mubr.msk.bf16.mxu0 %vm8057_vm0, %v10743_v1  ;;  %6793 = vmatprep.mubr.msk.bf16.mxu1 %vm8057_vm0, %v10743_v1 }
 0x141   :  { %v7270_v17 = vpop.eup %7269 }
 0x142   :  { %v1885_v18 = vpop.f32.mrb[36].mxu0  ;;  %v8352_v20 = vpack.c.bf16 %v7270_v17, %v7268_v15 }
 0x143   :  { %v1886_v21 = vadd.f32 %v8251_v38, %v1885_v18  ;;  %v6355_v22 = vpop.f32.mrb[37].mxu0 }
 0x144   :  { %v1888_v25 = vpop.f32.mrb[38].mxu0  ;;  %v7065_v22 = vld [vmem:[#allocation3 + $0x140] sm:$0xff]  }
 0x145   :  { %v1889_v27 = vadd.f32 %v8251_v38, %v1888_v25  ;;  %v6356_v28 = vpop.f32.mrb[39].mxu0  ;;  %7275 = vtanh.f32 %v1886_v21 }
 0x147   :  { %7277 = vtanh.f32 %v1889_v27  ;;  %6462 = vmatmul.mubr.msk.bf16.gmra.mrb[144].mxu0 %vm1271_vm1, %v7058_v23  ;;  %v7272_v29 = vpop.eup %7271  ;;  %6794 = vmatmul.mubr.msk.bf16.gmra.mrb[76].mxu1 %vm1271_vm1, %v7098_v30 }
 0x148   :  { %6465 = vmatprep.mubr.msk.bf16.mxu0 %vm8057_vm0, %v10743_v1  ;;  %6797 = vmatprep.mubr.msk.bf16.mxu1 %vm8057_vm0, %v10743_v1 }
 0x149   :  { %v7274_v32 = vpop.eup %7273 }
 0x14a   :  { %v1893_v33 = vpop.f32.mrb[40].mxu0  ;;  %v8364_v34 = vpack.c.bf16 %v7274_v32, %v7272_v29 }
 0x14b   :  { %v1894_v35 = vadd.f32 %v8251_v38, %v1893_v33  ;;  %v6359_v37 = vpop.f32.mrb[41].mxu0 }
 0x14c   :  { %10834 = vst [vmem:[#allocation7_spill] sm:$0xff] %v8364_v34  ;;  %v1896_v40 = vpop.f32.mrb[42].mxu0  ;;  %v3678_v41 = vmax.bf16 %v8364_v34, %v8352_v20 }
 0x14d   :  { %v1897_v42 = vadd.f32 %v8251_v38, %v1896_v40  ;;  %v6360_v43 = vpop.f32.mrb[43].mxu0  ;;  %7279 = vtanh.f32 %v1894_v35  ;;  %v7067_v40 = vld [vmem:[#allocation3 + $0x148] sm:$0xff]  }
 0x14f   :  { %7281 = vtanh.f32 %v1897_v42  ;;  %6466 = vmatmul.mubr.msk.bf16.gmra.mrb[148].mxu0 %vm1271_vm1, %v7059_v39  ;;  %v7276_v45 = vpop.eup %7275 }
 0x150   :  { %6469 = vmatprep.mubr.msk.bf16.mxu0 %vm8057_vm0, %v10743_v1 }
 0x151   :  { %v7278_v47 = vpop.eup %7277 }
 0x152   :  { %v1901_v48 = vpop.f32.mrb[44].mxu0  ;;  %v8376_v50 = vpack.c.bf16 %v7278_v47, %v7276_v45 }
 0x153   :  { %v1902_v51 = vadd.f32 %v8251_v38, %v1901_v48  ;;  %v6363_v52 = vpop.f32.mrb[45].mxu0  ;;  %v7100_v48 = vld [vmem:[#allocation3 + $0x3c0] sm:$0xff]  }
 0x154   :  { %10835 = vst [vmem:[#allocation8_spill] sm:$0xff] %v8376_v50  ;;  %v1904_v54 = vpop.f32.mrb[46].mxu0  ;;  %6798 = vmatmul.mubr.msk.bf16.gmra.mrb[80].mxu1 %vm1271_vm1, %v7100_v48 }
 0x155   :  { %v1905_v57 = vadd.f32 %v8251_v38, %v1904_v54  ;;  %v6364_v58 = vpop.f32.mrb[47].mxu0  ;;  %7283 = vtanh.f32 %v1902_v51  ;;  %6801 = vmatprep.mubr.msk.bf16.mxu1 %vm8057_vm0, %v10743_v1 }
 0x156   :  { %v7069_v58 = vld [vmem:[#allocation3 + $0x150] sm:$0xff]  }
 0x157   :  { %7285 = vtanh.f32 %v1905_v57  ;;  %6470 = vmatmul.mubr.msk.bf16.gmra.mrb[152].mxu0 %vm1271_vm1, %v7061_v53  ;;  %v7280_v59 = vpop.eup %7279 }
 0x158   :  { %6473 = vmatprep.mubr.msk.bf16.mxu0 %vm8057_vm0, %v10743_v1 }
 0x159   :  { %v7282_v62 = vpop.eup %7281 }
 0x15a   :  { %v1909_v63 = vpop.f32.mrb[48].mxu0  ;;  %v8388_v0 = vpack.c.bf16 %v7282_v62, %v7280_v59 }
 0x15b   :  { %v1910_v2 = vadd.f32 %v8251_v38, %v1909_v63  ;;  %v6367_v3 = vpop.f32.mrb[49].mxu0 }
 0x15c   :  { %10836 = vst [vmem:[#allocation9_spill] sm:$0xff] %v8388_v0  ;;  %v1912_v6 = vpop.f32.mrb[50].mxu0  ;;  %v3680_v8 = vmax.bf16 %v8388_v0, %v8376_v50 }
 0x15d   :  { %v1913_v9 = vadd.f32 %v8251_v38, %v1912_v6  ;;  %v6368_v10 = vpop.f32.mrb[51].mxu0  ;;  %7287 = vtanh.f32 %v1910_v2  ;;  %v7102_v2 = vld [vmem:[#allocation3 + $0x3c8] sm:$0xff]  }
 0x15e   :  { %6802 = vmatmul.mubr.msk.bf16.gmra.mrb[84].mxu1 %vm1271_vm1, %v7102_v2 }
 0x15f   :  { %7289 = vtanh.f32 %v1913_v9  ;;  %6474 = vmatmul.mubr.msk.bf16.gmra.mrb[156].mxu0 %vm1271_vm1, %v7063_v4  ;;  %v7284_v13 = vpop.eup %7283  ;;  %6805 = vmatprep.mubr.msk.bf16.mxu1 %vm8057_vm0, %v10743_v1 }
 0x160   :  { %6477 = vmatprep.mubr.msk.bf16.mxu0 %vm8057_vm0, %v10743_v1 }
 0x161   :  { %v7286_v15 = vpop.eup %7285 }
 0x162   :  { %v1917_v16 = vpop.f32.mrb[52].mxu0  ;;  %v8400_v17 = vpack.c.bf16 %v7286_v15, %v7284_v13  ;;  %v7071_v13 = vld [vmem:[#allocation3 + $0x158] sm:$0xff]  }
 0x163   :  { %v1918_v18 = vadd.f32 %v8251_v38, %v1917_v16  ;;  %v6371_v21 = vpop.f32.mrb[53].mxu0 }
 0x164   :  { %10837 = vst [vmem:[#allocation10_spill] sm:$0xff] %v8400_v17  ;;  %v1920_v23 = vpop.f32.mrb[54].mxu0 }
 0x165   :  { %v1921_v27 = vadd.f32 %v8251_v38, %v1920_v23  ;;  %v6372_v28 = vpop.f32.mrb[55].mxu0  ;;  %7291 = vtanh.f32 %v1918_v18 }
 0x167   :  { %7293 = vtanh.f32 %v1921_v27  ;;  %6478 = vmatmul.mubr.msk.bf16.gmra.mrb[160].mxu0 %vm1271_vm1, %v7065_v22  ;;  %v7288_v29 = vpop.eup %7287  ;;  %v7104_v22 = vld [vmem:[#allocation3 + $0x3d0] sm:$0xff]  }
 0x168   :  { %6481 = vmatprep.mubr.msk.bf16.mxu0 %vm8057_vm0, %v10743_v1  ;;  %6806 = vmatmul.mubr.msk.bf16.gmra.mrb[88].mxu1 %vm1271_vm1, %v7104_v22 }
 0x169   :  { %v7290_v32 = vpop.eup %7289  ;;  %6809 = vmatprep.mubr.msk.bf16.mxu1 %vm8057_vm0, %v10743_v1 }
 0x16a   :  { %v1925_v33 = vpop.f32.mrb[56].mxu0  ;;  %v3514_v35 = vpack.c.bf16 %v7290_v32, %v7288_v29  ;;  %v7073_v32 = vld [vmem:[#allocation3 + $0x160] sm:$0xff]  }
 0x16b   :  { %v1926_v37 = vadd.f32 %v8251_v38, %v1925_v33  ;;  %v6375_v39 = vpop.f32.mrb[57].mxu0 }
 0x16c   :  { %v1928_v42 = vpop.f32.mrb[58].mxu0  ;;  %v8417_v43 = vmax.bf16 %v3514_v35, %v8400_v17 }
 0x16d   :  { %v1929_v45 = vadd.f32 %v8251_v38, %v1928_v42  ;;  %v6376_v46 = vpop.f32.mrb[59].mxu0  ;;  %7295 = vtanh.f32 %v1926_v37 }
 0x16f   :  { %7297 = vtanh.f32 %v1929_v45  ;;  %6482 = vmatmul.mubr.msk.bf16.gmra.mrb[164].mxu0 %vm1271_vm1, %v7067_v40  ;;  %v7292_v47 = vpop.eup %7291  ;;  %v7106_v45 = vld [vmem:[#allocation3 + $0x3d8] sm:$0xff]  }
 0x170   :  { %6485 = vmatprep.mubr.msk.bf16.mxu0 %vm8057_vm0, %v10743_v1  ;;  %6810 = vmatmul.mubr.msk.bf16.gmra.mrb[92].mxu1 %vm1271_vm1, %v7106_v45 }
 0x171   :  { %v7294_v51 = vpop.eup %7293  ;;  %6813 = vmatprep.mubr.msk.bf16.mxu1 %vm8057_vm0, %v10743_v1 }
 0x172   :  { %v1933_v52 = vpop.f32.mrb[60].mxu0  ;;  %v3515_v53 = vpack.c.bf16 %v7294_v51, %v7292_v47 }
 0x173   :  { %v1934_v54 = vadd.f32 %v8251_v38, %v1933_v52  ;;  %v6379_v57 = vpop.f32.mrb[61].mxu0 }
 0x174   :  { %v1936_v59 = vpop.f32.mrb[62].mxu0 }
 0x175   :  { %v1937_v60 = vadd.f32 %v8251_v38, %v1936_v59  ;;  %v6380_v62 = vpop.f32.mrb[63].mxu0  ;;  %7299 = vtanh.f32 %v1934_v54  ;;  %v7108_v59 = vld [vmem:[#allocation3 + $0x3e0] sm:$0xff]  }
 0x177   :  { %7301 = vtanh.f32 %v1937_v60  ;;  %6486 = vmatmul.mubr.msk.bf16.gmra.mrb[168].mxu0 %vm1271_vm1, %v7069_v58  ;;  %v7296_v63 = vpop.eup %7295 }
 0x178   :  { %6489 = vmatprep.mubr.msk.bf16.mxu0 %vm8057_vm0, %v10743_v1  ;;  %6814 = vmatmul.mubr.msk.bf16.gmra.mrb[96].mxu1 %vm1271_vm1, %v7108_v59 }
 0x179   :  { %v7298_v3 = vpop.eup %7297  ;;  %6817 = vmatprep.mubr.msk.bf16.mxu1 %vm8057_vm0, %v10743_v1 }
 0x17a   :  { %v1941_v4 = vpop.f32.mrb[64].mxu0  ;;  %v3516_v6 = vpack.c.bf16 %v7298_v3, %v7296_v63 }
 0x17b   :  { %v1942_v9 = vadd.f32 %v8251_v38, %v1941_v4  ;;  %v6383_v10 = vpop.f32.mrb[65].mxu0  ;;  %v7077_v4 = vld [vmem:[#allocation3 + $0x170] sm:$0xff]  }
 0x17c   :  { %v1944_v14 = vpop.f32.mrb[66].mxu0  ;;  %v8435_v15 = vmax.bf16 %v3516_v6, %v3515_v53 }
 0x17d   :  { %v1945_v16 = vadd.f32 %v8251_v38, %v1944_v14  ;;  %v6384_v18 = vpop.f32.mrb[67].mxu0  ;;  %7303 = vtanh.f32 %v1942_v9 }
 0x17e   :  { %v7110_v18 = vld [vmem:[#allocation3 + $0x3e8] sm:$0xff]  }
 0x17f   :  { %7305 = vtanh.f32 %v1945_v16  ;;  %6490 = vmatmul.mubr.msk.bf16.gmra.mrb[172].mxu0 %vm1271_vm1, %v7071_v13  ;;  %v7300_v21 = vpop.eup %7299 }
 0x180   :  { %6493 = vmatprep.mubr.msk.bf16.mxu0 %vm8057_vm0, %v10743_v1  ;;  %6818 = vmatmul.mubr.msk.bf16.gmra.mrb[100].mxu1 %vm1271_vm1, %v7110_v18 }
 0x181   :  { %v7302_v23 = vpop.eup %7301  ;;  %6821 = vmatprep.mubr.msk.bf16.mxu1 %vm8057_vm0, %v10743_v1 }
 0x182   :  { %v1949_v27 = vpop.f32.mrb[68].mxu0  ;;  %v3517_v28 = vpack.c.bf16 %v7302_v23, %v7300_v21 }
 0x183   :  { %v1950_v29 = vadd.f32 %v8251_v38, %v1949_v27  ;;  %v6387_v30 = vpop.f32.mrb[69].mxu0 }
 0x184   :  { %v1952_v33 = vpop.f32.mrb[70].mxu0  ;;  %v8445_v35 = vmax.bf16 %v3517_v28, %v3516_v6 }
 0x185   :  { %v1953_v37 = vadd.f32 %v8251_v38, %v1952_v33  ;;  %v6388_v39 = vpop.f32.mrb[71].mxu0  ;;  %7307 = vtanh.f32 %v1950_v29  ;;  %v7079_v29 = vld [vmem:[#allocation3 + $0x178] sm:$0xff]  }
 0x186   :  { %v3828_v40 = vmax.bf16 %v8445_v35, %v3672_v24  ;;  %v7075_v24 = vld [vmem:[#allocation3 + $0x168] sm:$0xff]   ;;  %v7112_v39 = vld [vmem:[#allocation3 + $0x3f0] sm:$0xff]  }
 0x187   :  { %7309 = vtanh.f32 %v1953_v37  ;;  %6494 = vmatmul.mubr.msk.bf16.gmra.mrb[176].mxu0 %vm1271_vm1, %v7073_v32  ;;  %v7304_v42 = vpop.eup %7303 }
 0x188   :  { %4007 = vrot.lane.b32.xlu0 %v3828_v40, %s8058_s11  ;;  %6497 = vmatprep.mubr.msk.bf16.mxu0 %vm8057_vm0, %v10743_v1 }
 0x189   :  { %v7306_v46 = vpop.eup %7305  ;;  %6822 = vmatmul.mubr.msk.bf16.gmra.mrb[104].mxu1 %vm1271_vm1, %v7112_v39  ;;  %v7118_v39 = vld [vmem:[#allocation3 + $0x408] sm:$0xff]  }
 0x18a   :  { %v1957_v47 = vpop.f32.mrb[72].mxu0  ;;  %v3518_v48 = vpack.c.bf16 %v7306_v46, %v7304_v42  ;;  %6825 = vmatprep.mubr.msk.bf16.mxu1 %vm8057_vm0, %v10743_v1 }
 0x18b   :  { %v1958_v7 = vadd.f32 %v8251_v38, %v1957_v47  ;;  %v6391_v51 = vpop.f32.mrb[73].mxu0 }
 0x18c   :  { %v1960_v52 = vpop.f32.mrb[74].mxu0  ;;  %v8460_v53 = vmax.bf16 %v3518_v48, %v3517_v28 }
 0x18d   :  { %v1961_v54 = vadd.f32 %v8251_v38, %v1960_v52  ;;  %v6392_v57 = vpop.f32.mrb[75].mxu0  ;;  %7311 = vtanh.f32 %v1958_v7 }
 0x18f   :  { %7313 = vtanh.f32 %v1961_v54  ;;  %6498 = vmatmul.mubr.msk.bf16.gmra.mrb[180].mxu0 %vm1271_vm1, %v7075_v24  ;;  %v7308_v58 = vpop.eup %7307 }
 0x190   :  { %6501 = vmatprep.mubr.msk.bf16.mxu0 %vm8057_vm0, %v10743_v1 }
 0x191   :  { %v7310_v60 = vpop.eup %7309 }
 0x192   :  { %v1965_v62 = vpop.f32.mrb[76].mxu0  ;;  %v3519_v63 = vpack.c.bf16 %v7310_v60, %v7308_v58  ;;  %v7114_v58 = vld [vmem:[#allocation3 + $0x3f8] sm:$0xff]  }
 0x193   :  { %v1966_v2 = vadd.f32 %v8251_v38, %v1965_v62  ;;  %v6395_v3 = vpop.f32.mrb[77].mxu0  ;;  %6826 = vmatmul.mubr.msk.bf16.gmra.mrb[108].mxu1 %vm1271_vm1, %v7114_v58 }
 0x194   :  { %v1968_v6 = vpop.f32.mrb[78].mxu0  ;;  %v8470_v9 = vmax.bf16 %v3519_v63, %v3518_v48  ;;  %v7081_v48 = vld [vmem:[#allocation3 + $0x180] sm:$0xff]   ;;  %v7083_v3 = vld [vmem:[#allocation3 + $0x188] sm:$0xff]   ;;  %6829 = vmatprep.mubr.msk.bf16.mxu1 %vm8057_vm0, %v10743_v1 }
 0x195   :  { %v1969_v10 = vadd.f32 %v8251_v38, %v1968_v6  ;;  %v6396_v13 = vpop.f32.mrb[79].mxu0  ;;  %7315 = vtanh.f32 %v1966_v2 }
 0x196   :  { %v3830_v14 = vmax.bf16 %v8470_v9, %v3674_v49 }
 0x197   :  { %7317 = vtanh.f32 %v1969_v10  ;;  %6502 = vmatmul.mubr.msk.bf16.gmra.mrb[184].mxu0 %vm1271_vm1, %v7077_v4  ;;  %v7312_v16 = vpop.eup %7311 }
 0x198   :  { %4009 = vrot.lane.b32.xlu0 %v3830_v14, %s8058_s11  ;;  %6505 = vmatprep.mubr.msk.bf16.mxu0 %vm8057_vm0, %v10743_v1  ;;  %v7116_v14 = vld [vmem:[#allocation3 + $0x400] sm:$0xff]  }
 0x199   :  { %v7314_v21 = vpop.eup %7313 }
 0x19a   :  { %v1973_v22 = vpop.f32.mrb[80].mxu0  ;;  %v3520_v23 = vpack.c.bf16 %v7314_v21, %v7312_v16 }
 0x19b   :  { %v1974_v27 = vadd.f32 %v8251_v38, %v1973_v22  ;;  %v6399_v28 = vpop.f32.mrb[81].mxu0  ;;  %6830 = vmatmul.mubr.msk.bf16.gmra.mrb[112].mxu1 %vm1271_vm1, %v7116_v14  ;;  %v7122_v14 = vld [vmem:[#allocation3 + $0x418] sm:$0xff]  }
 0x19c   :  { %v1976_v49 = vpop.f32.mrb[82].mxu0  ;;  %v8485_v30 = vmax.bf16 %v3520_v23, %v3519_v63  ;;  %6833 = vmatprep.mubr.msk.bf16.mxu1 %vm8057_vm0, %v10743_v1 }
 0x19d   :  { %v1977_v32 = vadd.f32 %v8251_v38, %v1976_v49  ;;  %v6400_v33 = vpop.f32.mrb[83].mxu0  ;;  %7319 = vtanh.f32 %v1974_v27  ;;  %v7085_v27 = vld [vmem:[#allocation3 + $0x190] sm:$0xff]  }
 0x19f   :  { %7321 = vtanh.f32 %v1977_v32  ;;  %6506 = vmatmul.mubr.msk.bf16.gmra.mrb[188].mxu0 %vm1271_vm1, %v7079_v29  ;;  %v7316_v37 = vpop.eup %7315 }
 0x1a0   :  { %6509 = vmatprep.mubr.msk.bf16.mxu0 %vm8057_vm0, %v10743_v1 }
 0x1a1   :  { %v7318_v40 = vpop.eup %7317 }
 0x1a2   :  { %v1981_v42 = vpop.f32.mrb[84].mxu0  ;;  %v3521_v45 = vpack.c.bf16 %v7318_v40, %v7316_v37 }
 0x1a3   :  { %v1982_v46 = vadd.f32 %v8251_v38, %v1981_v42  ;;  %v6403_v47 = vpop.f32.mrb[85].mxu0  ;;  %6834 = vmatmul.mubr.msk.bf16.gmra.mrb[116].mxu1 %vm1271_vm1, %v7118_v39  ;;  %v7124_v39 = vld [vmem:[#allocation3 + $0x420] sm:$0xff]  }
 0x1a4   :  { %v1984_v7 = vpop.f32.mrb[86].mxu0  ;;  %v8495_v51 = vmax.bf16 %v3521_v45, %v3520_v23  ;;  %6837 = vmatprep.mubr.msk.bf16.mxu1 %vm8057_vm0, %v10743_v1 }
 0x1a5   :  { %v1985_v24 = vadd.f32 %v8251_v38, %v1984_v7  ;;  %v6404_v52 = vpop.f32.mrb[87].mxu0  ;;  %7323 = vtanh.f32 %v1982_v46 }
 0x1a6   :  { %v3832_v54 = vmax.bf16 %v8495_v51, %v3676_v11 }
 0x1a7   :  { %7325 = vtanh.f32 %v1985_v24  ;;  %6510 = vmatmul.mubr.msk.bf16.gmra.mrb[192].mxu0 %vm1271_vm1, %v7081_v48  ;;  %v7320_v57 = vpop.eup %7319  ;;  %v7087_v48 = vld [vmem:[#allocation3 + $0x198] sm:$0xff]  }
 0x1a8   :  { %4011 = vrot.lane.b32.xlu1 %v3832_v54, %s8058_s11  ;;  %6513 = vmatprep.mubr.msk.bf16.mxu0 %vm8057_vm0, %v10743_v1 }
 0x1a9   :  { %v7322_v59 = vpop.eup %7321 }
 0x1aa   :  { %v1989_v60 = vpop.f32.mrb[88].mxu0  ;;  %v3522_v62 = vpack.c.bf16 %v7322_v59, %v7320_v57  ;;  %v7120_v57 = vld [vmem:[#allocation3 + $0x410] sm:$0xff]  }
 0x1ab   :  { %v1990_v63 = vadd.f32 %v8251_v38, %v1989_v60  ;;  %v6407_v2 = vpop.f32.mrb[89].mxu0  ;;  %6838 = vmatmul.mubr.msk.bf16.gmra.mrb[120].mxu1 %vm1271_vm1, %v7120_v57 }
 0x1ac   :  { %v1992_v11 = vpop.f32.mrb[90].mxu0  ;;  %v8510_v4 = vmax.bf16 %v3522_v62, %v3521_v45  ;;  %v7089_v2 = vld [vmem:[#allocation3 + $0x1a0] sm:$0xff]   ;;  %6841 = vmatprep.mubr.msk.bf16.mxu1 %vm8057_vm0, %v10743_v1 }
 0x1ad   :  { %v1993_v6 = vadd.f32 %v8251_v38, %v1992_v11  ;;  %v6408_v10 = vpop.f32.mrb[91].mxu0  ;;  %7327 = vtanh.f32 %v1990_v63 }
 0x1af   :  { %7329 = vtanh.f32 %v1993_v6  ;;  %6514 = vmatmul.mubr.msk.bf16.gmra.mrb[196].mxu0 %vm1271_vm1, %v7083_v3  ;;  %v7324_v13 = vpop.eup %7323 }
 0x1b0   :  { %6517 = vmatprep.mubr.msk.bf16.mxu0 %vm8057_vm0, %v10743_v1 }
 0x1b1   :  { %v7326_v16 = vpop.eup %7325 }
 0x1b2   :  { %v1997_v18 = vpop.f32.mrb[92].mxu0  ;;  %v3523_v21 = vpack.c.bf16 %v7326_v16, %v7324_v13 }
 0x1b3   :  { %v1998_v22 = vadd.f32 %v8251_v38, %v1997_v18  ;;  %v6411_v23 = vpop.f32.mrb[93].mxu0  ;;  %6842 = vmatmul.mubr.msk.bf16.gmra.mrb[124].mxu1 %vm1271_vm1, %v7122_v14  ;;  %v8589_v14 = vpop.f32.mrb[0].mxu1 }
 0x1b4   :  { %v2000_v28 = vpop.f32.mrb[94].mxu0  ;;  %v8520_v29 = vmax.bf16 %v3523_v21, %v3522_v62  ;;  %6845 = vmatprep.mubr.msk.bf16.mxu1 %vm8057_vm0, %v10743_v1 }
 0x1b5   :  { %v2001_v49 = vadd.f32 %v8251_v38, %v2000_v28  ;;  %v6412_v32 = vpop.f32.mrb[95].mxu0  ;;  %7331 = vtanh.f32 %v1998_v22  ;;  %v7091_v28 = vld [vmem:[#allocation3 + $0x1a8] sm:$0xff]  }
 0x1b6   :  { %v3834_v33 = vmax.bf16 %v8520_v29, %v3678_v41 }
 0x1b7   :  { %7333 = vtanh.f32 %v2001_v49  ;;  %6518 = vmatmul.mubr.msk.bf16.gmra.mrb[200].mxu0 %vm1271_vm1, %v7085_v27  ;;  %v7328_v37 = vpop.eup %7327 }
 0x1b8   :  { %4013 = vrot.lane.b32.xlu1 %v3834_v33, %s8058_s11  ;;  %6521 = vmatprep.mubr.msk.bf16.mxu0 %vm8057_vm0, %v10743_v1 }
 0x1b9   :  { %v7330_v40 = vpop.eup %7329 }
 0x1ba   :  { %v2005_v42 = vpop.f32.mrb[96].mxu0  ;;  %v3524_v45 = vpack.c.bf16 %v7330_v40, %v7328_v37 }
 0x1bb   :  { %v2006_v46 = vadd.f32 %v8251_v38, %v2005_v42  ;;  %v6415_v47 = vpop.f32.mrb[97].mxu0  ;;  %6846 = vmatmul.mubr.msk.bf16.gmra.mrb[128].mxu1 %vm1271_vm1, %v7124_v39 }
 0x1bc   :  { %v2008_v41 = vpop.f32.mrb[98].mxu0  ;;  %v8535_v7 = vmax.bf16 %v3524_v45, %v3523_v21  ;;  %6849 = vmatprep.mubr.msk.bf16.mxu1 %vm8057_vm0, %v10743_v1 }
 0x1bd   :  { %v2009_v24 = vadd.f32 %v8251_v38, %v2008_v41  ;;  %v6416_v52 = vpop.f32.mrb[99].mxu0  ;;  %7335 = vtanh.f32 %v2006_v46 }
 0x1bf   :  { %7337 = vtanh.f32 %v2009_v24  ;;  %6522 = vmatmul.mubr.msk.bf16.gmra.mrb[204].mxu0 %vm1271_vm1, %v7087_v48  ;;  %v7332_v54 = vpop.eup %7331  ;;  %v7093_v48 = vld [vmem:[#allocation3 + $0x1b0] sm:$0xff]  }
 0x1c0   :  { %6525 = vmatprep.mubr.msk.bf16.mxu0 %vm8057_vm0, %v10743_v1 }
 0x1c1   :  { %v7334_v58 = vpop.eup %7333 }
 0x1c2   :  { %v2013_v59 = vpop.f32.mrb[100].mxu0  ;;  %v3525_v60 = vpack.c.bf16 %v7334_v58, %v7332_v54 }
 0x1c3   :  { %v2014_v62 = vadd.f32 %v8251_v38, %v2013_v59  ;;  %v6419_v63 = vpop.f32.mrb[101].mxu0  ;;  %v7126_v59 = vld [vmem:[#allocation3 + $0x428] sm:$0xff]  }
 0x1c4   :  { %v2016_v3 = vpop.f32.mrb[102].mxu0  ;;  %v8545_v11 = vmax.bf16 %v3525_v60, %v3524_v45  ;;  %6850 = vmatmul.mubr.msk.bf16.gmra.mrb[132].mxu1 %vm1271_vm1, %v7126_v59  ;;  %v8583_v63 = vld [vmem:[%s10733_s2] ss:$0 sm:$0xff] }
 0x1c5   :  { %v2017_v6 = vadd.f32 %v8251_v38, %v2016_v3  ;;  %v6420_v10 = vpop.f32.mrb[103].mxu0  ;;  %7339 = vtanh.f32 %v2014_v62  ;;  %v7095_v3 = vld [vmem:[#allocation3 + $0x1b8] sm:$0xff]   ;;  %6853 = vmatprep.mubr.msk.bf16.mxu1 %vm8057_vm0, %v10743_v1 }
 0x1c6   :  { %v3836_v13 = vmax.bf16 %v8545_v11, %v3680_v8 }
 0x1c7   :  { %7341 = vtanh.f32 %v2017_v6  ;;  %6526 = vmatmul.mubr.msk.bf16.gmra.mrb[208].mxu0 %vm1271_vm1, %v7089_v2  ;;  %v7336_v16 = vpop.eup %7335 }
 0x1c8   :  { %4015 = vrot.lane.b32.xlu1 %v3836_v13, %s8058_s11  ;;  %6529 = vmatprep.mubr.msk.bf16.mxu0 %vm8057_vm0, %v10743_v1 }
 0x1c9   :  { %v7338_v18 = vpop.eup %7337 }
 0x1ca   :  { %v2021_v21 = vpop.f32.mrb[104].mxu0  ;;  %v3526_v22 = vpack.c.bf16 %v7338_v18, %v7336_v16  ;;  %v6719_v16 = vpop.f32.mrb[1].mxu1 }
 0x1cb   :  { %v2022_v23 = vadd.f32 %v8251_v38, %v2021_v21  ;;  %v6423_v27 = vpop.f32.mrb[105].mxu0  ;;  %v8592_v18 = vpop.f32.mrb[2].mxu1 }
 0x1cc   :  { %v2024_v8 = vpop.f32.mrb[106].mxu0  ;;  %v8560_v49 = vmax.bf16 %v3526_v22, %v3525_v60 }
 0x1cd   :  { %v2025_v32 = vadd.f32 %v8251_v38, %v2024_v8  ;;  %v6424_v33 = vpop.f32.mrb[107].mxu0  ;;  %7343 = vtanh.f32 %v2022_v23  ;;  %v7128_v23 = vld [vmem:[#allocation3 + $0x430] sm:$0xff]  }
 0x1ce   :  { %6854 = vmatmul.mubr.msk.bf16.gmra.mrb[136].mxu1 %vm1271_vm1, %v7128_v23 }
 0x1cf   :  { %7345 = vtanh.f32 %v2025_v32  ;;  %6530 = vmatmul.mubr.msk.bf16.gmra.mrb[212].mxu0 %vm1271_vm1, %v7091_v28  ;;  %v7340_v37 = vpop.eup %7339  ;;  %6857 = vmatprep.mubr.msk.bf16.mxu1 %vm8057_vm0, %v10743_v1 }
 0x1d0   :  { %6533 = vmatprep.mubr.msk.bf16.mxu0 %vm8057_vm0, %v10743_v1 }
 0x1d1   :  { %v7342_v40 = vpop.eup %7341 }
 0x1d2   :  { %v2029_v42 = vpop.f32.mrb[108].mxu0  ;;  %v3527_v45 = vpack.c.bf16 %v7342_v40, %v7340_v37  ;;  %v7097_v40 = vld [vmem:[#allocation3 + $0x1c0] sm:$0xff]  }
 0x1d3   :  { %v2030_v46 = vadd.f32 %v8251_v38, %v2029_v42  ;;  %v6427_v47 = vpop.f32.mrb[109].mxu0 }
 0x1d4   :  { %v2032_v41 = vpop.f32.mrb[110].mxu0  ;;  %v8570_v24 = vmax.bf16 %v3527_v45, %v3526_v22  ;;  %v6720_v22 = vpop.f32.mrb[3].mxu1 }
 0x1d5   :  { %v2033_v52 = vadd.f32 %v8251_v38, %v2032_v41  ;;  %v6428_v54 = vpop.f32.mrb[111].mxu0  ;;  %7347 = vtanh.f32 %v2030_v46  ;;  %v8596_v28 = vpop.f32.mrb[4].mxu1 }
 0x1d6   :  { %v3838_v57 = vmax.bf16 %v8570_v24, %v8417_v43  ;;  %v6723_v33 = vpop.f32.mrb[5].mxu1 }
 0x1d7   :  { %7349 = vtanh.f32 %v2033_v52  ;;  %6534 = vmatmul.mubr.msk.bf16.gmra.mrb[216].mxu0 %vm1271_vm1, %v7093_v48  ;;  %v7344_v58 = vpop.eup %7343  ;;  %v8600_v42 = vpop.f32.mrb[6].mxu1 }
 0x1d8   :  { %4017 = vrot.lane.b32.xlu1 %v3838_v57, %s8058_s11  ;;  %6537 = vmatprep.mubr.msk.bf16.mxu0 %vm8057_vm0, %v10743_v1  ;;  %v6724_v46 = vpop.f32.mrb[7].mxu1 }
 0x1d9   :  { %v7346_v60 = vpop.eup %7345  ;;  %v8607_v52 = vpop.f32.mrb[8].mxu1 }
 0x1da   :  { %v2037_v62 = vpop.f32.mrb[112].mxu0  ;;  %v3528_v38 = vpack.c.bf16 %v7346_v60, %v7344_v58  ;;  %v6727_v54 = vpop.f32.mrb[9].mxu1  ;;  %v7130_v60 = vld [vmem:[#allocation3 + $0x438] sm:$0xff]  }
 0x1db   :  { %v2038_v43 = vadd.f32 %v8583_v63, %v2037_v62  ;;  %v6431_v2 = vpop.f32.mrb[113].mxu0  ;;  %v8610_v57 = vpop.f32.mrb[10].mxu1  ;;  %6858 = vmatmul.mubr.msk.bf16.gmra.mrb[140].mxu1 %vm1271_vm1, %v7130_v60 }
 0x1dc   :  { %v2040_v6 = vpop.f32.mrb[114].mxu0  ;;  %v6728_v59 = vpop.f32.mrb[11].mxu1  ;;  %6861 = vmatprep.mubr.msk.bf16.mxu1 %vm8057_vm0, %v10743_v1 }
 0x1dd   :  { %v2041_v10 = vadd.f32 %v8583_v63, %v2040_v6  ;;  %v6432_v13 = vpop.f32.mrb[115].mxu0  ;;  %7351 = vtanh.f32 %v2038_v43 }
 0x1de   :  { %v7099_v13 = vld [vmem:[#allocation3 + $0x1c8] sm:$0xff]  }
 0x1df   :  { %7353 = vtanh.f32 %v2041_v10  ;;  %6538 = vmatmul.mubr.msk.bf16.gmra.mrb[220].mxu0 %vm1271_vm1, %v7095_v3  ;;  %v7348_v21 = vpop.eup %7347 }
 0x1e0   :  { %6541 = vmatprep.mubr.msk.bf16.mxu0 %vm8057_vm0, %v10743_v1 }
 0x1e1   :  { %v7350_v27 = vpop.eup %7349 }
 0x1e2   :  { %v2045_v8 = vpop.f32.mrb[116].mxu0  ;;  %v3529_v32 = vpack.c.bf16 %v7350_v27, %v7348_v21 }
 0x1e3   :  { %v2046_v37 = vadd.f32 %v8583_v63, %v2045_v8  ;;  %v6435_v39 = vpop.f32.mrb[117].mxu0 }
 0x1e4   :  { %v2048_v45 = vpop.f32.mrb[118].mxu0  ;;  %v8604_v47 = vmax.bf16 %v3529_v32, %v3528_v38  ;;  %v8614_v38 = vpop.f32.mrb[12].mxu1 }
 0x1e5   :  { %v2049_v48 = vadd.f32 %v8583_v63, %v2048_v45  ;;  %v6436_v41 = vpop.f32.mrb[119].mxu0  ;;  %7355 = vtanh.f32 %v2046_v37  ;;  %v6731_v3 = vpop.f32.mrb[13].mxu1 }
 0x1e6   :  { %v8618_v16 = vpop.f32.mrb[14].mxu1 }
 0x1e7   :  { %7357 = vtanh.f32 %v2049_v48  ;;  %6542 = vmatmul.mubr.msk.bf16.gmra.mrb[224].mxu0 %vm1271_vm1, %v7097_v40  ;;  %v7352_v58 = vpop.eup %7351  ;;  %v6732_v23 = vpop.f32.mrb[15].mxu1  ;;  %v7132_v40 = vld [vmem:[#allocation3 + $0x440] sm:$0xff]  }
 0x1e8   :  { %6545 = vmatprep.mubr.msk.bf16.mxu0 %vm8057_vm0, %v10743_v1  ;;  %v8625_v33 = vpop.f32.mrb[16].mxu1  ;;  %6862 = vmatmul.mubr.msk.bf16.gmra.mrb[144].mxu1 %vm1271_vm1, %v7132_v40 }
 0x1e9   :  { %v7354_v62 = vpop.eup %7353  ;;  %v6735_v37 = vpop.f32.mrb[17].mxu1  ;;  %6865 = vmatprep.mubr.msk.bf16.mxu1 %vm8057_vm0, %v10743_v1 }
 0x1ea   :  { %v2053_v43 = vpop.f32.mrb[120].mxu0  ;;  %v3530_v2 = vpack.c.bf16 %v7354_v62, %v7352_v58  ;;  %v8628_v39 = vpop.f32.mrb[18].mxu1  ;;  %v7101_v62 = vld [vmem:[#allocation3 + $0x1d0] sm:$0xff]  }
 0x1eb   :  { %v2054_v6 = vadd.f32 %v8583_v63, %v2053_v43  ;;  %v6439_v10 = vpop.f32.mrb[121].mxu0 }
 0x1ec   :  { %v2056_v21 = vpop.f32.mrb[122].mxu0  ;;  %v8622_v22 = vmax.bf16 %v3530_v2, %v3529_v32  ;;  %v6736_v32 = vpop.f32.mrb[19].mxu1 }
 0x1ed   :  { %v2057_v27 = vadd.f32 %v8583_v63, %v2056_v21  ;;  %v6440_v8 = vpop.f32.mrb[123].mxu0  ;;  %7359 = vtanh.f32 %v2054_v6  ;;  %v8632_v48 = vpop.f32.mrb[20].mxu1 }
 0x1ee   :  { %v6739_v58 = vpop.f32.mrb[21].mxu1 }
 0x1ef   :  { %7361 = vtanh.f32 %v2057_v27  ;;  %6546 = vmatmul.mubr.msk.bf16.gmra.mrb[228].mxu0 %vm1271_vm1, %v7099_v13  ;;  %v7356_v45 = vpop.eup %7355  ;;  %v8636_v43 = vpop.f32.mrb[22].mxu1 }
 0x1f0   :  { %6549 = vmatprep.mubr.msk.bf16.mxu0 %vm8057_vm0, %v10743_v1  ;;  %v6740_v10 = vpop.f32.mrb[23].mxu1 }
 0x1f1   :  { %v7358_v46 = vpop.eup %7357  ;;  %v8643_v23 = vpop.f32.mrb[24].mxu1 }
 0x1f2   :  { %v2061_v41 = vpop.f32.mrb[124].mxu0  ;;  %v3531_v54 = vpack.c.bf16 %v7358_v46, %v7356_v45  ;;  %v6743_v8 = vpop.f32.mrb[25].mxu1  ;;  %v7134_v45 = vld [vmem:[#allocation3 + $0x448] sm:$0xff]  }
 0x1f3   :  { %v2062_v59 = vadd.f32 %v8583_v63, %v2061_v41  ;;  %v6443_v60 = vpop.f32.mrb[125].mxu0  ;;  %v8648_v37 = vpop.f32.mrb[26].mxu1  ;;  %6866 = vmatmul.mubr.msk.bf16.gmra.mrb[148].mxu1 %vm1271_vm1, %v7134_v45 }
 0x1f4   :  { %v2064_v3 = vpop.f32.mrb[126].mxu0  ;;  %v8640_v6 = vmax.bf16 %v3531_v54, %v3530_v2  ;;  %v6744_v2 = vpop.f32.mrb[27].mxu1  ;;  %6869 = vmatprep.mubr.msk.bf16.mxu1 %vm8057_vm0, %v10743_v1 }
 0x1f5   :  { %v2065_v13 = vadd.f32 %v8583_v63, %v2064_v3  ;;  %v6444_v21 = vpop.f32.mrb[127].mxu0  ;;  %7363 = vtanh.f32 %v2062_v59  ;;  %v8653_v46 = vpop.f32.mrb[28].mxu1 }
 0x1f6   :  { %10838 = vst [vmem:[#allocation11_spill] sm:$0xff] %v8640_v6  ;;  %v3841_v27 = vmax.bf16 %v8640_v6, %v8460_v53  ;;  %v6747_v3 = vpop.f32.mrb[29].mxu1 }
 0x1f7   :  { %7365 = vtanh.f32 %v2065_v13  ;;  %6550 = vmatmul.mubr.msk.bf16.gmra.mrb[232].mxu0 %vm1271_vm1, %v7101_v62  ;;  %v7360_v40 = vpop.eup %7359  ;;  %v7103_v62 = vld [vmem:[#allocation3 + $0x1d8] sm:$0xff]   ;;  %v8661_v21 = vpop.f32.mrb[30].mxu1 }
 0x1f8   :  { %4117 = vrot.lane.b32.xlu1 %v3841_v27, %s8059_s14  ;;  %6553 = vmatprep.mubr.msk.bf16.mxu0 %vm8057_vm0, %v10743_v1  ;;  %v6748_v2 = vpop.f32.mrb[31].mxu1 }
 0x1f9   :  { %v7362_v32 = vpop.eup %7361  ;;  %v8666_v45 = vpop.f32.mrb[32].mxu1  ;;  %v7105_v2 = vld [vmem:[#allocation3 + $0x1e0] sm:$0xff]  }
 0x1fa   :  { %v2069_v41 = vpop.f32.mrb[128].mxu0  ;;  %v3532_v58 = vpack.c.bf16 %v7362_v32, %v7360_v40  ;;  %v6751_v32 = vpop.f32.mrb[33].mxu1 }
 0x1fb   :  { %v2070_v59 = vadd.f32 %v8583_v63, %v2069_v41  ;;  %v6447_v60 = vpop.f32.mrb[129].mxu0  ;;  %v7136_v41 = vld [vmem:[#allocation3 + $0x450] sm:$0xff]  }
 0x1fc   :  { %v2072_v10 = vpop.f32.mrb[130].mxu0  ;;  %v8659_v13 = vmax.bf16 %v3532_v58, %v3531_v54  ;;  %v8672_v54 = vpop.f32.mrb[34].mxu1  ;;  %6870 = vmatmul.mubr.msk.bf16.gmra.mrb[152].mxu1 %vm1271_vm1, %v7136_v41 }
 0x1fd   :  { %v2073_v27 = vadd.f32 %v8583_v63, %v2072_v10  ;;  %v6448_v8 = vpop.f32.mrb[131].mxu0  ;;  %7367 = vtanh.f32 %v2070_v59  ;;  %v6752_v3 = vpop.f32.mrb[35].mxu1  ;;  %6873 = vmatprep.mubr.msk.bf16.mxu1 %vm8057_vm0, %v10743_v1 }
 0x1fe   :  { %v3842_v40 = vmax.bf16 %v8659_v13, %v8470_v9  ;;  %v8674_v8 = vpop.f32.mrb[36].mxu1 }
 0x1ff   :  { %7369 = vtanh.f32 %v2073_v27  ;;  %6554 = vmatmul.mubr.msk.bf16.gmra.mrb[236].mxu0 %vm1271_vm1, %v7103_v62  ;;  %v7364_v60 = vpop.eup %7363  ;;  %v6755_v32 = vpop.f32.mrb[37].mxu1 }
 0x200   :  { %4225 = vrot.lane.b32.xlu1 %v3842_v40, %s8060_s15  ;;  %6557 = vmatprep.mubr.msk.bf16.mxu0 %vm8057_vm0, %v10743_v1  ;;  %v8682_v55 = vpop.f32.mrb[38].mxu1 }
 0x201   :  { %v7366_v59 = vpop.eup %7365 }
 0x202   :  { %v2077_v10 = vpop.f32.mrb[132].mxu0  ;;  %v3533_v9 = vpack.c.bf16 %v7366_v59, %v7364_v60  ;;  %v6756_v59 = vpop.f32.mrb[39].mxu1 }
 0x203   :  { %v2078_v62 = vadd.f32 %v8583_v63, %v2077_v10  ;;  %v6451_v27 = vpop.f32.mrb[133].mxu0  ;;  %v8687_v10 = vpop.f32.mrb[40].mxu1 }
 0x204   :  { %v2080_v40 = vpop.f32.mrb[134].mxu0  ;;  %v8680_v25 = vmax.bf16 %v3533_v9, %v3532_v58  ;;  %v6759_v27 = vpop.f32.mrb[41].mxu1 }
 0x205   :  { %v2081_v3 = vadd.f32 %v8583_v63, %v2080_v40  ;;  %v6452_v60 = vpop.f32.mrb[135].mxu0  ;;  %7371 = vtanh.f32 %v2078_v62  ;;  %v8693_v58 = vpop.f32.mrb[42].mxu1  ;;  %v7138_v40 = vld [vmem:[#allocation3 + $0x458] sm:$0xff]  }
 0x206   :  { %10839 = vst [vmem:[#allocation12_spill] sm:$0xff] %v8680_v25  ;;  %v3843_v41 = vmax.bf16 %v8680_v25, %v8485_v30  ;;  %v6760_v62 = vpop.f32.mrb[43].mxu1  ;;  %6874 = vmatmul.mubr.msk.bf16.gmra.mrb[156].mxu1 %vm1271_vm1, %v7138_v40  ;;  %v7113_v25 = vld [vmem:[#allocation3 + $0x200] sm:$0xff]  }
 0x207   :  { %7373 = vtanh.f32 %v2081_v3  ;;  %6558 = vmatmul.mubr.msk.bf16.gmra.mrb[240].mxu0 %vm1271_vm1, %v7105_v2  ;;  %v7368_v32 = vpop.eup %7367  ;;  %v7107_v2 = vld [vmem:[#allocation3 + $0x1e8] sm:$0xff]   ;;  %v8697_v27 = vpop.f32.mrb[44].mxu1  ;;  %6877 = vmatprep.mubr.msk.bf16.mxu1 %vm8057_vm0, %v10743_v1 }
 0x208   :  { %4119 = vrot.lane.b32.xlu1 %v3843_v41, %s8059_s14  ;;  %6561 = vmatprep.mubr.msk.bf16.mxu0 %vm8057_vm0, %v10743_v1  ;;  %v6763_v12 = vpop.f32.mrb[45].mxu1 }
 0x209   :  { %v7370_v60 = vpop.eup %7369  ;;  %v8704_v17 = vpop.f32.mrb[46].mxu1 }
 0x20a   :  { %v2085_v59 = vpop.f32.mrb[136].mxu0  ;;  %v3534_v61 = vpack.c.bf16 %v7370_v60, %v7368_v32  ;;  %v6764_v40 = vpop.f32.mrb[47].mxu1  ;;  %v7140_v60 = vld [vmem:[#allocation3 + $0x460] sm:$0xff]  }
 0x20b   :  { %v2086_v3 = vadd.f32 %v8583_v63, %v2085_v59  ;;  %v6455_v26 = vpop.f32.mrb[137].mxu0  ;;  %v8713_v12 = vpop.f32.mrb[48].mxu1 }
 0x20c   :  { %v2088_v41 = vpop.f32.mrb[138].mxu0  ;;  %v8701_v36 = vmax.bf16 %v3534_v61, %v3533_v9  ;;  %v2614_v26 = vadd.f32 %v8583_v63, %v8589_v14  ;;  %v2617_v9 = vadd.f32 %v8583_v63, %v8592_v18  ;;  %v6767_v14 = vpop.f32.mrb[49].mxu1 }
 0x20d   :  { %v2089_v0 = vadd.f32 %v8583_v63, %v2088_v41  ;;  %v6456_v62 = vpop.f32.mrb[139].mxu0  ;;  %7375 = vtanh.f32 %v2086_v3 }
 0x20e   :  { %v3844_v32 = vmax.bf16 %v8701_v36, %v8495_v51  ;;  %v2622_v51 = vadd.f32 %v8583_v63, %v8596_v28  ;;  %6878 = vmatmul.mubr.msk.bf16.gmra.mrb[160].mxu1 %vm1271_vm1, %v7140_v60  ;;  %v10840_v28 = vmov 0.0  }
 0x20f   :  { %7377 = vtanh.f32 %v2089_v0  ;;  %6562 = vmatmul.mubr.msk.bf16.gmra.mrb[244].mxu0 %vm1271_vm1, %v7107_v2  ;;  %v7372_v59 = vpop.eup %7371  ;;  %v2625_v0 = vadd.f32 %v8583_v63, %v8600_v42  ;;  %v8722_v2 = vpop.f32.mrb[50].mxu1  ;;  %6881 = vmatprep.mubr.msk.bf16.mxu1 %vm8057_vm0, %v10840_v28 }
 0x210   :  { %4227 = vrot.lane.b32.xlu1 %v3844_v32, %s8060_s15  ;;  %6565 = vmatprep.mubr.msk.bf16.mxu0 %vm8057_vm0, %v10743_v1  ;;  %7379 = vtanh.f32 %v2614_v26  ;;  %v6768_v62 = vpop.f32.mrb[51].mxu1  ;;  %v7109_v1 = vld [vmem:[#allocation3 + $0x1f0] sm:$0xff]  }
 0x211   :  { %v7374_v3 = vpop.eup %7373  ;;  %7381 = vtanh.f32 %v2617_v9  ;;  %v2717_v34 = vpop.f32.mrb[52].mxu1 }
 0x212   :  { %v2093_v18 = vpop.f32.mrb[140].mxu0  ;;  %v3535_v41 = vpack.c.bf16 %v7374_v3, %v7372_v59  ;;  %7383 = vtanh.f32 %v2622_v51  ;;  %v2718_v42 = vadd.f32 %v8583_v63, %v2717_v34  ;;  %v6771_v59 = vpop.f32.mrb[53].mxu1 }
 0x213   :  { %v2094_v32 = vadd.f32 %v8583_v63, %v2093_v18  ;;  %v6459_v40 = vpop.f32.mrb[141].mxu0  ;;  %7385 = vtanh.f32 %v2625_v0  ;;  %v2720_v60 = vpop.f32.mrb[54].mxu1 }
 0x214   :  { %v2096_v14 = vpop.f32.mrb[142].mxu0  ;;  %v8728_v50 = vmax.bf16 %v3535_v41, %v3534_v61  ;;  %v2721_v18 = vadd.f32 %v8583_v63, %v2720_v60  ;;  %v6772_v62 = vpop.f32.mrb[55].mxu1 }
 0x215   :  { %v2097_v26 = vadd.f32 %v8583_v63, %v2096_v14  ;;  %v6460_v3 = vpop.f32.mrb[143].mxu0  ;;  %7387 = vtanh.f32 %v2094_v32  ;;  %v2725_v61 = vpop.f32.mrb[56].mxu1  ;;  %v7142_v32 = vld [vmem:[#allocation3 + $0x468] sm:$0xff]   ;;  %v2630_v14 = vadd.f32 %v8583_v63, %v8607_v52 }
 0x216   :  { %10841 = vst [vmem:[#allocation13_spill] sm:$0xff] %v8728_v50  ;;  %v3845_v9 = vmax.bf16 %v8728_v50, %v8510_v4  ;;  %v2726_v34 = vadd.f32 %v8583_v63, %v2725_v61  ;;  %v6775_v0 = vpop.f32.mrb[57].mxu1  ;;  %6882 = vmatmul.mubr.msk.bf16.gmra.mrb[164].mxu1 %vm1271_vm1, %v7142_v32 }
 0x217   :  { %7389 = vtanh.f32 %v2097_v26  ;;  %6566 = vmatmul.mubr.msk.bf16.gmra.mrb[248].mxu0 %vm1271_vm1, %v7109_v1  ;;  %v7376_v51 = vpop.eup %7375  ;;  %v2728_v59 = vpop.f32.mrb[58].mxu1  ;;  %6885 = vmatprep.mubr.msk.bf16.mxu1 %vm8057_vm0, %v10840_v28 }
 0x218   :  { %4121 = vrot.lane.b32.xlu1 %v3845_v9, %s8059_s14  ;;  %6569 = vmatprep.mubr.msk.bf16.mxu0 %vm8057_vm0, %v10840_v28  ;;  %7391 = vtanh.f32 %v2718_v42  ;;  %v2729_v3 = vadd.f32 %v8583_v63, %v2728_v59  ;;  %v7111_v9 = vld [vmem:[#allocation3 + $0x1f8] sm:$0xff]   ;;  %v6776_v62 = vpop.f32.mrb[59].mxu1 }
 0x219   :  { %v7378_v40 = vpop.eup %7377  ;;  %7393 = vtanh.f32 %v2721_v18  ;;  %v2633_v18 = vadd.f32 %v8583_v63, %v8610_v57 }
 0x21a   :  { %v2101_v26 = vpop.f32.mrb[144].mxu0  ;;  %v3536_v1 = vpack.c.bf16 %v7378_v40, %v7376_v51  ;;  %7395 = vtanh.f32 %v2726_v34  ;;  %v7380_v61 = vpop.eup %7379 }
 0x21b   :  { %v2102_v60 = vadd.f32 %v8583_v63, %v2101_v26  ;;  %v6463_v42 = vpop.f32.mrb[145].mxu0  ;;  %7397 = vtanh.f32 %v2729_v3  ;;  %v7382_v51 = vpop.eup %7381  ;;  %v7144_v3 = vld [vmem:[#allocation3 + $0x470] sm:$0xff]  }
 0x21c   :  { %v2104_v0 = vpop.f32.mrb[146].mxu0  ;;  %v8747_v52 = vmax.bf16 %v3536_v1, %v3535_v41  ;;  %7399 = vtanh.f32 %v2630_v14  ;;  %v2733_v40 = vpop.f32.mrb[60].mxu1  ;;  %v2638_v14 = vadd.f32 %v8583_v63, %v8614_v38 }
 0x21d   :  { %v2105_v34 = vadd.f32 %v8583_v63, %v2104_v0  ;;  %v6464_v32 = vpop.f32.mrb[147].mxu0  ;;  %v7384_v59 = vpop.eup %7383  ;;  %7401 = vtanh.f32 %v2102_v60  ;;  %v2734_v41 = vadd.f32 %v8583_v63, %v2733_v40 }
 0x21e   :  { %v3846_v26 = vmax.bf16 %v8747_v52, %v8520_v29  ;;  %v6779_v42 = vpop.f32.mrb[61].mxu1  ;;  %v7386_v62 = vpop.eup %7385  ;;  %6886 = vmatmul.mubr.msk.bf16.gmra.mrb[168].mxu1 %vm1271_vm1, %v7144_v3 }
 0x21f   :  { %7403 = vtanh.f32 %v2105_v34  ;;  %6570 = vmatmul.mubr.msk.bf16.gmra.mrb[252].mxu0 %vm1271_vm1, %v7111_v9  ;;  %v2736_v57 = vpop.f32.mrb[62].mxu1  ;;  %v7388_v50 = vpop.eup %7387  ;;  %6889 = vmatprep.mubr.msk.bf16.mxu1 %vm8057_vm0, %v10840_v28  ;;  %v8775_v6 = vpack.c.bf16 %v7386_v62, %v7384_v59 }
 0x220   :  { %4229 = vrot.lane.b32.xlu1 %v3846_v26, %s8060_s15  ;;  %6573 = vmatprep.mubr.msk.bf16.mxu0 %vm8057_vm0, %v10840_v28  ;;  %7405 = vtanh.f32 %v2633_v18  ;;  %v2737_v29 = vadd.f32 %v8583_v63, %v2736_v57  ;;  %v6780_v60 = vpop.f32.mrb[63].mxu1 }
 0x221   :  { %v7390_v0 = vpop.eup %7389  ;;  %7407 = vtanh.f32 %v2734_v41  ;;  %v2641_v41 = vadd.f32 %v8583_v63, %v8618_v16  ;;  %10842 = vst [vmem:[#allocation14_spill] sm:$0xff] %v8775_v6 }
 0x222   :  { %v7392_v9 = vpop.eup %7391  ;;  %v2109_v34 = vpop.f32.mrb[148].mxu0  ;;  %v3537_v32 = vpack.c.bf16 %v7390_v0, %v7388_v50  ;;  %7409 = vtanh.f32 %v2737_v29 }
 0x223   :  { %v7394_v40 = vpop.eup %7393  ;;  %v2110_v26 = vadd.f32 %v8583_v63, %v2109_v34  ;;  %v6467_v42 = vpop.f32.mrb[149].mxu0  ;;  %7411 = vtanh.f32 %v2638_v14 }
 0x224   :  { %v7396_v38 = vpop.eup %7395  ;;  %v2112_v18 = vpop.f32.mrb[150].mxu0  ;;  %v8766_v57 = vmax.bf16 %v3537_v32, %v3536_v1  ;;  %v8773_v42 = vpack.c.bf16 %v7382_v51, %v7380_v61  ;;  %v8777_v1 = vpack.c.bf16 %v7394_v40, %v7392_v9  ;;  %v7146_v51 = vld [vmem:[#allocation3 + $0x478] sm:$0xff]  }
 0x225   :  { %7413 = vtanh.f32 %v2110_v26  ;;  %v2113_v50 = vadd.f32 %v8583_v63, %v2112_v18  ;;  %v6468_v3 = vpop.f32.mrb[151].mxu0  ;;  %v2741_v29 = vpop.f32.mrb[64].mxu1 }
 0x226   :  { %v7398_v60 = vpop.eup %7397  ;;  %v3847_v0 = vmax.bf16 %v8766_v57, %v8535_v7  ;;  %v6783_v34 = vpop.f32.mrb[65].mxu1  ;;  %10843 = vst [vmem:[#allocation15_spill] sm:$0xff] %v8777_v1  ;;  %v2742_v16 = vadd.f32 %v8583_v63, %v2741_v29  ;;  %6890 = vmatmul.mubr.msk.bf16.gmra.mrb[172].mxu1 %vm1271_vm1, %v7146_v51  ;;  %v10871_v1 = vmax.bf16 %v8304_v31, %v8292_v19  ;;  %v7183_v31 = vld [vmem:[#allocation3 + $0x500] sm:$0xff]  }
 0x227   :  { %v7400_v14 = vpop.eup %7399  ;;  %7415 = vtanh.f32 %v2113_v50  ;;  %6574 = vmatmul.mubr.msk.bf16.gmra.mrb[0].mxu0 %vm1271_vm1, %v7113_v25  ;;  %v2744_v26 = vpop.f32.mrb[66].mxu1  ;;  %v8781_v18 = vpack.c.bf16 %v7398_v60, %v7396_v38  ;;  %v7115_v60 = vld [vmem:[#allocation3 + $0x208] sm:$0xff]   ;;  %6893 = vmatprep.mubr.msk.bf16.mxu1 %vm8057_vm0, %v10840_v28 }
 0x228   :  { %v7402_v3 = vpop.eup %7401  ;;  %4123 = vrot.lane.b32.xlu1 %v3847_v0, %s8059_s14  ;;  %6577 = vmatprep.mubr.msk.bf16.mxu0 %vm8057_vm0, %v10840_v28  ;;  %7417 = vtanh.f32 %v2641_v41  ;;  %v2745_v61 = vadd.f32 %v8583_v63, %v2744_v26  ;;  %v6784_v59 = vpop.f32.mrb[67].mxu1 }
 0x229   :  { %10844 = vst [vmem:[#allocation16_spill] sm:$0xff] %v8781_v18  ;;  %v7404_v62 = vpop.eup %7403  ;;  %7419 = vtanh.f32 %v2742_v16 }
 0x22a   :  { %v7406_v9 = vpop.eup %7405  ;;  %v2117_v25 = vpop.f32.mrb[152].mxu0  ;;  %v3538_v40 = vpack.c.bf16 %v7404_v62, %v7402_v3  ;;  %7421 = vtanh.f32 %v2745_v61  ;;  %v2646_v3 = vadd.f32 %v8583_v63, %v8625_v33  ;;  %v2649_v61 = vadd.f32 %v8583_v63, %v8628_v39 }
 0x22b   :  { %v7408_v38 = vpop.eup %7407  ;;  %v2118_v50 = vadd.f32 %v8583_v63, %v2117_v25  ;;  %v6471_v29 = vpop.f32.mrb[153].mxu0  ;;  %v3604_v62 = vpack.c.bf16 %v7406_v9, %v7400_v14  ;;  %v2657_v33 = vadd.f32 %v8583_v63, %v8636_v43 }
 0x22c   :  { %v7410_v41 = vpop.eup %7409  ;;  %v2120_v0 = vpop.f32.mrb[154].mxu0  ;;  %v8791_v34 = vmax.bf16 %v3538_v40, %v3537_v32  ;;  %v2654_v32 = vadd.f32 %v8583_v63, %v8632_v48 }
 0x22d   :  { %v2121_v16 = vadd.f32 %v8583_v63, %v2120_v0  ;;  %v6472_v26 = vpop.f32.mrb[155].mxu0  ;;  %v7412_v51 = vpop.eup %7411  ;;  %7423 = vtanh.f32 %v2118_v50  ;;  %v3617_v25 = vpack.c.bf16 %v7410_v41, %v7408_v38  ;;  %v7148_v50 = vld [vmem:[#allocation3 + $0x480] sm:$0xff]  }
 0x22e   :  { %v3848_v59 = vmax.bf16 %v8791_v34, %v8545_v11  ;;  %v2749_v39 = vpop.f32.mrb[68].mxu1  ;;  %v8809_v11 = vmax.bf16 %v3604_v62, %v8775_v6  ;;  %6894 = vmatmul.mubr.msk.bf16.gmra.mrb[176].mxu1 %vm1271_vm1, %v7148_v50  ;;  %v3829_v6 = vmax.bf16 %v8460_v53, %v10871_v1 }
 0x22f   :  { %v7414_v29 = vpop.eup %7413  ;;  %7425 = vtanh.f32 %v2121_v16  ;;  %6578 = vmatmul.mubr.msk.bf16.gmra.mrb[4].mxu0 %vm1271_vm1, %v7115_v60  ;;  %v8812_v14 = vmax.bf16 %v3617_v25, %v8781_v18  ;;  %v2750_v48 = vadd.f32 %v8583_v63, %v2749_v39  ;;  %v6787_v38 = vpop.f32.mrb[69].mxu1  ;;  %6897 = vmatprep.mubr.msk.bf16.mxu1 %vm8057_vm0, %v10840_v28 }
 0x230   :  { %4231 = vrot.lane.b32.xlu1 %v3848_v59, %s8060_s15  ;;  %6581 = vmatprep.mubr.msk.bf16.mxu0 %vm8057_vm0, %v10840_v28  ;;  %10845 = vst [vmem:[#allocation17_spill] sm:$0xff] %v8809_v11  ;;  %7427 = vtanh.f32 %v2646_v3  ;;  %v7117_v59 = vld [vmem:[#allocation3 + $0x210] sm:$0xff]   ;;  %v2752_v11 = vpop.f32.mrb[70].mxu1 }
 0x231   :  { %10846 = vst [vmem:[#allocation18_spill] sm:$0xff] %v8812_v14  ;;  %v7416_v9 = vpop.eup %7415  ;;  %7429 = vtanh.f32 %v2649_v61  ;;  %v6788_v38 = vpop.f32.mrb[71].mxu1  ;;  %v2753_v50 = vadd.f32 %v8583_v63, %v2752_v11 }
 0x232   :  { %v7418_v60 = vpop.eup %7417  ;;  %v2125_v41 = vpop.f32.mrb[156].mxu0  ;;  %v3539_v0 = vpack.c.bf16 %v7416_v9, %v7414_v29  ;;  %7431 = vtanh.f32 %v2654_v32 }
 0x233   :  { %v7420_v43 = vpop.eup %7419  ;;  %v2126_v16 = vadd.f32 %v8583_v63, %v2125_v41  ;;  %v6475_v26 = vpop.f32.mrb[157].mxu0  ;;  %7433 = vtanh.f32 %v2657_v33 }
 0x234   :  { %v7422_v3 = vpop.eup %7421  ;;  %v2128_v14 = vpop.f32.mrb[158].mxu0  ;;  %v8819_v39 = vmax.bf16 %v3539_v0, %v3538_v40  ;;  %7435 = vtanh.f32 %v2750_v48  ;;  %v3605_v26 = vpack.c.bf16 %v7418_v60, %v7412_v51 }
 0x235   :  { %v2129_v61 = vadd.f32 %v8583_v63, %v2128_v14  ;;  %v6476_v29 = vpop.f32.mrb[159].mxu0  ;;  %v2757_v9 = vpop.f32.mrb[72].mxu1  ;;  %7437 = vtanh.f32 %v2126_v16  ;;  %v3618_v18 = vpack.c.bf16 %v7422_v3, %v7420_v43  ;;  %v7150_v14 = vld [vmem:[#allocation3 + $0x488] sm:$0xff]   ;;  %v2662_v43 = vadd.f32 %v8583_v63, %v8643_v23 }
 0x236   :  { %v3849_v32 = vmax.bf16 %v8819_v39, %v8560_v49  ;;  %v6791_v41 = vpop.f32.mrb[73].mxu1  ;;  %v2758_v40 = vadd.f32 %v8583_v63, %v2757_v9  ;;  %v8831_v16 = vmax.bf16 %v3605_v26, %v3604_v62  ;;  %6898 = vmatmul.mubr.msk.bf16.gmra.mrb[180].mxu1 %vm1271_vm1, %v7150_v14 }
 0x237   :  { %7439 = vtanh.f32 %v2129_v61  ;;  %6582 = vmatmul.mubr.msk.bf16.gmra.mrb[8].mxu0 %vm1271_vm1, %v7117_v59  ;;  %v2760_v33 = vpop.f32.mrb[74].mxu1  ;;  %v7424_v38 = vpop.eup %7423  ;;  %v8833_v51 = vmax.bf16 %v3618_v18, %v3617_v25  ;;  %v7119_v18 = vld [vmem:[#allocation3 + $0x218] sm:$0xff]   ;;  %6901 = vmatprep.mubr.msk.bf16.mxu1 %vm8057_vm0, %v10840_v28 }
 0x238   :  { %4125 = vrot.lane.b32.xlu1 %v3849_v32, %s8059_s14  ;;  %6585 = vmatprep.mubr.msk.bf16.mxu0 %vm8057_vm0, %v10840_v28  ;;  %7441 = vtanh.f32 %v2753_v50  ;;  %v2761_v11 = vadd.f32 %v8583_v63, %v2760_v33  ;;  %v6792_v48 = vpop.f32.mrb[75].mxu1  ;;  %10847 = vst [vmem:[#allocation19_spill] sm:$0xff] %v8831_v16  ;;  %v2665_v32 = vadd.f32 %v8583_v63, %v8648_v37 }
 0x239   :  { %10848 = vst [vmem:[#allocation20_spill] sm:$0xff] %v8833_v51  ;;  %v7426_v60 = vpop.eup %7425  ;;  %7443 = vtanh.f32 %v2758_v40  ;;  %v2765_v33 = vpop.f32.mrb[76].mxu1 }
 0x23a   :  { %v2133_v59 = vpop.f32.mrb[160].mxu0  ;;  %v3540_v3 = vpack.c.bf16 %v7426_v60, %v7424_v38  ;;  %7445 = vtanh.f32 %v2761_v11  ;;  %v8840_v29 = vpop.eup %7427 }
 0x23b   :  { %v2134_v62 = vadd.f32 %v8583_v63, %v2133_v59  ;;  %v6479_v50 = vpop.f32.mrb[161].mxu0  ;;  %v8845_v25 = vpop.eup %7429  ;;  %7447 = vtanh.f32 %v2662_v43  ;;  %v2670_v43 = vadd.f32 %v8583_v63, %v8653_v46  ;;  %v7152_v59 = vld [vmem:[#allocation3 + $0x490] sm:$0xff]  }
 0x23c   :  { %v2136_v23 = vpop.f32.mrb[162].mxu0  ;;  %v8847_v9 = vmax.bf16 %v3540_v3, %v3539_v0  ;;  %v7432_v41 = vpop.eup %7431  ;;  %v2766_v0 = vadd.f32 %v8583_v63, %v2765_v33  ;;  %v7121_v33 = vld [vmem:[#allocation3 + $0x220] sm:$0xff]  }
 0x23d   :  { %v2137_v26 = vadd.f32 %v8583_v63, %v2136_v23  ;;  %v6480_v40 = vpop.f32.mrb[163].mxu0  ;;  %v7434_v38 = vpop.eup %7433  ;;  %7449 = vtanh.f32 %v2134_v62 }
 0x23e   :  { %v3850_v11 = vmax.bf16 %v8847_v9, %v8570_v24  ;;  %v6795_v14 = vpop.f32.mrb[77].mxu1  ;;  %v7436_v48 = vpop.eup %7435  ;;  %6902 = vmatmul.mubr.msk.bf16.gmra.mrb[184].mxu1 %vm1271_vm1, %v7152_v59  ;;  %v3606_v59 = vpack.c.bf16 %v8845_v25, %v8840_v29 }
 0x23f   :  { %7451 = vtanh.f32 %v2137_v26  ;;  %6586 = vmatmul.mubr.msk.bf16.gmra.mrb[12].mxu0 %vm1271_vm1, %v7119_v18  ;;  %v2768_v60 = vpop.f32.mrb[78].mxu1  ;;  %v8856_v37 = vpop.eup %7437  ;;  %6905 = vmatprep.mubr.msk.bf16.mxu1 %vm8057_vm0, %v10840_v28  ;;  %v2673_v14 = vadd.f32 %v8583_v63, %v8661_v21 }
 0x240   :  { %4233 = vrot.lane.b32.xlu1 %v3850_v11, %s8060_s15  ;;  %6589 = vmatprep.mubr.msk.bf16.mxu0 %vm8057_vm0, %v10840_v28  ;;  %7453 = vtanh.f32 %v2665_v32  ;;  %v2769_v24 = vadd.f32 %v8583_v63, %v2768_v60  ;;  %v6796_v3 = vpop.f32.mrb[79].mxu1 }
 0x241   :  { %v7440_v62 = vpop.eup %7439  ;;  %7455 = vtanh.f32 %v2766_v0  ;;  %v3607_v3 = vpack.c.bf16 %v7434_v38, %v7432_v41  ;;  %v2678_v38 = vadd.f32 %v8583_v63, %v8666_v45  ;;  %v2681_v45 = vadd.f32 %v8583_v63, %v8672_v54  ;;  %v7156_v54 = vld [vmem:[%s10734_s3] sm:$0xff]  }
 0x242   :  { %v7442_v50 = vpop.eup %7441  ;;  %v2141_v18 = vpop.f32.mrb[164].mxu0  ;;  %7457 = vtanh.f32 %v2769_v24  ;;  %v3541_v23 = vpack.c.bf16 %v7440_v62, %v8856_v37 }
 0x243   :  { %v7444_v26 = vpop.eup %7443  ;;  %v2142_v40 = vadd.f32 %v8583_v63, %v2141_v18  ;;  %v6483_v32 = vpop.f32.mrb[165].mxu0  ;;  %7459 = vtanh.f32 %v2670_v43  ;;  %v3619_v18 = vpack.c.bf16 %v7442_v50, %v7436_v48  ;;  %v8879_v29 = vmax.bf16 %v3607_v3, %v3606_v59 }
 0x244   :  { %v7446_v46 = vpop.eup %7445  ;;  %v2144_v11 = vpop.f32.mrb[166].mxu0 }
 0x245   :  { %7461 = vtanh.f32 %v2142_v40  ;;  %v2145_v0 = vadd.f32 %v8583_v63, %v2144_v11  ;;  %v6484_v60 = vpop.f32.mrb[167].mxu0  ;;  %v2773_v24 = vpop.f32.mrb[80].mxu1  ;;  %v3620_v62 = vpack.c.bf16 %v7446_v46, %v7444_v26  ;;  %v7154_v11 = vld [vmem:[#allocation3 + $0x498] sm:$0xff]   ;;  %10849 = vst [vmem:[#allocation21_spill] sm:$0xff] %v8879_v29 }
 0x246   :  { %v6799_v37 = vpop.f32.mrb[81].mxu1  ;;  %v7448_v32 = vpop.eup %7447  ;;  %v2774_v43 = vadd.f32 %v8583_v63, %v2773_v24  ;;  %6906 = vmatmul.mubr.msk.bf16.gmra.mrb[188].mxu1 %vm1271_vm1, %v7154_v11 }
 0x247   :  { %7463 = vtanh.f32 %v2145_v0  ;;  %6590 = vmatmul.mubr.msk.bf16.gmra.mrb[16].mxu0 %vm1271_vm1, %v7121_v33  ;;  %v2776_v61 = vpop.f32.mrb[82].mxu1  ;;  %v7450_v21 = vpop.eup %7449  ;;  %v8881_v25 = vmax.bf16 %v3620_v62, %v3619_v18  ;;  %6909 = vmatprep.mubr.msk.bf16.mxu1 %vm8057_vm0, %v10840_v28 }
 0x248   :  { %6593 = vmatprep.mubr.msk.bf16.mxu0 %vm8057_vm0, %v10840_v28  ;;  %7465 = vtanh.f32 %v2673_v14  ;;  %v2777_v40 = vadd.f32 %v8583_v63, %v2776_v61  ;;  %v6800_v60 = vpop.f32.mrb[83].mxu1  ;;  %v7123_v14 = vld [vmem:[#allocation3 + $0x228] sm:$0xff]  }
 0x249   :  { %10850 = vst [vmem:[#allocation22_spill] sm:$0xff] %v8881_v25  ;;  %v7452_v41 = vpop.eup %7451  ;;  %7467 = vtanh.f32 %v2774_v43  ;;  %v2781_v43 = vpop.f32.mrb[84].mxu1 }
 0x24a   :  { %v7454_v48 = vpop.eup %7453  ;;  %v2149_v50 = vpop.f32.mrb[168].mxu0  ;;  %v3542_v26 = vpack.c.bf16 %v7452_v41, %v7450_v21  ;;  %7469 = vtanh.f32 %v2777_v40 }
 0x24b   :  { %v7456_v33 = vpop.eup %7455  ;;  %v2150_v61 = vadd.f32 %v8583_v63, %v2149_v50  ;;  %v6487_v46 = vpop.f32.mrb[169].mxu0  ;;  %7471 = vtanh.f32 %v2678_v38  ;;  %v3608_v11 = vpack.c.bf16 %v7454_v48, %v7448_v32  ;;  %v2782_v50 = vadd.f32 %v8583_v63, %v2781_v43  ;;  %v7157_v38 = vld [vmem:[#allocation3 + $0x4a0] sm:$0xff]   ;;  %v7125_v43 = vld [vmem:[#allocation3 + $0x230] sm:$0xff]  }
 0x24c   :  { %v7458_v0 = vpop.eup %7457  ;;  %v2152_v24 = vpop.f32.mrb[170].mxu0  ;;  %v8891_v37 = vmax.bf16 %v3542_v26, %v3541_v23  ;;  %v10753_v23 = vmov 0  }
 0x24d   :  { %v2153_v59 = vadd.f32 %v8583_v63, %v2152_v24  ;;  %v6488_v18 = vpop.f32.mrb[171].mxu0  ;;  %v7460_v21 = vpop.eup %7459  ;;  %7473 = vtanh.f32 %v2150_v61  ;;  %v3621_v60 = vpack.c.bf16 %v7458_v0, %v7456_v33  ;;  %4865 = vmatprep.subr.bf16.mxu1 %v10753_v23  ;;  %v8903_v33 = vmax.bf16 %v3608_v11, %v3607_v3  ;;  %7017 = vset.pattern.permute.xlu0 %v10753_v23 }
 0x24e   :  { %v6803_v40 = vpop.f32.mrb[85].mxu1  ;;  %v2686_v0 = vadd.f32 %v8583_v63, %v8674_v8  ;;  %4866 = vmatpush1.bf16.msra.mxu1 %v7156_v54 }
 0x24f   :  { %v7462_v41 = vpop.eup %7461  ;;  %7475 = vtanh.f32 %v2153_v59  ;;  %6594 = vmatmul.mubr.msk.bf16.gmra.mrb[20].mxu0 %vm1271_vm1, %v7123_v14  ;;  %v2784_v46 = vpop.f32.mrb[86].mxu1  ;;  %10851 = vst [vmem:[#allocation23_spill] sm:$0xff] %v8903_v33  ;;  %v8905_v61 = vmax.bf16 %v3621_v60, %v3620_v62  ;;  %6910 = vmatmul.mubr.msk.bf16.gmra.mrb[192].mxu1 %vm1271_vm1, %v7157_v38  ;;  %v7179_v33 = vld [vmem:[#allocation3 + $0x4f0] sm:$0xff]  }
 0x250   :  { %6597 = vmatprep.mubr.msk.bf16.mxu0 %vm8057_vm0, %v10840_v28  ;;  %7477 = vtanh.f32 %v2681_v45  ;;  %v2785_v32 = vadd.f32 %v8583_v63, %v2784_v46  ;;  %v6804_v48 = vpop.f32.mrb[87].mxu1  ;;  %4867 = vmatprep.subr.bf16.mxu1 %v10753_v23 }
 0x251   :  { %10852 = vst [vmem:[#allocation24_spill] sm:$0xff] %v8905_v61  ;;  %v7464_v14 = vpop.eup %7463  ;;  %7479 = vtanh.f32 %v2782_v50  ;;  %6913 = vmatprep.mubr.msk.bf16.mxu1 %vm8057_vm0, %v10840_v28 }
 0x252   :  { %v7466_v24 = vpop.eup %7465  ;;  %v2157_v45 = vpop.f32.mrb[172].mxu0  ;;  %v3543_v59 = vpack.c.bf16 %v7464_v14, %v7462_v41  ;;  %7481 = vtanh.f32 %v2785_v32  ;;  %v8920_v41 = vld [vmem:[%s10733_s2] ss:$0 sm:$0xff] }
 0x253   :  { %v7468_v3 = vpop.eup %7467  ;;  %v2158_v62 = vadd.f32 %v8583_v63, %v2157_v45  ;;  %v6491_v18 = vpop.f32.mrb[173].mxu0  ;;  %v2689_v46 = vadd.f32 %v8920_v41, %v8682_v55  ;;  %7483 = vtanh.f32 %v2686_v0 }
 0x254   :  { %v7470_v8 = vpop.eup %7469  ;;  %v2160_v40 = vpop.f32.mrb[174].mxu0  ;;  %v8915_v50 = vmax.bf16 %v3543_v59, %v3542_v26  ;;  %v3609_v26 = vpack.c.bf16 %v7466_v24, %v7460_v21 }
 0x255   :  { %v2161_v54 = vadd.f32 %v8920_v41, %v2160_v40  ;;  %v6492_v63 = vpop.f32.mrb[175].mxu0  ;;  %v2789_v32 = vpop.f32.mrb[88].mxu1  ;;  %7485 = vtanh.f32 %v2158_v62  ;;  %v3622_v14 = vpack.c.bf16 %v7470_v8, %v7468_v3  ;;  %v7159_v62 = vld [vmem:[#allocation3 + $0x4a8] sm:$0xff]  }
 0x256   :  { %v3852_v38 = vmax.bf16 %v8915_v50, %v8622_v22  ;;  %v6807_v48 = vpop.f32.mrb[89].mxu1  ;;  %v7472_v45 = vpop.eup %7471  ;;  %v2790_v18 = vadd.f32 %v8920_v41, %v2789_v32  ;;  %v8933_v21 = vmax.bf16 %v3609_v26, %v3608_v11 }
 0x257   :  { %7487 = vtanh.f32 %v2161_v54  ;;  %6598 = vmatmul.mubr.msk.bf16.gmra.mrb[24].mxu0 %vm1271_vm1, %v7125_v43  ;;  %v2792_v23 = vpop.f32.mrb[90].mxu1  ;;  %v7474_v55 = vpop.eup %7473  ;;  %v8935_v24 = vmax.bf16 %v3622_v14, %v3621_v60  ;;  %v2694_v43 = vadd.f32 %v8920_v41, %v8687_v10  ;;  %6914 = vmatmul.mubr.msk.bf16.gmra.mrb[196].mxu1 %vm1271_vm1, %v7159_v62  ;;  %v2697_v10 = vadd.f32 %v8920_v41, %v8693_v58 }
 0x258   :  { %4019 = vrot.lane.b32.xlu0 %v3852_v38, %s8058_s11  ;;  %6601 = vmatprep.mubr.msk.bf16.mxu0 %vm8057_vm0, %v10840_v28  ;;  %7489 = vtanh.f32 %v2689_v46  ;;  %v2793_v0 = vadd.f32 %v8920_v41, %v2792_v23  ;;  %v6808_v40 = vpop.f32.mrb[91].mxu1  ;;  %10853 = vst [vmem:[#allocation25_spill] sm:$0xff] %v8933_v21  ;;  %v7127_v38 = vld [vmem:[#allocation3 + $0x238] sm:$0xff]  }
 0x259   :  { %10854 = vst [vmem:[#allocation26_spill] sm:$0xff] %v8935_v24  ;;  %v7476_v3 = vpop.eup %7475  ;;  %7491 = vtanh.f32 %v2790_v18  ;;  %6917 = vmatprep.mubr.msk.bf16.mxu1 %vm8057_vm0, %v10840_v28 }
 0x25a   :  { %v7478_v8 = vpop.eup %7477  ;;  %v2165_v54 = vpop.f32.mrb[176].mxu0  ;;  %v3544_v63 = vpack.c.bf16 %v7476_v3, %v7474_v55  ;;  %7493 = vtanh.f32 %v2793_v0 }
 0x25b   :  { %v7480_v46 = vpop.eup %7479  ;;  %v2166_v23 = vadd.f32 %v8920_v41, %v2165_v54  ;;  %v6495_v32 = vpop.f32.mrb[177].mxu0  ;;  %7495 = vtanh.f32 %v2694_v43  ;;  %v3610_v40 = vpack.c.bf16 %v7478_v8, %v7472_v45 }
 0x25c   :  { %v7482_v11 = vpop.eup %7481  ;;  %v2168_v60 = vpop.f32.mrb[178].mxu0  ;;  %v8945_v48 = vmax.bf16 %v3544_v63, %v3543_v59  ;;  %v7161_v59 = vld [vmem:[#allocation3 + $0x4b0] sm:$0xff]  }
 0x25d   :  { %v2169_v18 = vadd.f32 %v8920_v41, %v2168_v60  ;;  %v6496_v55 = vpop.f32.mrb[179].mxu0  ;;  %v2797_v0 = vpop.f32.mrb[92].mxu1  ;;  %7497 = vtanh.f32 %v2166_v23  ;;  %v3623_v3 = vpack.c.bf16 %v7482_v11, %v7480_v46  ;;  %v8953_v23 = vmax.bf16 %v3610_v40, %v3609_v26 }
 0x25e   :  { %v6811_v62 = vpop.f32.mrb[93].mxu1  ;;  %v7484_v54 = vpop.eup %7483  ;;  %v2798_v32 = vadd.f32 %v8920_v41, %v2797_v0  ;;  %v2702_v46 = vadd.f32 %v8920_v41, %v8697_v27 }
 0x25f   :  { %7499 = vtanh.f32 %v2169_v18  ;;  %6602 = vmatmul.mubr.msk.bf16.gmra.mrb[28].mxu0 %vm1271_vm1, %v7127_v38  ;;  %v2800_v25 = vpop.f32.mrb[94].mxu1  ;;  %v7486_v61 = vpop.eup %7485  ;;  %10855 = vst [vmem:[#allocation27_spill] sm:$0xff] %v8953_v23  ;;  %v8955_v45 = vmax.bf16 %v3623_v3, %v3622_v14  ;;  %6918 = vmatmul.mubr.msk.bf16.gmra.mrb[200].mxu1 %vm1271_vm1, %v7161_v59  ;;  %v7129_v14 = vld [vmem:[#allocation3 + $0x240] sm:$0xff]  }
 0x260   :  { %6605 = vmatprep.mubr.msk.bf16.mxu0 %vm8057_vm0, %v10840_v28  ;;  %7501 = vtanh.f32 %v2697_v10  ;;  %v2801_v58 = vadd.f32 %v8920_v41, %v2800_v25  ;;  %v6812_v43 = vpop.f32.mrb[95].mxu1  ;;  %6921 = vmatprep.mubr.msk.bf16.mxu1 %vm8057_vm0, %v10840_v28 }
 0x261   :  { %10856 = vst [vmem:[#allocation28_spill] sm:$0xff] %v8955_v45  ;;  %v7488_v8 = vpop.eup %7487  ;;  %7503 = vtanh.f32 %v2798_v32 }
 0x262   :  { %v7490_v38 = vpop.eup %7489  ;;  %v2173_v11 = vpop.f32.mrb[180].mxu0  ;;  %v3545_v60 = vpack.c.bf16 %v7488_v8, %v7486_v61  ;;  %7505 = vtanh.f32 %v2801_v58  ;;  %v2705_v61 = vadd.f32 %v8920_v41, %v8704_v17 }
 0x263   :  { %v7492_v10 = vpop.eup %7491  ;;  %v2174_v26 = vadd.f32 %v8920_v41, %v2173_v11  ;;  %v6499_v18 = vpop.f32.mrb[181].mxu0  ;;  %7507 = vtanh.f32 %v2702_v46  ;;  %v3611_v8 = vpack.c.bf16 %v7490_v38, %v7484_v54 }
 0x264   :  { %v7494_v55 = vpop.eup %7493  ;;  %v2176_v27 = vpop.f32.mrb[182].mxu0  ;;  %v8965_v0 = vmax.bf16 %v3545_v60, %v3544_v63 }
 0x265   :  { %v2177_v62 = vadd.f32 %v8920_v41, %v2176_v27  ;;  %v6500_v32 = vpop.f32.mrb[183].mxu0  ;;  %v2805_v58 = vpop.f32.mrb[96].mxu1  ;;  %7509 = vtanh.f32 %v2174_v26  ;;  %v3624_v11 = vpack.c.bf16 %v7494_v55, %v7492_v10  ;;  %v8978_v54 = vmax.bf16 %v3611_v8, %v3610_v40 }
 0x266   :  { %v3854_v59 = vmax.bf16 %v8965_v0, %v8659_v13  ;;  %v6815_v43 = vpop.f32.mrb[97].mxu1  ;;  %v7496_v18 = vpop.eup %7495  ;;  %v2806_v63 = vadd.f32 %v8920_v41, %v2805_v58  ;;  %v7163_v13 = vld [vmem:[#allocation3 + $0x4b8] sm:$0xff]   ;;  %v7131_v58 = vld [vmem:[#allocation3 + $0x248] sm:$0xff]  }
 0x267   :  { %7511 = vtanh.f32 %v2177_v62  ;;  %6606 = vmatmul.mubr.msk.bf16.gmra.mrb[32].mxu0 %vm1271_vm1, %v7129_v14  ;;  %v2808_v25 = vpop.f32.mrb[98].mxu1  ;;  %v7498_v17 = vpop.eup %7497  ;;  %10857 = vst [vmem:[#allocation29_spill] sm:$0xff] %v8978_v54  ;;  %v8980_v38 = vmax.bf16 %v3624_v11, %v3623_v3  ;;  %v2710_v14 = vadd.f32 %v8920_v41, %v8713_v12  ;;  %6922 = vmatmul.mubr.msk.bf16.gmra.mrb[204].mxu1 %vm1271_vm1, %v7163_v13 }
 0x268   :  { %4021 = vrot.lane.b32.xlu0 %v3854_v59, %s8058_s11  ;;  %6609 = vmatprep.mubr.msk.bf16.mxu0 %vm8057_vm0, %v10840_v28  ;;  %7513 = vtanh.f32 %v2705_v61  ;;  %v2809_v46 = vadd.f32 %v8920_v41, %v2808_v25  ;;  %v6816_v26 = vpop.f32.mrb[99].mxu1  ;;  %v2713_v12 = vadd.f32 %v8920_v41, %v8722_v2 }
 0x269   :  { %10858 = vst [vmem:[#allocation30_spill] sm:$0xff] %v8980_v38  ;;  %v7500_v10 = vpop.eup %7499  ;;  %7515 = vtanh.f32 %v2806_v63  ;;  %6925 = vmatprep.mubr.msk.bf16.mxu1 %vm8057_vm0, %v10840_v28 }
 0x26a   :  { %v7502_v55 = vpop.eup %7501  ;;  %v2181_v27 = vpop.f32.mrb[184].mxu0  ;;  %v3546_v62 = vpack.c.bf16 %v7500_v10, %v7498_v17  ;;  %7517 = vtanh.f32 %v2809_v46 }
 0x26b   :  { %v7504_v61 = vpop.eup %7503  ;;  %v2182_v25 = vadd.f32 %v8920_v41, %v2181_v27  ;;  %v6503_v32 = vpop.f32.mrb[185].mxu0  ;;  %7519 = vtanh.f32 %v2710_v14  ;;  %v3612_v13 = vpack.c.bf16 %v7502_v55, %v7496_v18 }
 0x26c   :  { %v7506_v40 = vpop.eup %7505  ;;  %v2184_v3 = vpop.f32.mrb[186].mxu0  ;;  %v8990_v59 = vmax.bf16 %v3546_v62, %v3545_v60  ;;  %v7165_v60 = vld [vmem:[#allocation3 + $0x4c0] sm:$0xff]  }
 0x26d   :  { %v2185_v43 = vadd.f32 %v8920_v41, %v2184_v3  ;;  %v6504_v63 = vpop.f32.mrb[187].mxu0  ;;  %v2813_v17 = vpop.f32.mrb[100].mxu1  ;;  %7521 = vtanh.f32 %v2182_v25  ;;  %v3625_v26 = vpack.c.bf16 %v7506_v40, %v7504_v61  ;;  %v8998_v25 = vmax.bf16 %v3612_v13, %v3611_v8  ;;  %v7135_v3 = vld [vmem:[#allocation3 + $0x258] sm:$0xff]  }
 0x26e   :  { %v6819_v46 = vpop.f32.mrb[101].mxu1  ;;  %v7508_v10 = vpop.eup %7507  ;;  %v2814_v27 = vadd.f32 %v8920_v41, %v2813_v17  ;;  %v7133_v17 = vld [vmem:[#allocation3 + $0x250] sm:$0xff]  }
 0x26f   :  { %7523 = vtanh.f32 %v2185_v43  ;;  %6610 = vmatmul.mubr.msk.bf16.gmra.mrb[36].mxu0 %vm1271_vm1, %v7131_v58  ;;  %v2816_v32 = vpop.f32.mrb[102].mxu1  ;;  %v7510_v29 = vpop.eup %7509  ;;  %10859 = vst [vmem:[#allocation31_spill] sm:$0xff] %v8998_v25  ;;  %v9000_v18 = vmax.bf16 %v3625_v26, %v3624_v11  ;;  %6926 = vmatmul.mubr.msk.bf16.gmra.mrb[208].mxu1 %vm1271_vm1, %v7165_v60  ;;  %v7143_v25 = vld [vmem:[#allocation3 + $0x278] sm:$0xff]  }
 0x270   :  { %6613 = vmatprep.mubr.msk.bf16.mxu0 %vm8057_vm0, %v10840_v28  ;;  %7525 = vtanh.f32 %v2713_v12  ;;  %v2817_v2 = vadd.f32 %v8920_v41, %v2816_v32  ;;  %v6820_v14 = vpop.f32.mrb[103].mxu1  ;;  %6929 = vmatprep.mubr.msk.bf16.mxu1 %vm8057_vm0, %v10840_v28  ;;  %v7166_v32 = vld [vmem:[%s10734_s3 + $0x8] sm:$0xff]  }
 0x271   :  { %10860 = vst [vmem:[#allocation32_spill] sm:$0xff] %v9000_v18  ;;  %v7512_v55 = vpop.eup %7511  ;;  %7527 = vtanh.f32 %v2814_v27  ;;  %4868 = vmatpush1.bf16.msra.mxu1 %v7166_v32 }
 0x272   :  { %v7514_v61 = vpop.eup %7513  ;;  %v2189_v58 = vpop.f32.mrb[188].mxu0  ;;  %v3547_v40 = vpack.c.bf16 %v7512_v55, %v7510_v29  ;;  %7529 = vtanh.f32 %v2817_v2 }
 0x273   :  { %v7516_v12 = vpop.eup %7515  ;;  %v2190_v43 = vadd.f32 %v8920_v41, %v2189_v58  ;;  %v6507_v63 = vpop.f32.mrb[189].mxu0  ;;  %v3613_v55 = vpack.c.bf16 %v7514_v61, %v7508_v10 }
 0x274   :  { %v7518_v8 = vpop.eup %7517  ;;  %v2192_v11 = vpop.f32.mrb[190].mxu0  ;;  %v9008_v46 = vmax.bf16 %v3547_v40, %v3546_v62 }
 0x275   :  { %v2193_v29 = vadd.f32 %v8920_v41, %v2192_v11  ;;  %v6508_v27 = vpop.f32.mrb[191].mxu0  ;;  %v2821_v2 = vpop.f32.mrb[104].mxu1  ;;  %7531 = vtanh.f32 %v2190_v43  ;;  %v3626_v58 = vpack.c.bf16 %v7518_v8, %v7516_v12  ;;  %v9022_v10 = vmax.bf16 %v3613_v55, %v3612_v13 }
 0x276   :  { %v3856_v60 = vmax.bf16 %v9008_v46, %v8701_v36  ;;  %v6823_v14 = vpop.f32.mrb[105].mxu1  ;;  %v7520_v63 = vpop.eup %7519  ;;  %v2822_v62 = vadd.f32 %v8920_v41, %v2821_v2  ;;  %v7168_v36 = vld [vmem:[#allocation3 + $0x4c8] sm:$0xff]  }
 0x277   :  { %7533 = vtanh.f32 %v2193_v29  ;;  %6614 = vmatmul.mubr.msk.bf16.gmra.mrb[40].mxu0 %vm1271_vm1, %v7133_v17  ;;  %v2824_v11 = vpop.f32.mrb[106].mxu1  ;;  %v7522_v27 = vpop.eup %7521  ;;  %10861 = vst [vmem:[#allocation33_spill] sm:$0xff] %v9022_v10  ;;  %v9024_v61 = vmax.bf16 %v3626_v58, %v3625_v26  ;;  %v10863_v17 = vmov 0   ;;  %6930 = vmatmul.mubr.msk.bf16.gmra.mrb[212].mxu1 %vm1271_vm1, %v7168_v36 }
 0x278   :  { %4023 = vrot.lane.b32.xlu0 %v3856_v60, %s8058_s11  ;;  %6617 = vmatprep.mubr.msk.bf16.mxu0 %vm8057_vm0, %v10840_v28  ;;  %v2825_v43 = vadd.f32 %v8920_v41, %v2824_v11  ;;  %v6824_v14 = vpop.f32.mrb[107].mxu1  ;;  %7535 = vtanh.f32 %v2822_v62 }
 0x279   :  { %10862 = vst [vmem:[#allocation34_spill] sm:$0xff] %v9024_v61  ;;  %v7524_v12 = vpop.eup %7523  ;;  %4869 = vmatprep.subr.bf16.mxu1 %v10863_v17  ;;  %6933 = vmatprep.mubr.msk.bf16.mxu1 %vm8057_vm0, %v10840_v28  ;;  %v2829_v38 = vpop.f32.mrb[108].mxu1 }
 0x27a   :  { %v7526_v8 = vpop.eup %7525  ;;  %v2197_v29 = vpop.f32.mrb[192].mxu0  ;;  %v3548_v32 = vpack.c.bf16 %v7524_v12, %v7522_v27  ;;  %7537 = vtanh.f32 %v2825_v43  ;;  %v2830_v12 = vadd.f32 %v8920_v41, %v2829_v38 }
 0x27b   :  { %v7528_v2 = vpop.eup %7527  ;;  %v2198_v60 = vadd.f32 %v8920_v41, %v2197_v29  ;;  %v6511_v11 = vpop.f32.mrb[193].mxu0  ;;  %v9034_v43 = vpack.c.bf16 %v7526_v8, %v7520_v63 }
 0x27c   :  { %v7530_v13 = vpop.eup %7529  ;;  %v2200_v26 = vpop.f32.mrb[194].mxu0  ;;  %v9031_v14 = vmax.bf16 %v3548_v32, %v3547_v40 }
 0x27d   :  { %v2201_v62 = vadd.f32 %v8920_v41, %v2200_v26  ;;  %v6512_v61 = vpop.f32.mrb[195].mxu0  ;;  %7539 = vtanh.f32 %v2198_v60  ;;  %v6827_v27 = vpop.f32.mrb[109].mxu1  ;;  %10864 = vst [vmem:[#allocation35_spill] sm:$0xff] %v9034_v43  ;;  %v3627_v36 = vpack.c.bf16 %v7530_v13, %v7528_v2  ;;  %v7170_v26 = vld [vmem:[#allocation3 + $0x4d0] sm:$0xff]   ;;  %v9042_v60 = vmax.bf16 %v9034_v43, %v3613_v55 }
 0x27e   :  { %v2832_v29 = vpop.f32.mrb[110].mxu1 }
 0x27f   :  { %7541 = vtanh.f32 %v2201_v62  ;;  %6618 = vmatmul.mubr.msk.bf16.gmra.mrb[44].mxu0 %vm1271_vm1, %v7135_v3  ;;  %v7532_v11 = vpop.eup %7531  ;;  %v2833_v40 = vadd.f32 %v8920_v41, %v2832_v29  ;;  %v6828_v61 = vpop.f32.mrb[111].mxu1  ;;  %10865 = vst [vmem:[#allocation36_spill] sm:$0xff] %v9042_v60  ;;  %v9044_v63 = vmax.bf16 %v3627_v36, %v3626_v58  ;;  %6934 = vmatmul.mubr.msk.bf16.gmra.mrb[216].mxu1 %vm1271_vm1, %v7170_v26  ;;  %v7137_v29 = vld [vmem:[#allocation3 + $0x260] sm:$0xff]  }
 0x280   :  { %6621 = vmatprep.mubr.msk.bf16.mxu0 %vm8057_vm0, %v10840_v28  ;;  %7543 = vtanh.f32 %v2830_v12  ;;  %6937 = vmatprep.mubr.msk.bf16.mxu1 %vm8057_vm0, %v10840_v28 }
 0x281   :  { %10866 = vst [vmem:[#allocation37_spill] sm:$0xff] %v9044_v63  ;;  %v7534_v8 = vpop.eup %7533  ;;  %7545 = vtanh.f32 %v2833_v40  ;;  %v2837_v40 = vpop.f32.mrb[112].mxu1 }
 0x282   :  { %v2205_v2 = vpop.f32.mrb[196].mxu0  ;;  %v3549_v3 = vpack.c.bf16 %v7534_v8, %v7532_v11  ;;  %v7536_v13 = vpop.eup %7535 }
 0x283   :  { %v2206_v62 = vadd.f32 %v8920_v41, %v2205_v2  ;;  %v6515_v27 = vpop.f32.mrb[197].mxu0  ;;  %v6831_v8 = vpop.f32.mrb[113].mxu1  ;;  %v2838_v2 = vadd.f32 %v8920_v41, %v2837_v40 }
 0x284   :  { %v7538_v55 = vpop.eup %7537  ;;  %v2208_v58 = vpop.f32.mrb[198].mxu0  ;;  %v9052_v61 = vmax.bf16 %v3549_v3, %v3548_v32 }
 0x285   :  { %v2209_v12 = vadd.f32 %v8920_v41, %v2208_v58  ;;  %v6516_v11 = vpop.f32.mrb[199].mxu0  ;;  %7547 = vtanh.f32 %v2206_v62  ;;  %v3628_v38 = vpack.c.bf16 %v7538_v55, %v7536_v13  ;;  %v2840_v27 = vpop.f32.mrb[114].mxu1  ;;  %v7172_v62 = vld [vmem:[#allocation3 + $0x4d8] sm:$0xff]  }
 0x286   :  { %v3858_v26 = vmax.bf16 %v9052_v61, %v8747_v52  ;;  %v2841_v32 = vadd.f32 %v8920_v41, %v2840_v27  ;;  %v6832_v58 = vpop.f32.mrb[115].mxu1 }
 0x287   :  { %7549 = vtanh.f32 %v2209_v12  ;;  %6622 = vmatmul.mubr.msk.bf16.gmra.mrb[48].mxu0 %vm1271_vm1, %v7137_v29  ;;  %v7540_v43 = vpop.eup %7539  ;;  %v9063_v11 = vmax.bf16 %v3628_v38, %v3627_v36  ;;  %6938 = vmatmul.mubr.msk.bf16.gmra.mrb[220].mxu1 %vm1271_vm1, %v7172_v62 }
 0x288   :  { %4025 = vrot.lane.b32.xlu0 %v3858_v26, %s8058_s11  ;;  %6625 = vmatprep.mubr.msk.bf16.mxu0 %vm8057_vm0, %v10840_v28  ;;  %7551 = vtanh.f32 %v2838_v2  ;;  %v7139_v26 = vld [vmem:[#allocation3 + $0x268] sm:$0xff]  }
 0x289   :  { %10867 = vst [vmem:[#allocation38_spill] sm:$0xff] %v9063_v11  ;;  %v7542_v52 = vpop.eup %7541  ;;  %7553 = vtanh.f32 %v2841_v32  ;;  %6941 = vmatprep.mubr.msk.bf16.mxu1 %vm8057_vm0, %v10840_v28  ;;  %v2845_v11 = vpop.f32.mrb[116].mxu1 }
 0x28a   :  { %v2213_v13 = vpop.f32.mrb[200].mxu0  ;;  %v3550_v55 = vpack.c.bf16 %v7542_v52, %v7540_v43  ;;  %v7544_v29 = vpop.eup %7543  ;;  %v2846_v52 = vadd.f32 %v8920_v41, %v2845_v11 }
 0x28b   :  { %v2214_v12 = vadd.f32 %v8920_v41, %v2213_v13  ;;  %v6519_v40 = vpop.f32.mrb[201].mxu0  ;;  %v7546_v8 = vpop.eup %7545 }
 0x28c   :  { %v2216_v27 = vpop.f32.mrb[202].mxu0  ;;  %v9069_v58 = vmax.bf16 %v3550_v55, %v3549_v3  ;;  %v9072_v43 = vpop.permute.xlu1 %4011  ;;  %v3629_v62 = vpack.c.bf16 %v7546_v8, %v7544_v29 }
 0x28d   :  { %v2217_v36 = vadd.f32 %v8920_v41, %v2216_v27  ;;  %v6520_v2 = vpop.f32.mrb[203].mxu0  ;;  %7555 = vtanh.f32 %v2214_v12  ;;  %v6835_v32 = vpop.f32.mrb[117].mxu1  ;;  %v7174_v27 = vld [vmem:[#allocation3 + $0x4e0] sm:$0xff]  }
 0x28e   :  { %v2848_v13 = vpop.f32.mrb[118].mxu1  ;;  %v9079_v24 = vmax.bf16 %v3629_v62, %v3628_v38  ;;  %v7141_v32 = vld [vmem:[#allocation3 + $0x270] sm:$0xff]  }
 0x28f   :  { %7557 = vtanh.f32 %v2217_v36  ;;  %6626 = vmatmul.mubr.msk.bf16.gmra.mrb[52].mxu0 %vm1271_vm1, %v7139_v26  ;;  %v7548_v40 = vpop.eup %7547  ;;  %v2849_v3 = vadd.f32 %v8920_v41, %v2848_v13  ;;  %v6836_v2 = vpop.f32.mrb[119].mxu1  ;;  %6942 = vmatmul.mubr.msk.bf16.gmra.mrb[224].mxu1 %vm1271_vm1, %v7174_v27 }
 0x290   :  { %6629 = vmatprep.mubr.msk.bf16.mxu0 %vm8057_vm0, %v10840_v28  ;;  %10868 = vst [vmem:[#allocation39_spill] sm:$0xff] %v9079_v24  ;;  %7559 = vtanh.f32 %v2846_v52  ;;  %v9081_v12 = vpop.permute.xlu1 %4013  ;;  %6945 = vmatprep.mubr.msk.bf16.mxu1 %vm8057_vm0, %v10840_v28  ;;  %v2853_v27 = vpop.f32.mrb[120].mxu1 }
 0x291   :  { %v7550_v60 = vpop.eup %7549  ;;  %7561 = vtanh.f32 %v2849_v3  ;;  %v7175_v3 = vld [vmem:[%s10734_s3 + $0x10] sm:$0xff]  }
 0x292   :  { %v2221_v29 = vpop.f32.mrb[204].mxu0  ;;  %v3551_v8 = vpack.c.bf16 %v7550_v60, %v7548_v40  ;;  %v7552_v11 = vpop.eup %7551  ;;  %4870 = vmatpush1.bf16.msra.mxu1 %v7175_v3 }
 0x293   :  { %v2222_v26 = vadd.f32 %v8920_v41, %v2221_v29  ;;  %v6523_v36 = vpop.f32.mrb[205].mxu0  ;;  %v7554_v13 = vpop.eup %7553  ;;  %4871 = vmatprep.subr.bf16.mxu1 %v10863_v17 }
 0x294   :  { %v2224_v38 = vpop.f32.mrb[206].mxu0  ;;  %v9087_v2 = vmax.bf16 %v3551_v8, %v3550_v55  ;;  %v9090_v10 = vpop.permute.xlu1 %4015  ;;  %v3630_v40 = vpack.c.bf16 %v7554_v13, %v7552_v11  ;;  %v7177_v55 = vld [vmem:[#allocation3 + $0x4e8] sm:$0xff]   ;;  %v2854_v11 = vadd.f32 %v8920_v41, %v2853_v27 }
 0x295   :  { %v2225_v52 = vadd.f32 %v8920_v41, %v2224_v38  ;;  %v6524_v24 = vpop.f32.mrb[207].mxu0  ;;  %7563 = vtanh.f32 %v2222_v26 }
 0x296   :  { %v3860_v60 = vmax.bf16 %v9087_v2, %v8791_v34  ;;  %v6839_v24 = vpop.f32.mrb[121].mxu1  ;;  %v9101_v26 = vmax.bf16 %v3630_v40, %v3629_v62 }
 0x297   :  { %7565 = vtanh.f32 %v2225_v52  ;;  %6630 = vmatmul.mubr.msk.bf16.gmra.mrb[56].mxu0 %vm1271_vm1, %v7141_v32  ;;  %v7556_v29 = vpop.eup %7555  ;;  %6946 = vmatmul.mubr.msk.bf16.gmra.mrb[228].mxu1 %vm1271_vm1, %v7177_v55  ;;  %v2856_v24 = vpop.f32.mrb[122].mxu1 }
 0x298   :  { %4027 = vrot.lane.b32.xlu0 %v3860_v60, %s8058_s11  ;;  %6633 = vmatprep.mubr.msk.bf16.mxu0 %vm8057_vm0, %v10840_v28  ;;  %10869 = vst [vmem:[#allocation40_spill] sm:$0xff] %v9101_v26  ;;  %v9104_v36 = vpop.permute.xlu1 %4017  ;;  %v6840_v26 = vpop.f32.mrb[123].mxu1  ;;  %7567 = vtanh.f32 %v2854_v11  ;;  %v2857_v55 = vadd.f32 %v8920_v41, %v2856_v24 }
 0x299   :  { %v7558_v34 = vpop.eup %7557  ;;  %6949 = vmatprep.mubr.msk.bf16.mxu1 %vm8057_vm0, %v10840_v28  ;;  %v2861_v54 = vpop.f32.mrb[124].mxu1 }
 0x29a   :  { %v2229_v32 = vpop.f32.mrb[208].mxu0  ;;  %v3552_v13 = vpack.c.bf16 %v7558_v34, %v7556_v29  ;;  %v7560_v38 = vpop.eup %7559  ;;  %v2862_v23 = vadd.f32 %v8920_v41, %v2861_v54 }
 0x29b   :  { %v2230_v52 = vadd.f32 %v8920_v41, %v2229_v32  ;;  %v6527_v60 = vpop.f32.mrb[209].mxu0  ;;  %v7562_v62 = vpop.eup %7561 }
 0x29c   :  { %v2232_v3 = vpop.f32.mrb[210].mxu0  ;;  %v9111_v27 = vmax.bf16 %v3552_v13, %v3551_v8  ;;  %v6843_v32 = vpop.f32.mrb[125].mxu1  ;;  %v3631_v60 = vpack.c.bf16 %v7562_v62, %v7560_v38 }
 0x29d   :  { %v2233_v29 = vadd.f32 %v8920_v41, %v2232_v3  ;;  %v6528_v34 = vpop.f32.mrb[211].mxu0  ;;  %7569 = vtanh.f32 %v2230_v52  ;;  %v2864_v21 = vpop.f32.mrb[126].mxu1 }
 0x29e   :  { %v9117_v16 = vpop.permute.xlu1 %4117  ;;  %v2865_v26 = vadd.f32 %v8920_v41, %v2864_v21  ;;  %v6844_v11 = vpop.f32.mrb[127].mxu1  ;;  %v9122_v52 = vmax.bf16 %v3631_v60, %v3630_v40 }
 0x29f   :  { %7571 = vtanh.f32 %v2233_v29  ;;  %6634 = vmatmul.mubr.msk.bf16.gmra.mrb[60].mxu0 %vm1271_vm1, %v7143_v25  ;;  %v7564_v8 = vpop.eup %7563  ;;  %6950 = vmatmul.mubr.msk.bf16.gmra.mrb[232].mxu1 %vm1271_vm1, %v7179_v33  ;;  %v7145_v29 = vld [vmem:[#allocation3 + $0x280] sm:$0xff]   ;;  %v2869_v32 = vpop.f32.mrb[128].mxu1 }
 0x2a0   :  { %6637 = vmatprep.mubr.msk.bf16.mxu0 %vm8057_vm0, %v10840_v28  ;;  %7573 = vtanh.f32 %v2857_v55  ;;  %10870 = vst [vmem:[#allocation41_spill] sm:$0xff] %v9122_v52  ;;  %6953 = vmatprep.mubr.msk.bf16.mxu1 %vm8057_vm0, %v10840_v28  ;;  %v6847_v60 = vpop.f32.mrb[129].mxu1 }
 0x2a1   :  { %v7566_v38 = vpop.eup %7565  ;;  %7575 = vtanh.f32 %v2862_v23  ;;  %v2872_v11 = vpop.f32.mrb[130].mxu1 }
 0x2a2   :  { %v2237_v24 = vpop.f32.mrb[212].mxu0  ;;  %v3553_v25 = vpack.c.bf16 %v7566_v38, %v7564_v8  ;;  %7577 = vtanh.f32 %v2865_v26  ;;  %v9130_v21 = vpop.permute.xlu1 %4225  ;;  %v2870_v26 = vadd.f32 %v8920_v41, %v2869_v32  ;;  %v7181_v38 = vld [vmem:[#allocation3 + $0x4f8] sm:$0xff]  }
 0x2a3   :  { %v2238_v62 = vadd.f32 %v8920_v41, %v2237_v24  ;;  %v6531_v3 = vpop.f32.mrb[213].mxu0  ;;  %v7568_v8 = vpop.eup %7567 }
 0x2a4   :  { %v2240_v40 = vpop.f32.mrb[214].mxu0  ;;  %v9132_v34 = vmax.bf16 %v3553_v25, %v3552_v13  ;;  %v6848_v25 = vpop.f32.mrb[131].mxu1 }
 0x2a5   :  { %v2241_v23 = vadd.f32 %v8920_v41, %v2240_v40  ;;  %v6532_v55 = vpop.f32.mrb[215].mxu0  ;;  %7579 = vtanh.f32 %v2238_v62 }
 0x2a6   :  { %v3862_v33 = vmax.bf16 %v9132_v34, %v8847_v9  ;;  %v9141_v13 = vpop.permute.xlu1 %4119  ;;  %v2873_v9 = vadd.f32 %v8920_v41, %v2872_v11  ;;  %v7147_v11 = vld [vmem:[#allocation3 + $0x288] sm:$0xff]  }
 0x2a7   :  { %7581 = vtanh.f32 %v2241_v23  ;;  %6638 = vmatmul.mubr.msk.bf16.gmra.mrb[64].mxu0 %vm1271_vm1, %v7145_v29  ;;  %v9139_v24 = vpop.eup %7569  ;;  %v9149_v29 = vpop.permute.xlu0 %4007  ;;  %v3839_v23 = vmax.bf16 %v8604_v47, %v8435_v15  ;;  %6954 = vmatmul.mubr.msk.bf16.gmra.mrb[236].mxu1 %vm1271_vm1, %v7181_v38  ;;  %v3840_v38 = vmax.bf16 %v8622_v22, %v8445_v35 }
 0x2a8   :  { %4029 = vrot.lane.b32.xlu0 %v3862_v33, %s8058_s11  ;;  %6641 = vmatprep.mubr.msk.bf16.mxu0 %vm8057_vm0, %v10840_v28  ;;  %7583 = vtanh.f32 %v2870_v26 }
 0x2a9   :  { %v9147_v62 = vpop.eup %7571  ;;  %7585 = vtanh.f32 %v2873_v9  ;;  %6957 = vmatprep.mubr.msk.bf16.mxu1 %vm8057_vm0, %v10840_v28  ;;  %v2877_v9 = vpop.f32.mrb[132].mxu1 }
 0x2aa   :  { %v7574_v3 = vpop.eup %7573  ;;  %v2245_v40 = vpop.f32.mrb[216].mxu0  ;;  %v3554_v55 = vpack.c.bf16 %v9147_v62, %v9139_v24 }
 0x2ab   :  { %v7576_v32 = vpop.eup %7575  ;;  %v2246_v33 = vadd.f32 %v8920_v41, %v2245_v40  ;;  %v6535_v60 = vpop.f32.mrb[217].mxu0 }
 0x2ac   :  { %v7578_v26 = vpop.eup %7577  ;;  %v9159_v25 = vpop.permute.xlu1 %4227  ;;  %4115 = vrot.lane.b32.xlu0 %v3839_v23, %s8059_s14  ;;  %v3632_v60 = vpack.c.bf16 %v7574_v3, %v7568_v8 }
 0x2ad   :  { %v2248_v54 = vpop.f32.mrb[218].mxu0  ;;  %v4010_v62 = vpop.permute.xlu0 %4009  ;;  %7587 = vtanh.f32 %v2246_v33  ;;  %v3633_v51 = vpack.c.bf16 %v7578_v26, %v7576_v32 }
 0x2ae   :  { %v2249_v52 = vadd.f32 %v8920_v41, %v2248_v54  ;;  %v6536_v24 = vpop.f32.mrb[219].mxu0  ;;  %v6851_v40 = vpop.f32.mrb[133].mxu1  ;;  %v2878_v54 = vadd.f32 %v8920_v41, %v2877_v9  ;;  %v4301_v1 = vsel %vm4295_vm3, %v3829_v6, %v4010_v62  ;;  %v7149_v62 = vld [vmem:[#allocation3 + $0x290] sm:$0xff]  }
 0x2af   :  { %6642 = vmatmul.mubr.msk.bf16.gmra.mrb[68].mxu0 %vm1271_vm1, %v7147_v11  ;;  %v2880_v23 = vpop.f32.mrb[134].mxu1  ;;  %v7580_v24 = vpop.eup %7579  ;;  %v9175_v53 = vmax.bf16 %v3633_v51, %v3632_v60  ;;  %6958 = vmatmul.mubr.msk.bf16.gmra.mrb[240].mxu1 %vm1271_vm1, %v7183_v31  ;;  %v10873_v11 = vmax.bf16 %v8352_v20, %v8340_v5 }
 0x2b0   :  { %7589 = vtanh.f32 %v2249_v52  ;;  %v4122_v33 = vpop.permute.xlu1 %4121  ;;  %4223 = vrot.lane.b32.xlu0 %v3840_v38, %s8060_s15  ;;  %6645 = vmatprep.mubr.msk.bf16.mxu0 %vm8057_vm0, %v10840_v28  ;;  %v2881_v19 = vadd.f32 %v8920_v41, %v2880_v23  ;;  %v6852_v35 = vpop.f32.mrb[135].mxu1  ;;  %v4408_v52 = vsel %vm4404_vm2, %v4301_v1, %v9117_v16  ;;  %v7186_v1 = vld [vmem:[#allocation3 + $0x508] sm:$0xff]  }
 0x2b1   :  { %10872 = vst [vmem:[#allocation42_spill] sm:$0xff] %v9175_v53  ;;  %v7582_v22 = vpop.eup %7581  ;;  %7591 = vtanh.f32 %v2878_v54  ;;  %v3833_v26 = vmax.bf16 %v8510_v4, %v10873_v11  ;;  %v9188_v6 = vsel %vm4477_vm4, %v4408_v52, %v9130_v21  ;;  %6961 = vmatprep.mubr.msk.bf16.mxu1 %vm8057_vm0, %v10840_v28  ;;  %v2885_v21 = vpop.f32.mrb[136].mxu1 }
 0x2b2   :  { %v2253_v8 = vpop.f32.mrb[220].mxu0  ;;  %v3555_v3 = vpack.c.bf16 %v7582_v22, %v7580_v24  ;;  %7593 = vtanh.f32 %v2881_v19  ;;  %v7584_v32 = vpop.eup %7583 }
 0x2b3   :  { %v2254_v9 = vadd.f32 %v8920_v41, %v2253_v8  ;;  %v6539_v38 = vpop.f32.mrb[221].mxu0  ;;  %v7586_v16 = vpop.eup %7585  ;;  %v4307_v20 = vsel %vm4295_vm3, %v3833_v26, %v9081_v12  ;;  %v7185_v12 = vld [vmem:[%s10734_s3 + $0x18] sm:$0xff]  }
 0x2b4   :  { %v4230_v40 = vpop.permute.xlu1 %4229  ;;  %4575 = vrot.lane.b32.xlu0 %v9188_v6, %s8054_s20  ;;  %v2256_v60 = vpop.f32.mrb[222].mxu0  ;;  %v9194_v5 = vmax.bf16 %v3555_v3, %v3554_v55  ;;  %v4412_v23 = vsel %vm4404_vm2, %v4307_v20, %v4122_v33  ;;  %v3634_v19 = vpack.c.bf16 %v7586_v16, %v7584_v32  ;;  %v2886_v55 = vadd.f32 %v8920_v41, %v2885_v21  ;;  %v7151_v16 = vld [vmem:[#allocation3 + $0x298] sm:$0xff]  }
 0x2b5   :  { %v2257_v4 = vadd.f32 %v8920_v41, %v2256_v60  ;;  %v6540_v54 = vpop.f32.mrb[223].mxu0  ;;  %7595 = vtanh.f32 %v2254_v9  ;;  %v6855_v24 = vpop.f32.mrb[137].mxu1  ;;  %v9202_v31 = vsel %vm4477_vm4, %v4412_v23, %v4230_v40  ;;  %4872 = vmatpush1.bf16.msra.mxu1 %v7185_v12 }
 0x2b6   :  { %10874 = vst [vmem:[#allocation43_spill] sm:$0xff] %v9194_v5  ;;  %10875 = vst [vmem:[#allocation44_spill] sm:$0xff] %v9202_v31  ;;  %v2888_v35 = vpop.f32.mrb[138].mxu1  ;;  %v9213_v8 = vmax.bf16 %v3634_v19, %v3633_v51  ;;  %4873 = vmatprep.subr.bf16.mxu1 %v10863_v17 }
 0x2b7   :  { %7597 = vtanh.f32 %v2257_v4  ;;  %6646 = vmatmul.mubr.msk.bf16.gmra.mrb[72].mxu0 %vm1271_vm1, %v7149_v62  ;;  %v7588_v22 = vpop.eup %7587  ;;  %v2889_v33 = vadd.f32 %v8920_v41, %v2888_v35  ;;  %v6856_v52 = vpop.f32.mrb[139].mxu1  ;;  %6962 = vmatmul.mubr.msk.bf16.gmra.mrb[244].mxu1 %vm1271_vm1, %v7186_v1  ;;  %v7188_v35 = vld [vmem:[#allocation3 + $0x510] sm:$0xff]  }
 0x2b8   :  { %4579 = vrot.lane.b32.xlu0 %v9202_v31, %s8054_s20  ;;  %6649 = vmatprep.mubr.msk.bf16.mxu0 %vm8057_vm0, %v10840_v28  ;;  %10876 = vst [vmem:[#allocation45_spill] sm:$0xff] %v9213_v8  ;;  %7599 = vtanh.f32 %v2886_v55  ;;  %v2893_v54 = vpop.f32.mrb[140].mxu1  ;;  %v7182_v8 = vld [vmem:[#allocation3 + $0x308] sm:$0xff]  }
 0x2b9   :  { %7601 = vtanh.f32 %v2889_v33  ;;  %6965 = vmatprep.mubr.msk.bf16.mxu1 %vm8057_vm0, %v10840_v28  ;;  %v6859_v21 = vpop.f32.mrb[141].mxu1  ;;  %v2894_v24 = vadd.f32 %v8920_v41, %v2893_v54 }
 0x2ba   :  { %v7590_v32 = vpop.eup %7589  ;;  %v2261_v11 = vpop.f32.mrb[224].mxu0 }
 0x2bb   :  { %v3556_v26 = vpack.c.bf16 %v7590_v32, %v7588_v22  ;;  %v7592_v9 = vpop.eup %7591  ;;  %v2262_v38 = vadd.f32 %v8920_v41, %v2261_v11  ;;  %v6543_v62 = vpop.f32.mrb[225].mxu0 }
 0x2bc   :  { %v7594_v51 = vpop.eup %7593  ;;  %v2264_v40 = vpop.f32.mrb[226].mxu0  ;;  %v7153_v62 = vld [vmem:[#allocation3 + $0x2a0] sm:$0xff]  }
 0x2bd   :  { %v9220_v60 = vmax.bf16 %v3556_v26, %v3555_v3  ;;  %v2265_v20 = vadd.f32 %v8920_v41, %v2264_v40  ;;  %v6544_v4 = vpop.f32.mrb[227].mxu0  ;;  %7603 = vtanh.f32 %v2262_v38  ;;  %v3635_v23 = vpack.c.bf16 %v7594_v51, %v7592_v9  ;;  %v2896_v55 = vpop.f32.mrb[142].mxu1 }
 0x2be   :  { %v2897_v3 = vadd.f32 %v8920_v41, %v2896_v55  ;;  %v6860_v22 = vpop.f32.mrb[143].mxu1 }
 0x2bf   :  { %7605 = vtanh.f32 %v2265_v20  ;;  %6650 = vmatmul.mubr.msk.bf16.gmra.mrb[76].mxu0 %vm1271_vm1, %v7151_v16  ;;  %v7596_v12 = vpop.eup %7595  ;;  %v9228_v33 = vmax.bf16 %v3635_v23, %v3634_v19  ;;  %6966 = vmatmul.mubr.msk.bf16.gmra.mrb[248].mxu1 %vm1271_vm1, %v7188_v35  ;;  %v2901_v54 = vpop.f32.mrb[144].mxu1 }
 0x2c0   :  { %6653 = vmatprep.mubr.msk.bf16.mxu0 %vm8057_vm0, %v10840_v28  ;;  %7607 = vtanh.f32 %v2894_v24  ;;  %6969 = vmatprep.mubr.msk.bf16.mxu1 %vm8057_vm0, %v10840_v28  ;;  %v6863_v24 = vpop.f32.mrb[145].mxu1 }
 0x2c1   :  { %10877 = vst [vmem:[#allocation46_spill] sm:$0xff] %v9228_v33  ;;  %v7598_v1 = vpop.eup %7597  ;;  %7609 = vtanh.f32 %v2897_v3  ;;  %v2904_v35 = vpop.f32.mrb[146].mxu1 }
 0x2c2   :  { %v2269_v52 = vpop.f32.mrb[228].mxu0  ;;  %v3557_v32 = vpack.c.bf16 %v7598_v1, %v7596_v12  ;;  %v7600_v11 = vpop.eup %7599  ;;  %v7189_v12 = vld [vmem:[#allocation3 + $0x518] sm:$0xff]  }
 0x2c3   :  { %v2270_v9 = vadd.f32 %v8920_v41, %v2269_v52  ;;  %v6547_v38 = vpop.f32.mrb[229].mxu0  ;;  %v7602_v16 = vpop.eup %7601 }
 0x2c4   :  { %v2272_v51 = vpop.f32.mrb[230].mxu0  ;;  %v9234_v40 = vmax.bf16 %v3557_v32, %v3556_v26  ;;  %v3636_v21 = vpack.c.bf16 %v7602_v16, %v7600_v11  ;;  %v6864_v52 = vpop.f32.mrb[147].mxu1 }
 0x2c5   :  { %v2273_v19 = vadd.f32 %v8920_v41, %v2272_v51  ;;  %v6548_v20 = vpop.f32.mrb[231].mxu0  ;;  %7611 = vtanh.f32 %v2270_v9  ;;  %v9246_v41 = vld [vmem:[%s10733_s2] ss:$0 sm:$0xff]  ;;  %v3863_v9 = vmax.bf16 %v9194_v5, %v8891_v37  ;;  %v7184_v5 = vld [vmem:[#allocation3 + $0x310] sm:$0xff]  }
 0x2c6   :  { %10878 = vst [vmem:[#allocation47_spill] sm:$0xff] %v9234_v40  ;;  %v3865_v4 = vmax.bf16 %v9234_v40, %v8945_v48  ;;  %v2902_v26 = vadd.f32 %v9246_v41, %v2901_v54  ;;  %v9249_v3 = vmax.bf16 %v3636_v21, %v3635_v23  ;;  %v2905_v1 = vadd.f32 %v9246_v41, %v2904_v35 }
 0x2c7   :  { %7613 = vtanh.f32 %v2273_v19  ;;  %6654 = vmatmul.mubr.msk.bf16.gmra.mrb[80].mxu0 %vm1271_vm1, %v7153_v62  ;;  %v7604_v55 = vpop.eup %7603  ;;  %6970 = vmatmul.mubr.msk.bf16.gmra.mrb[252].mxu1 %vm1271_vm1, %v7189_v12  ;;  %v7155_v19 = vld [vmem:[#allocation3 + $0x2a8] sm:$0xff]   ;;  %v2909_v12 = vpop.f32.mrb[148].mxu1 }
 0x2c8   :  { %4129 = vrot.lane.b32.xlu1 %v3865_v4, %s8059_s14  ;;  %6657 = vmatprep.mubr.msk.bf16.mxu0 %vm8057_vm0, %v10840_v28  ;;  %10879 = vst [vmem:[#allocation48_spill] sm:$0xff] %v9249_v3  ;;  %7615 = vtanh.f32 %v2902_v26  ;;  %v3864_v26 = vmax.bf16 %v9220_v60, %v8915_v50 }
 0x2c9   :  { %v7606_v22 = vpop.eup %7605  ;;  %7617 = vtanh.f32 %v2905_v1  ;;  %6973 = vmatprep.mubr.msk.bf16.mxu1 %vm8057_vm0, %v10840_v28  ;;  %v10880_v1 = vmax.bf16 %v8328_v56, %v8316_v44 }
 0x2ca   :  { %v2277_v11 = vpop.f32.mrb[232].mxu0  ;;  %v3558_v38 = vpack.c.bf16 %v7606_v22, %v7604_v55  ;;  %v7608_v16 = vpop.eup %7607 }
 0x2cb   :  { %v2278_v51 = vadd.f32 %v9246_v41, %v2277_v11  ;;  %v6551_v23 = vpop.f32.mrb[233].mxu0  ;;  %v7610_v20 = vpop.eup %7609  ;;  %v3831_v52 = vmax.bf16 %v8485_v30, %v10880_v1 }
 0x2cc   :  { %4127 = vrot.lane.b32.xlu1 %v3863_v9, %s8059_s14  ;;  %v2280_v4 = vpop.f32.mrb[234].mxu0  ;;  %v9261_v54 = vmax.bf16 %v3558_v38, %v3557_v32  ;;  %v3637_v22 = vpack.c.bf16 %v7610_v20, %v7608_v16  ;;  %v2910_v32 = vadd.f32 %v9246_v41, %v2909_v12  ;;  %v6867_v11 = vpop.f32.mrb[149].mxu1  ;;  %v7190_v9 = vld [vmem:[#allocation3 + $0x520] sm:$0xff]  }
 0x2cd   :  { %v2281_v24 = vadd.f32 %v9246_v41, %v2280_v4  ;;  %v6552_v55 = vpop.f32.mrb[235].mxu0  ;;  %7619 = vtanh.f32 %v2278_v51  ;;  %v2912_v50 = vpop.f32.mrb[150].mxu1  ;;  %v4304_v44 = vsel %vm4295_vm3, %v3831_v52, %v9072_v43 }
 0x2ce   :  { %v3866_v35 = vmax.bf16 %v9261_v54, %v8965_v0  ;;  %v9276_v0 = vmax.bf16 %v3637_v22, %v3636_v21  ;;  %v2913_v56 = vadd.f32 %v9246_v41, %v2912_v50  ;;  %v6868_v30 = vpop.f32.mrb[151].mxu1  ;;  %v4410_v23 = vsel %vm4404_vm2, %v4304_v44, %v9141_v13 }
 0x2cf   :  { %7621 = vtanh.f32 %v2281_v24  ;;  %6658 = vmatmul.mubr.msk.bf16.gmra.mrb[84].mxu0 %vm1271_vm1, %v7155_v19  ;;  %v7612_v51 = vpop.eup %7611  ;;  %6974 = vmatmul.mubr.msk.bf16.gmra.mrb[0].mxu1 %vm1271_vm1, %v7190_v9  ;;  %v9289_v43 = vsel %vm4477_vm4, %v4410_v23, %v9159_v25  ;;  %v7158_v24 = vld [vmem:[#allocation3 + $0x2b0] sm:$0xff]   ;;  %v2917_v52 = vpop.f32.mrb[152].mxu1  ;;  %v7192_v30 = vld [vmem:[#allocation3 + $0x528] sm:$0xff]  }
 0x2d0   :  { %4235 = vrot.lane.b32.xlu1 %v3864_v26, %s8060_s15  ;;  %4237 = vrot.lane.b32.xlu0 %v3866_v35, %s8060_s15  ;;  %10881 = vst [vmem:[#allocation49_spill] sm:$0xff] %v9276_v0  ;;  %7623 = vtanh.f32 %v2910_v32  ;;  %10882 = vst [vmem:[#allocation50_spill] sm:$0xff] %v9289_v43  ;;  %v2918_v11 = vadd.f32 %v9246_v41, %v2917_v52  ;;  %v6871_v9 = vpop.f32.mrb[153].mxu1 }
 0x2d1   :  { %v7614_v16 = vpop.eup %7613  ;;  %6661 = vmatprep.mubr.msk.bf16.mxu0 %vm8057_vm0, %v10840_v28  ;;  %7625 = vtanh.f32 %v2913_v56  ;;  %6977 = vmatprep.mubr.msk.bf16.mxu1 %vm8057_vm0, %v10840_v28  ;;  %v7191_v56 = vld [vmem:[%s10734_s3 + $0x20] sm:$0xff]  }
 0x2d2   :  { %v2285_v19 = vpop.f32.mrb[236].mxu0  ;;  %v3559_v20 = vpack.c.bf16 %v7614_v16, %v7612_v51  ;;  %v7616_v55 = vpop.eup %7615  ;;  %4874 = vmatpush1.bf16.msra.mxu1 %v7191_v56  ;;  %v7193_v56 = vld [vmem:[#allocation3 + $0x530] sm:$0xff]  }
 0x2d3   :  { %v2286_v21 = vadd.f32 %v9246_v41, %v2285_v19  ;;  %v6555_v4 = vpop.f32.mrb[237].mxu0  ;;  %v7618_v35 = vpop.eup %7617  ;;  %4875 = vmatprep.subr.bf16.mxu1 %v10863_v17 }
 0x2d4   :  { %4577 = vrot.lane.b32.xlu1 %v9289_v43, %s8054_s20  ;;  %v2288_v13 = vpop.f32.mrb[238].mxu0  ;;  %v9295_v26 = vmax.bf16 %v3559_v20, %v3558_v38  ;;  %v3638_v32 = vpack.c.bf16 %v7618_v35, %v7616_v55  ;;  %v2920_v38 = vpop.f32.mrb[154].mxu1 }
 0x2d5   :  { %v2289_v12 = vadd.f32 %v9246_v41, %v2288_v13  ;;  %v6556_v1 = vpop.f32.mrb[239].mxu0  ;;  %7627 = vtanh.f32 %v2286_v21  ;;  %v2921_v44 = vadd.f32 %v9246_v41, %v2920_v38  ;;  %v6872_v23 = vpop.f32.mrb[155].mxu1  ;;  %v7160_v13 = vld [vmem:[#allocation3 + $0x2b8] sm:$0xff]  }
 0x2d6   :  { %10883 = vst [vmem:[#allocation51_spill] sm:$0xff] %v9295_v26  ;;  %v3867_v25 = vmax.bf16 %v9295_v26, %v8990_v59  ;;  %v9305_v50 = vmax.bf16 %v3638_v32, %v3637_v22 }
 0x2d7   :  { %7629 = vtanh.f32 %v2289_v12  ;;  %6662 = vmatmul.mubr.msk.bf16.gmra.mrb[88].mxu0 %vm1271_vm1, %v7158_v24  ;;  %v7620_v51 = vpop.eup %7619  ;;  %6978 = vmatmul.mubr.msk.bf16.gmra.mrb[4].mxu1 %vm1271_vm1, %v7192_v30 }
 0x2d8   :  { %4131 = vrot.lane.b32.xlu0 %v3867_v25, %s8059_s14  ;;  %6665 = vmatprep.mubr.msk.bf16.mxu0 %vm8057_vm0, %v10840_v28  ;;  %10884 = vst [vmem:[#allocation52_spill] sm:$0xff] %v9305_v50  ;;  %7631 = vtanh.f32 %v2918_v11 }
 0x2d9   :  { %v7622_v16 = vpop.eup %7621  ;;  %7633 = vtanh.f32 %v2921_v44  ;;  %6981 = vmatprep.mubr.msk.bf16.mxu1 %vm8057_vm0, %v10840_v28  ;;  %v2925_v9 = vpop.f32.mrb[156].mxu1 }
 0x2da   :  { %v2293_v19 = vpop.f32.mrb[240].mxu0  ;;  %v3560_v21 = vpack.c.bf16 %v7622_v16, %v7620_v51  ;;  %v7624_v24 = vpop.eup %7623 }
 0x2db   :  { %v2294_v55 = vadd.f32 %v9246_v41, %v2293_v19  ;;  %v6559_v22 = vpop.f32.mrb[241].mxu0  ;;  %v7626_v1 = vpop.eup %7625 }
 0x2dc   :  { %v2296_v35 = vpop.f32.mrb[242].mxu0  ;;  %v9314_v12 = vmax.bf16 %v3560_v21, %v3559_v20  ;;  %v3639_v51 = vpack.c.bf16 %v7626_v1, %v7624_v24  ;;  %v2926_v20 = vadd.f32 %v9246_v41, %v2925_v9  ;;  %v6875_v38 = vpop.f32.mrb[157].mxu1  ;;  %v7162_v1 = vld [vmem:[#allocation3 + $0x2c0] sm:$0xff]  }
 0x2dd   :  { %v2297_v25 = vadd.f32 %v9246_v41, %v2296_v35  ;;  %v6560_v52 = vpop.f32.mrb[243].mxu0  ;;  %7635 = vtanh.f32 %v2294_v55  ;;  %v2928_v44 = vpop.f32.mrb[158].mxu1 }
 0x2de   :  { %v3868_v11 = vmax.bf16 %v9314_v12, %v9008_v46  ;;  %v9328_v30 = vmax.bf16 %v3639_v51, %v3638_v32  ;;  %v2929_v46 = vadd.f32 %v9246_v41, %v2928_v44  ;;  %v6876_v19 = vpop.f32.mrb[159].mxu1 }
 0x2df   :  { %7637 = vtanh.f32 %v2297_v25  ;;  %6666 = vmatmul.mubr.msk.bf16.gmra.mrb[92].mxu0 %vm1271_vm1, %v7160_v13  ;;  %v7628_v16 = vpop.eup %7627  ;;  %6982 = vmatmul.mubr.msk.bf16.gmra.mrb[8].mxu1 %vm1271_vm1, %v7193_v56 }
 0x2e0   :  { %4239 = vrot.lane.b32.xlu0 %v3868_v11, %s8060_s15  ;;  %6669 = vmatprep.mubr.msk.bf16.mxu0 %vm8057_vm0, %v10840_v28  ;;  %10885 = vst [vmem:[#allocation53_spill] sm:$0xff] %v9328_v30  ;;  %7639 = vtanh.f32 %v2926_v20 }
 0x2e1   :  { %v7630_v23 = vpop.eup %7629  ;;  %7641 = vtanh.f32 %v2929_v46  ;;  %6985 = vmatprep.mubr.msk.bf16.mxu1 %vm8057_vm0, %v10840_v28  ;;  %v2933_v38 = vpop.f32.mrb[160].mxu1  ;;  %v7194_v46 = vld [vmem:[#allocation3 + $0x538] sm:$0xff]  }
 0x2e2   :  { %v2301_v24 = vpop.f32.mrb[244].mxu0  ;;  %v3561_v55 = vpack.c.bf16 %v7630_v23, %v7628_v16  ;;  %v7632_v22 = vpop.eup %7631 }
 0x2e3   :  { %v2302_v13 = vadd.f32 %v9246_v41, %v2301_v24  ;;  %v6563_v35 = vpop.f32.mrb[245].mxu0  ;;  %v7634_v32 = vpop.eup %7633 }
 0x2e4   :  { %v2304_v25 = vpop.f32.mrb[246].mxu0  ;;  %v9332_v52 = vmax.bf16 %v3561_v55, %v3560_v21  ;;  %v3640_v16 = vpack.c.bf16 %v7634_v32, %v7632_v22  ;;  %v2934_v21 = vadd.f32 %v9246_v41, %v2933_v38  ;;  %v6879_v44 = vpop.f32.mrb[161].mxu1 }
 0x2e5   :  { %v2305_v11 = vadd.f32 %v9246_v41, %v2304_v25  ;;  %v6564_v9 = vpop.f32.mrb[247].mxu0  ;;  %7643 = vtanh.f32 %v2302_v13  ;;  %v2936_v23 = vpop.f32.mrb[162].mxu1 }
 0x2e6   :  { %10886 = vst [vmem:[#allocation54_spill] sm:$0xff] %v9332_v52  ;;  %v3869_v20 = vmax.bf16 %v9332_v52, %v9031_v14  ;;  %v9345_v19 = vmax.bf16 %v3640_v16, %v3639_v51  ;;  %v2937_v22 = vadd.f32 %v9246_v41, %v2936_v23  ;;  %v6880_v13 = vpop.f32.mrb[163].mxu1 }
 0x2e7   :  { %7645 = vtanh.f32 %v2305_v11  ;;  %6670 = vmatmul.mubr.msk.bf16.gmra.mrb[96].mxu0 %vm1271_vm1, %v7162_v1  ;;  %v7636_v56 = vpop.eup %7635  ;;  %6986 = vmatmul.mubr.msk.bf16.gmra.mrb[12].mxu1 %vm1271_vm1, %v7194_v46 }
 0x2e8   :  { %4133 = vrot.lane.b32.xlu0 %v3869_v20, %s8059_s14  ;;  %6673 = vmatprep.mubr.msk.bf16.mxu0 %vm8057_vm0, %v10840_v28  ;;  %10887 = vst [vmem:[#allocation55_spill] sm:$0xff] %v9345_v19  ;;  %7647 = vtanh.f32 %v2934_v21  ;;  %v7164_v20 = vld [vmem:[#allocation3 + $0x2c8] sm:$0xff]  }
 0x2e9   :  { %v7638_v24 = vpop.eup %7637  ;;  %7649 = vtanh.f32 %v2937_v22  ;;  %6989 = vmatprep.mubr.msk.bf16.mxu1 %vm8057_vm0, %v10840_v28 }
 0x2ea   :  { %v2309_v35 = vpop.f32.mrb[248].mxu0  ;;  %v3562_v1 = vpack.c.bf16 %v7638_v24, %v7636_v56  ;;  %v7640_v32 = vpop.eup %7639 }
 0x2eb   :  { %v2310_v11 = vadd.f32 %v9246_v41, %v2309_v35  ;;  %v6567_v9 = vpop.f32.mrb[249].mxu0  ;;  %v7642_v51 = vpop.eup %7641 }
 0x2ec   :  { %v2312_v38 = vpop.f32.mrb[250].mxu0  ;;  %v9351_v44 = vmax.bf16 %v3562_v1, %v3561_v55  ;;  %v2941_v24 = vpop.f32.mrb[164].mxu1  ;;  %v3641_v13 = vpack.c.bf16 %v7642_v51, %v7640_v32  ;;  %v7195_v9 = vld [vmem:[#allocation3 + $0x540] sm:$0xff]  }
 0x2ed   :  { %v2313_v21 = vadd.f32 %v9246_v41, %v2312_v38  ;;  %v6568_v23 = vpop.f32.mrb[251].mxu0  ;;  %7651 = vtanh.f32 %v2310_v11  ;;  %v2942_v55 = vadd.f32 %v9246_v41, %v2941_v24  ;;  %v6883_v22 = vpop.f32.mrb[165].mxu1 }
 0x2ee   :  { %v3870_v56 = vmax.bf16 %v9351_v44, %v9052_v61  ;;  %v2944_v35 = vpop.f32.mrb[166].mxu1  ;;  %v9364_v11 = vmax.bf16 %v3641_v13, %v3640_v16  ;;  %v7167_v22 = vld [vmem:[#allocation3 + $0x2d0] sm:$0xff]  }
 0x2ef   :  { %7653 = vtanh.f32 %v2313_v21  ;;  %6674 = vmatmul.mubr.msk.bf16.gmra.mrb[100].mxu0 %vm1271_vm1, %v7164_v20  ;;  %v7644_v46 = vpop.eup %7643  ;;  %v2945_v61 = vadd.f32 %v9246_v41, %v2944_v35  ;;  %v6884_v32 = vpop.f32.mrb[167].mxu1  ;;  %6990 = vmatmul.mubr.msk.bf16.gmra.mrb[16].mxu1 %vm1271_vm1, %v7195_v9 }
 0x2f0   :  { %4241 = vrot.lane.b32.xlu0 %v3870_v56, %s8060_s15  ;;  %6677 = vmatprep.mubr.msk.bf16.mxu0 %vm8057_vm0, %v10840_v28  ;;  %10888 = vst [vmem:[#allocation56_spill] sm:$0xff] %v9364_v11  ;;  %7655 = vtanh.f32 %v2942_v55 }
 0x2f1   :  { %v7646_v38 = vpop.eup %7645  ;;  %7657 = vtanh.f32 %v2945_v61 }
 0x2f2   :  { %v2317_v51 = vpop.f32.mrb[252].mxu0  ;;  %v3563_v20 = vpack.c.bf16 %v7646_v38, %v7644_v46  ;;  %v7648_v21 = vpop.eup %7647 }
 0x2f3   :  { %v2318_v23 = vadd.f32 %v9246_v41, %v2317_v51  ;;  %v6571_v24 = vpop.f32.mrb[253].mxu0  ;;  %v7650_v16 = vpop.eup %7649 }
 0x2f4   :  { %v2320_v56 = vpop.f32.mrb[254].mxu0  ;;  %v9368_v25 = vmax.bf16 %v3563_v20, %v3562_v1  ;;  %v2949_v46 = vpop.f32.mrb[168].mxu1  ;;  %v3642_v38 = vpack.c.bf16 %v7650_v16, %v7648_v21 }
 0x2f5   :  { %v2321_v4 = vadd.f32 %v9246_v41, %v2320_v56  ;;  %v6572_v55 = vpop.f32.mrb[255].mxu0  ;;  %7659 = vtanh.f32 %v2318_v23  ;;  %v2950_v61 = vadd.f32 %v9246_v41, %v2949_v46  ;;  %v6887_v32 = vpop.f32.mrb[169].mxu1  ;;  %v7169_v46 = vld [vmem:[#allocation3 + $0x2d8] sm:$0xff]  }
 0x2f6   :  { %10889 = vst [vmem:[#allocation57_spill] sm:$0xff] %v9368_v25  ;;  %v3871_v35 = vmax.bf16 %v9368_v25, %v9069_v58  ;;  %v2952_v9 = vpop.f32.mrb[170].mxu1  ;;  %v9379_v51 = vmax.bf16 %v3642_v38, %v3641_v13  ;;  %v7180_v25 = vld [vmem:[#allocation3 + $0x300] sm:$0xff]  }
 0x2f7   :  { %7661 = vtanh.f32 %v2321_v4  ;;  %6678 = vmatmul.mubr.msk.bf16.gmra.mrb[104].mxu0 %vm1271_vm1, %v7167_v22  ;;  %v7652_v1 = vpop.eup %7651  ;;  %v2953_v24 = vadd.f32 %v9246_v41, %v2952_v9  ;;  %v6888_v21 = vpop.f32.mrb[171].mxu1 }
 0x2f8   :  { %4135 = vrot.lane.b32.xlu0 %v3871_v35, %s8059_s14  ;;  %6681 = vmatprep.mubr.msk.bf16.mxu0 %vm8057_vm0, %v10840_v28  ;;  %10890 = vst [vmem:[#allocation58_spill] sm:$0xff] %v9379_v51  ;;  %7663 = vtanh.f32 %v2950_v61 }
 0x2f9   :  { %v7654_v23 = vpop.eup %7653  ;;  %7665 = vtanh.f32 %v2953_v24 }
 0x2fa   :  { %v2325_v4 = vpop.f32.mrb[0].mxu0  ;;  %v3564_v56 = vpack.c.bf16 %v7654_v23, %v7652_v1  ;;  %v7656_v22 = vpop.eup %7655  ;;  %v7196_v1 = vld [vmem:[%s10734_s3 + $0x28] sm:$0xff]  }
 0x2fb   :  { %v2326_v16 = vadd.f32 %v9246_v41, %v2325_v4  ;;  %v6575_v55 = vpop.f32.mrb[1].mxu0  ;;  %v7658_v62 = vpop.eup %7657  ;;  %4876 = vmatpush1.bf16.msra.mxu1 %v7196_v1 }
 0x2fc   :  { %v2328_v35 = vpop.f32.mrb[2].mxu0  ;;  %v9383_v32 = vmax.bf16 %v3564_v56, %v3563_v20  ;;  %v3643_v9 = vpack.c.bf16 %v7658_v62, %v7656_v22  ;;  %v2957_v23 = vpop.f32.mrb[172].mxu1  ;;  %4877 = vmatprep.subr.bf16.mxu1 %v10863_v17 }
 0x2fd   :  { %v2329_v13 = vadd.f32 %v9246_v41, %v2328_v35  ;;  %v6576_v53 = vpop.f32.mrb[3].mxu0  ;;  %7667 = vtanh.f32 %v2326_v16 }
 0x2fe   :  { %v3872_v61 = vmax.bf16 %v9383_v32, %v9087_v2  ;;  %v6891_v53 = vpop.f32.mrb[173].mxu1  ;;  %v9395_v20 = vmax.bf16 %v3643_v9, %v3642_v38  ;;  %v2958_v2 = vadd.f32 %v9246_v41, %v2957_v23 }
 0x2ff   :  { %7669 = vtanh.f32 %v2329_v13  ;;  %6682 = vmatmul.mubr.msk.bf16.gmra.mrb[108].mxu0 %vm1271_vm1, %v7169_v46  ;;  %v7660_v24 = vpop.eup %7659  ;;  %v7171_v46 = vld [vmem:[#allocation3 + $0x2e0] sm:$0xff]  }
 0x300   :  { %4243 = vrot.lane.b32.xlu0 %v3872_v61, %s8060_s15  ;;  %6685 = vmatprep.mubr.msk.bf16.mxu0 %vm8057_vm0, %v10840_v28  ;;  %10891 = vst [vmem:[#allocation59_spill] sm:$0xff] %v9395_v20  ;;  %v2960_v61 = vpop.f32.mrb[174].mxu1  ;;  %7671 = vtanh.f32 %v2958_v2 }
 0x301   :  { %v7662_v21 = vpop.eup %7661  ;;  %v2961_v1 = vadd.f32 %v9246_v41, %v2960_v61  ;;  %v6892_v23 = vpop.f32.mrb[175].mxu1 }
 0x302   :  { %v2333_v62 = vpop.f32.mrb[4].mxu0  ;;  %v3565_v4 = vpack.c.bf16 %v7662_v21, %v7660_v24  ;;  %v7664_v22 = vpop.eup %7663  ;;  %v7173_v23 = vld [vmem:[#allocation3 + $0x2e8] sm:$0xff]  }
 0x303   :  { %v2334_v16 = vadd.f32 %v9246_v41, %v2333_v62  ;;  %v6579_v55 = vpop.f32.mrb[5].mxu0  ;;  %v7666_v53 = vpop.eup %7665 }
 0x304   :  { %v2336_v35 = vpop.f32.mrb[6].mxu0  ;;  %v9400_v13 = vmax.bf16 %v3565_v4, %v3564_v56  ;;  %v2965_v21 = vpop.f32.mrb[176].mxu1  ;;  %v3644_v62 = vpack.c.bf16 %v7666_v53, %v7664_v22 }
 0x305   :  { %v2337_v38 = vadd.f32 %v9246_v41, %v2336_v35  ;;  %v6580_v20 = vpop.f32.mrb[7].mxu0  ;;  %7673 = vtanh.f32 %v2334_v16  ;;  %v2966_v56 = vadd.f32 %v9246_v41, %v2965_v21  ;;  %v6895_v55 = vpop.f32.mrb[177].mxu1 }
 0x306   :  { %10892 = vst [vmem:[#allocation60_spill] sm:$0xff] %v9400_v13  ;;  %v3873_v24 = vmax.bf16 %v9400_v13, %v9111_v27  ;;  %v2968_v20 = vpop.f32.mrb[178].mxu1  ;;  %v9411_v2 = vmax.bf16 %v3644_v62, %v3643_v9  ;;  %v7178_v13 = vld [vmem:[#allocation3 + $0x2f8] sm:$0xff]  }
 0x307   :  { %7675 = vtanh.f32 %v2337_v38  ;;  %6686 = vmatmul.mubr.msk.bf16.gmra.mrb[112].mxu0 %vm1271_vm1, %v7171_v46  ;;  %v7668_v51 = vpop.eup %7667  ;;  %v2969_v22 = vadd.f32 %v9246_v41, %v2968_v20  ;;  %v6896_v35 = vpop.f32.mrb[179].mxu1 }
 0x308   :  { %4137 = vrot.lane.b32.xlu0 %v3873_v24, %s8059_s14  ;;  %6689 = vmatprep.mubr.msk.bf16.mxu0 %vm8057_vm0, %v10840_v28  ;;  %7677 = vtanh.f32 %v2961_v1  ;;  %10893 = vst [vmem:[#allocation61_spill] sm:$0xff] %v9411_v2 }
 0x309   :  { %v7670_v16 = vpop.eup %7669  ;;  %7679 = vtanh.f32 %v2966_v56  ;;  %v2973_v62 = vpop.f32.mrb[180].mxu1 }
 0x30a   :  { %v2341_v61 = vpop.f32.mrb[8].mxu0  ;;  %v3566_v46 = vpack.c.bf16 %v7670_v16, %v7668_v51  ;;  %7681 = vtanh.f32 %v2969_v22  ;;  %v7672_v56 = vpop.eup %7671  ;;  %v2974_v51 = vadd.f32 %v9246_v41, %v2973_v62 }
 0x30b   :  { %v2342_v53 = vadd.f32 %v9246_v41, %v2341_v61  ;;  %v6583_v38 = vpop.f32.mrb[9].mxu0  ;;  %v6899_v20 = vpop.f32.mrb[181].mxu1 }
 0x30c   :  { %v2344_v24 = vpop.f32.mrb[10].mxu0  ;;  %v9415_v21 = vmax.bf16 %v3566_v46, %v3565_v4  ;;  %v2976_v4 = vpop.f32.mrb[182].mxu1 }
 0x30d   :  { %v2345_v1 = vadd.f32 %v9246_v41, %v2344_v24  ;;  %v6584_v55 = vpop.f32.mrb[11].mxu0  ;;  %7683 = vtanh.f32 %v2342_v53  ;;  %v2977_v35 = vadd.f32 %v9246_v41, %v2976_v4  ;;  %v6900_v61 = vpop.f32.mrb[183].mxu1 }
 0x30e   :  { %v3874_v9 = vmax.bf16 %v9415_v21, %v9132_v34  ;;  %v7197_v34 = vld [vmem:[%s10734_s3 + $0x30] sm:$0xff]   ;;  %v9429_v53 = vpop.permute.xlu0 %4019  ;;  %v7198_v61 = vld [vmem:[%s10734_s3 + $0x38] sm:$0xff]  }
 0x30f   :  { %7685 = vtanh.f32 %v2345_v1  ;;  %6690 = vmatmul.mubr.msk.bf16.gmra.mrb[116].mxu0 %vm1271_vm1, %v7173_v23  ;;  %v7674_v16 = vpop.eup %7673  ;;  %4878 = vmatpush1.bf16.msra.mxu1 %v7197_v34 }
 0x310   :  { %4245 = vrot.lane.b32.xlu0 %v3874_v9, %s8060_s15  ;;  %6693 = vmatprep.mubr.msk.bf16.mxu0 %vm8057_vm0, %v10840_v28  ;;  %7687 = vtanh.f32 %v2974_v51  ;;  %v7176_v9 = vld [vmem:[#allocation3 + $0x2f0] sm:$0xff]  }
 0x311   :  { %v7676_v22 = vpop.eup %7675  ;;  %7689 = vtanh.f32 %v2977_v35  ;;  %4879 = vmatprep.subr.bf16.mxu1 %v10863_v17 }
 0x312   :  { %v7678_v46 = vpop.eup %7677  ;;  %v2349_v38 = vpop.f32.mrb[12].mxu0  ;;  %v3567_v23 = vpack.c.bf16 %v7676_v22, %v7674_v16 }
 0x313   :  { %v7680_v24 = vpop.eup %7679  ;;  %v2350_v1 = vadd.f32 %v9246_v41, %v2349_v38  ;;  %v6587_v55 = vpop.f32.mrb[13].mxu0  ;;  %v3645_v38 = vpack.c.bf16 %v7678_v46, %v7672_v56  ;;  %4880 = vmatpush1.bf16.msra.mxu1 %v7198_v61  ;;  %v7199_v46 = vld [vmem:[%s10734_s3 + $0x40] sm:$0xff]  }
 0x314   :  { %v2352_v62 = vpop.f32.mrb[14].mxu0  ;;  %v7682_v51 = vpop.eup %7681  ;;  %4881 = vmatprep.subr.bf16.mxu1 %v10863_v17 }
 0x315   :  { %v2353_v20 = vadd.f32 %v9246_v41, %v2352_v62  ;;  %v6588_v4 = vpop.f32.mrb[15].mxu0  ;;  %v9437_v2 = vpop.permute.xlu0 %4021  ;;  %7691 = vtanh.f32 %v2350_v1  ;;  %v3646_v22 = vpack.c.bf16 %v7682_v51, %v7680_v24 }
 0x316   :  { %v2981_v16 = vpop.f32.mrb[184].mxu1 }
 0x317   :  { %7693 = vtanh.f32 %v2353_v20  ;;  %6694 = vmatmul.mubr.msk.bf16.gmra.mrb[120].mxu0 %vm1271_vm1, %v7176_v9  ;;  %v2982_v35 = vadd.f32 %v9246_v41, %v2981_v16  ;;  %v6903_v34 = vpop.f32.mrb[185].mxu1  ;;  %v7684_v55 = vpop.eup %7683  ;;  %v9444_v4 = vmax.bf16 %v3646_v22, %v3645_v38  ;;  %4882 = vmatpush1.bf16.msra.mxu1 %v7199_v46 }
 0x318   :  { %6697 = vmatprep.mubr.msk.bf16.mxu0 %vm8057_vm0, %v10840_v28  ;;  %v2984_v62 = vpop.f32.mrb[186].mxu1  ;;  %4883 = vmatprep.subr.bf16.mxu1 %v10863_v17 }
 0x319   :  { %10894 = vst [vmem:[#allocation62_spill] sm:$0xff] %v9444_v4  ;;  %v7686_v1 = vpop.eup %7685  ;;  %7695 = vtanh.f32 %v2982_v35  ;;  %v2985_v56 = vadd.f32 %v9246_v41, %v2984_v62  ;;  %v6904_v24 = vpop.f32.mrb[187].mxu1 }
 0x31a   :  { %v9450_v9 = vpop.permute.xlu0 %4023  ;;  %v2357_v51 = vpop.f32.mrb[16].mxu0  ;;  %v3568_v20 = vpack.c.bf16 %v7686_v1, %v7684_v55  ;;  %v7200_v55 = vld [vmem:[%s10734_s3 + $0x48] sm:$0xff]  }
 0x31b   :  { %v7688_v61 = vpop.eup %7687  ;;  %v2358_v16 = vadd.f32 %v9246_v41, %v2357_v51  ;;  %v6591_v34 = vpop.f32.mrb[17].mxu0  ;;  %7697 = vtanh.f32 %v2985_v56  ;;  %4884 = vmatpush1.bf16.msra.mxu1 %v7200_v55 }
 0x31c   :  { %v2360_v38 = vpop.f32.mrb[18].mxu0  ;;  %v9454_v35 = vmax.bf16 %v3568_v20, %v3567_v23  ;;  %v7690_v62 = vpop.eup %7689  ;;  %4885 = vmatprep.subr.bf16.mxu1 %v10863_v17 }
 0x31d   :  { %v2361_v4 = vadd.f32 %v9246_v41, %v2360_v38  ;;  %v6592_v24 = vpop.f32.mrb[19].mxu0  ;;  %7699 = vtanh.f32 %v2358_v16  ;;  %v2989_v51 = vpop.f32.mrb[188].mxu1  ;;  %v3647_v34 = vpack.c.bf16 %v7690_v62, %v7688_v61 }
 0x31e   :  { %v9460_v1 = vpop.permute.xlu0 %4025  ;;  %v2990_v56 = vadd.f32 %v9246_v41, %v2989_v51  ;;  %v6907_v23 = vpop.f32.mrb[189].mxu1 }
 0x31f   :  { %7701 = vtanh.f32 %v2361_v4  ;;  %6698 = vmatmul.mubr.msk.bf16.gmra.mrb[124].mxu0 %vm1271_vm1, %v7178_v13  ;;  %v7692_v46 = vpop.eup %7691  ;;  %v2992_v38 = vpop.f32.mrb[190].mxu1  ;;  %v9467_v24 = vmax.bf16 %v3647_v34, %v3646_v22  ;;  %v7201_v13 = vld [vmem:[%s10734_s3 + $0x50] sm:$0xff]  }
 0x320   :  { %6701 = vmatprep.mubr.msk.bf16.mxu0 %vm8057_vm0, %v10840_v28  ;;  %7703 = vtanh.f32 %v2990_v56  ;;  %v2993_v61 = vadd.f32 %v9246_v41, %v2992_v38  ;;  %v6908_v4 = vpop.f32.mrb[191].mxu1  ;;  %4886 = vmatpush1.bf16.msra.mxu1 %v7201_v13 }
 0x321   :  { %10895 = vst [vmem:[#allocation63_spill] sm:$0xff] %v9467_v24  ;;  %v7694_v11 = vpop.eup %7693  ;;  %4887 = vmatprep.subr.bf16.mxu1 %v10863_v17 }
 0x322   :  { %v9473_v16 = vpop.permute.xlu0 %4027  ;;  %v2365_v62 = vpop.f32.mrb[20].mxu0  ;;  %v3569_v55 = vpack.c.bf16 %v7694_v11, %v7692_v46  ;;  %7705 = vtanh.f32 %v2993_v61  ;;  %v7202_v11 = vld [vmem:[%s10734_s3 + $0x58] sm:$0xff]  }
 0x323   :  { %v7696_v23 = vpop.eup %7695  ;;  %v2366_v22 = vadd.f32 %v9246_v41, %v2365_v62  ;;  %v6595_v19 = vpop.f32.mrb[21].mxu0 }
 0x324   :  { %v2368_v56 = vpop.f32.mrb[22].mxu0  ;;  %v9478_v38 = vmax.bf16 %v3569_v55, %v3568_v20  ;;  %v2997_v19 = vpop.f32.mrb[192].mxu1  ;;  %4888 = vmatpush1.bf16.msra.mxu1 %v7202_v11 }
 0x325   :  { %v7698_v4 = vpop.eup %7697  ;;  %v2369_v63 = vadd.f32 %v9246_v41, %v2368_v56  ;;  %v6596_v52 = vpop.f32.mrb[23].mxu0  ;;  %7707 = vtanh.f32 %v2366_v22  ;;  %v2998_v20 = vadd.f32 %v9246_v41, %v2997_v19  ;;  %4889 = vmatprep.subr.bf16.mxu1 %v10863_v17  ;;  %v7203_v22 = vld [vmem:[%s10734_s3 + $0x60] sm:$0xff]  }
 0x326   :  { %v9485_v46 = vpop.permute.xlu0 %4029  ;;  %v3648_v62 = vpack.c.bf16 %v7698_v4, %v7696_v23  ;;  %v6911_v61 = vpop.f32.mrb[193].mxu1 }
 0x327   :  { %7709 = vtanh.f32 %v2369_v63  ;;  %6702 = vmatmul.mubr.msk.bf16.gmra.mrb[128].mxu0 %vm1271_vm1, %v7180_v25  ;;  %v7700_v13 = vpop.eup %7699  ;;  %v3000_v52 = vpop.f32.mrb[194].mxu1 }
 0x328   :  { %6705 = vmatprep.mubr.msk.bf16.mxu0 %vm8057_vm0, %v10840_v28  ;;  %v9495_v56 = vmax.bf16 %v3648_v62, %v3647_v34  ;;  %7711 = vtanh.f32 %v2998_v20  ;;  %v3001_v25 = vadd.f32 %v9246_v41, %v3000_v52  ;;  %v6912_v23 = vpop.f32.mrb[195].mxu1  ;;  %4890 = vmatpush1.bf16.msra.mxu1 %v7203_v22 }
 0x329   :  { %v7702_v63 = vpop.eup %7701  ;;  %4891 = vmatprep.subr.bf16.mxu1 %v10863_v17 }
 0x32a   :  { %10896 = vst [vmem:[#allocation64_spill] sm:$0xff] %v9495_v56  ;;  %v2373_v4 = vpop.f32.mrb[24].mxu0  ;;  %v3570_v11 = vpack.c.bf16 %v7702_v63, %v7700_v13  ;;  %v7704_v19 = vpop.eup %7703  ;;  %7713 = vtanh.f32 %v3001_v25  ;;  %v7204_v13 = vld [vmem:[%s10734_s3 + $0x68] sm:$0xff]  }
 0x32b   :  { %v2374_v61 = vadd.f32 %v9246_v41, %v2373_v4  ;;  %v6599_v51 = vpop.f32.mrb[25].mxu0  ;;  %v9499_v30 = vpop.permute.xlu0 %4115 }
 0x32c   :  { %v2376_v18 = vpop.f32.mrb[26].mxu0  ;;  %v9501_v0 = vmax.bf16 %v3570_v11, %v3569_v55  ;;  %v7706_v34 = vpop.eup %7705  ;;  %4892 = vmatpush1.bf16.msra.mxu1 %v7204_v13 }
 0x32d   :  { %v2377_v20 = vadd.f32 %v9246_v41, %v2376_v18  ;;  %v6600_v52 = vpop.f32.mrb[27].mxu0  ;;  %7715 = vtanh.f32 %v2374_v61  ;;  %v3005_v51 = vpop.f32.mrb[196].mxu1  ;;  %v3649_v63 = vpack.c.bf16 %v7706_v34, %v7704_v19  ;;  %4893 = vmatprep.subr.bf16.mxu1 %v10863_v17 }
 0x32e   :  { %v9508_v25 = vpop.permute.xlu1 %4123  ;;  %v3006_v55 = vadd.f32 %v9246_v41, %v3005_v51  ;;  %v6915_v22 = vpop.f32.mrb[197].mxu1  ;;  %v7206_v51 = vld [vmem:[%s10734_s3 + $0x78] sm:$0xff]  }
 0x32f   :  { %7717 = vtanh.f32 %v2377_v20  ;;  %6706 = vmatmul.mubr.msk.bf16.gmra.mrb[132].mxu0 %vm1271_vm1, %v7182_v8  ;;  %v7708_v23 = vpop.eup %7707  ;;  %v3008_v18 = vpop.f32.mrb[198].mxu1  ;;  %v9515_v4 = vmax.bf16 %v3649_v63, %v3648_v62  ;;  %v7205_v8 = vld [vmem:[%s10734_s3 + $0x70] sm:$0xff]  }
 0x330   :  { %6709 = vmatprep.mubr.msk.bf16.mxu0 %vm8057_vm0, %v10840_v28  ;;  %7719 = vtanh.f32 %v3006_v55  ;;  %v3009_v19 = vadd.f32 %v9246_v41, %v3008_v18  ;;  %v6916_v34 = vpop.f32.mrb[199].mxu1  ;;  %v9521_v20 = vpop.permute.xlu0 %4223  ;;  %4894 = vmatpush1.bf16.msra.mxu1 %v7205_v8 }
 0x331   :  { %v7710_v61 = vpop.eup %7709  ;;  %4895 = vmatprep.subr.bf16.mxu1 %v10863_v17 }
 0x332   :  { %v2381_v52 = vpop.f32.mrb[28].mxu0  ;;  %v3571_v13 = vpack.c.bf16 %v7710_v61, %v7708_v23  ;;  %v7712_v22 = vpop.eup %7711  ;;  %7721 = vtanh.f32 %v3009_v19 }
 0x333   :  { %v9525_v56 = vpop.permute.xlu1 %4231  ;;  %v2382_v62 = vadd.f32 %v9246_v41, %v2381_v52  ;;  %v6603_v55 = vpop.f32.mrb[29].mxu0 }
 0x334   :  { %v2384_v18 = vpop.f32.mrb[30].mxu0  ;;  %v9528_v45 = vmax.bf16 %v3571_v13, %v3570_v11  ;;  %v7714_v34 = vpop.eup %7713  ;;  %4896 = vmatpush1.bf16.msra.mxu1 %v7206_v51 }
 0x335   :  { %v2385_v23 = vadd.f32 %v9246_v41, %v2384_v18  ;;  %v6604_v61 = vpop.f32.mrb[31].mxu0  ;;  %7723 = vtanh.f32 %v2382_v62  ;;  %v3013_v55 = vpop.f32.mrb[200].mxu1  ;;  %v3650_v19 = vpack.c.bf16 %v7714_v34, %v7712_v22 }
 0x336   :  { %v3878_v52 = vmax.bf16 %v9528_v45, %v9261_v54  ;;  %v3014_v17 = vadd.f32 %v9246_v41, %v3013_v55  ;;  %v6919_v11 = vpop.f32.mrb[201].mxu1  ;;  %v9541_v61 = vpop.permute.xlu0 %4575 }
 0x337   :  { %v9537_v8 = vpop.permute.xlu1 %4125  ;;  %7725 = vtanh.f32 %v2385_v23  ;;  %6710 = vmatmul.mubr.msk.bf16.gmra.mrb[136].mxu0 %vm1271_vm1, %v7184_v5  ;;  %v7716_v18 = vpop.eup %7715  ;;  %v9546_v62 = vmax.bf16 %v3650_v19, %v3649_v63 }
 0x338   :  { %4033 = vrot.lane.b32.xlu0 %v3878_v52, %s8058_s11  ;;  %6713 = vmatprep.mubr.msk.bf16.mxu0 %vm8057_vm0, %v10840_v28  ;;  %v3016_v54 = vpop.f32.mrb[202].mxu1  ;;  %7727 = vtanh.f32 %v3014_v17  ;;  %v7187_v52 = vld [vmem:[#allocation3 + $0x318] sm:$0xff]  }
 0x339   :  { %10897 = vst [vmem:[#allocation65_spill] sm:$0xff] %v9546_v62  ;;  %v7718_v22 = vpop.eup %7717  ;;  %v3017_v34 = vadd.f32 %v9246_v41, %v3016_v54  ;;  %v6920_v5 = vpop.f32.mrb[203].mxu1 }
 0x33a   :  { %v2389_v23 = vpop.f32.mrb[32].mxu0  ;;  %v3572_v55 = vpack.c.bf16 %v7718_v22, %v7716_v18  ;;  %v7720_v11 = vpop.eup %7719  ;;  %v10899_v22 = vld [vmem:[#allocation11_spill] sm:$0xff] }
 0x33b   :  { %v9549_v51 = vpop.permute.xlu1 %4233  ;;  %v2390_v3 = vadd.f32 %v9246_v41, %v2389_v23  ;;  %v6607_v33 = vpop.f32.mrb[33].mxu0  ;;  %7729 = vtanh.f32 %v3017_v34  ;;  %v3853_v5 = vmax.bf16 %v8945_v48, %v10899_v22 }
 0x33c   :  { %v2392_v31 = vpop.f32.mrb[34].mxu0  ;;  %v9552_v28 = vmax.bf16 %v3572_v55, %v3571_v13  ;;  %v7722_v63 = vpop.eup %7721 }
 0x33d   :  { %v2393_v62 = vadd.f32 %v9246_v41, %v2392_v31  ;;  %v6608_v17 = vpop.f32.mrb[35].mxu0  ;;  %v9555_v26 = vpop.permute.xlu0 %4579  ;;  %7731 = vtanh.f32 %v2390_v3  ;;  %v3651_v18 = vpack.c.bf16 %v7722_v63, %v7720_v11  ;;  %v4319_v3 = vsel %vm4295_vm3, %v3853_v5, %v9437_v2  ;;  %v9575_v2 = vld [vmem:[%s10733_s2] ss:$0 sm:$0xff] }
 0x33e   :  { %10898 = vst [vmem:[#allocation66_spill] sm:$0xff] %v9555_v26  ;;  %v3021_v54 = vpop.f32.mrb[204].mxu1 }
 0x33f   :  { %v4130_v40 = vpop.permute.xlu1 %4129  ;;  %7733 = vtanh.f32 %v2393_v62  ;;  %6714 = vmatmul.mubr.msk.bf16.gmra.mrb[140].mxu0 %vm1271_vm1, %v7187_v52  ;;  %v3022_v33 = vadd.f32 %v9246_v41, %v3021_v54  ;;  %v6923_v13 = vpop.f32.mrb[205].mxu1  ;;  %v9561_v43 = vmax.bf16 %v3651_v18, %v3650_v19 }
 0x340   :  { %v7724_v34 = vpop.eup %7723  ;;  %v3024_v23 = vpop.f32.mrb[206].mxu1  ;;  %v4420_v48 = vsel %vm4404_vm2, %v4319_v3, %v4130_v40 }
 0x341   :  { %v7726_v31 = vpop.eup %7725  ;;  %7735 = vtanh.f32 %v3022_v33  ;;  %v3025_v11 = vadd.f32 %v9246_v41, %v3024_v23  ;;  %v6924_v63 = vpop.f32.mrb[207].mxu1 }
 0x342   :  { %v4238_v62 = vpop.permute.xlu0 %4237  ;;  %v3573_v17 = vpack.c.bf16 %v7726_v31, %v7724_v34  ;;  %v7728_v54 = vpop.eup %7727 }
 0x343   :  { %v2397_v22 = vpop.f32.mrb[36].mxu0  ;;  %v9570_v19 = vsel %vm4477_vm4, %v4420_v48, %v4238_v62  ;;  %7737 = vtanh.f32 %v3025_v11  ;;  %v3029_v11 = vpop.f32.mrb[208].mxu1 }
 0x344   :  { %v2398_v41 = vadd.f32 %v9575_v2, %v2397_v22  ;;  %v6611_v5 = vpop.f32.mrb[37].mxu0  ;;  %4585 = vrot.lane.b32.xlu1 %v9570_v19, %s8054_s20  ;;  %v9580_v40 = vmax.bf16 %v3573_v17, %v3572_v55  ;;  %v3030_v48 = vadd.f32 %v9575_v2, %v3029_v11  ;;  %v6927_v62 = vpop.f32.mrb[209].mxu1 }
 0x345   :  { %v7730_v33 = vpop.eup %7729  ;;  %v2400_v13 = vpop.f32.mrb[38].mxu0 }
 0x346   :  { %v2401_v34 = vadd.f32 %v9575_v2, %v2400_v13  ;;  %v6612_v23 = vpop.f32.mrb[39].mxu0  ;;  %v3880_v31 = vmax.bf16 %v9580_v40, %v9314_v12  ;;  %v3652_v3 = vpack.c.bf16 %v7730_v33, %v7728_v54  ;;  %7739 = vtanh.f32 %v2398_v41  ;;  %v3032_v5 = vpop.f32.mrb[210].mxu1 }
 0x347   :  { %v7732_v63 = vpop.eup %7731  ;;  %v3033_v23 = vadd.f32 %v9575_v2, %v3032_v5  ;;  %v6928_v33 = vpop.f32.mrb[211].mxu1 }
 0x348   :  { %7741 = vtanh.f32 %v2401_v34  ;;  %4035 = vrot.lane.b32.xlu1 %v3880_v31, %s8058_s11  ;;  %v9587_v55 = vmax.bf16 %v3652_v3, %v3651_v18 }
 0x349   :  { %v7734_v22 = vpop.eup %7733  ;;  %7743 = vtanh.f32 %v3030_v48  ;;  %v10901_v48 = vld [vmem:[#allocation12_spill] sm:$0xff] }
 0x34a   :  { %10900 = vst [vmem:[#allocation11_spill] sm:$0xff] %v9587_v55  ;;  %v2405_v52 = vpop.f32.mrb[40].mxu0  ;;  %v3574_v13 = vpack.c.bf16 %v7734_v22, %v7732_v63  ;;  %7745 = vtanh.f32 %v3033_v23  ;;  %v4132_v62 = vpop.permute.xlu0 %4131  ;;  %v3855_v22 = vmax.bf16 %v8990_v59, %v10901_v48 }
 0x34b   :  { %v7736_v12 = vpop.eup %7735  ;;  %v2406_v54 = vadd.f32 %v9575_v2, %v2405_v52  ;;  %v6615_v41 = vpop.f32.mrb[41].mxu0 }
 0x34c   :  { %v2408_v34 = vpop.f32.mrb[42].mxu0  ;;  %v9591_v50 = vmax.bf16 %v3574_v13, %v3573_v17  ;;  %v3037_v55 = vpop.f32.mrb[212].mxu1  ;;  %v4322_v23 = vsel %vm4295_vm3, %v3855_v22, %v9450_v9 }
 0x34d   :  { %v7738_v31 = vpop.eup %7737  ;;  %v2409_v18 = vadd.f32 %v9575_v2, %v2408_v34  ;;  %v6616_v11 = vpop.f32.mrb[43].mxu0  ;;  %7747 = vtanh.f32 %v2406_v54  ;;  %v3038_v52 = vadd.f32 %v9575_v2, %v3037_v55 }
 0x34e   :  { %v3653_v63 = vpack.c.bf16 %v7738_v31, %v7736_v12  ;;  %v6931_v5 = vpop.f32.mrb[213].mxu1  ;;  %v4422_v12 = vsel %vm4404_vm2, %v4322_v23, %v4132_v62 }
 0x34f   :  { %7749 = vtanh.f32 %v2409_v18  ;;  %v3040_v41 = vpop.f32.mrb[214].mxu1 }
 0x350   :  { %v9597_v33 = vmax.bf16 %v3653_v63, %v3652_v3  ;;  %v7740_v17 = vpop.eup %7739  ;;  %7751 = vtanh.f32 %v3038_v52  ;;  %v3041_v34 = vadd.f32 %v9575_v2, %v3040_v41  ;;  %v6932_v54 = vpop.f32.mrb[215].mxu1 }
 0x352   :  { %10902 = vst [vmem:[#allocation12_spill] sm:$0xff] %v9597_v33  ;;  %v7742_v11 = vpop.eup %7741  ;;  %v4240_v31 = vpop.permute.xlu0 %4239  ;;  %7753 = vtanh.f32 %v3041_v34 }
 0x353   :  { %v2413_v59 = vpop.f32.mrb[44].mxu0  ;;  %v9605_v48 = vsel %vm4477_vm4, %v4422_v12, %v4240_v31  ;;  %v3575_v3 = vpack.c.bf16 %v7742_v11, %v7740_v17  ;;  %v7744_v5 = vpop.eup %7743 }
 0x354   :  { %v2414_v18 = vadd.f32 %v9575_v2, %v2413_v59  ;;  %v6619_v55 = vpop.f32.mrb[45].mxu0  ;;  %10903 = vst [vmem:[#allocation67_spill] sm:$0xff] %v9605_v48  ;;  %4587 = vrot.lane.b32.xlu0 %v9605_v48, %s8054_s20  ;;  %v7746_v62 = vpop.eup %7745  ;;  %v10917_v48 = vld [vmem:[#allocation7_spill] sm:$0xff] }
 0x355   :  { %v2416_v9 = vpop.f32.mrb[46].mxu0  ;;  %v9610_v41 = vmax.bf16 %v3575_v3, %v3574_v13  ;;  %v3045_v23 = vpop.f32.mrb[216].mxu1  ;;  %v3654_v11 = vpack.c.bf16 %v7746_v62, %v7744_v5 }
 0x356   :  { %v2417_v22 = vadd.f32 %v9575_v2, %v2416_v9  ;;  %v6620_v52 = vpop.f32.mrb[47].mxu0  ;;  %7755 = vtanh.f32 %v2414_v18  ;;  %v3046_v17 = vadd.f32 %v9575_v2, %v3045_v23  ;;  %v6935_v34 = vpop.f32.mrb[217].mxu1 }
 0x357   :  { %v3882_v54 = vmax.bf16 %v9610_v41, %v9351_v44  ;;  %v7748_v12 = vpop.eup %7747  ;;  %v3048_v31 = vpop.f32.mrb[218].mxu1  ;;  %v9617_v9 = vmax.bf16 %v3654_v11, %v3653_v63  ;;  %v10905_v63 = vld [vmem:[#allocation13_spill] sm:$0xff] }
 0x358   :  { %7757 = vtanh.f32 %v2417_v22  ;;  %v3049_v13 = vadd.f32 %v9575_v2, %v3048_v31  ;;  %v6936_v55 = vpop.f32.mrb[219].mxu1 }
 0x359   :  { %v7750_v59 = vpop.eup %7749  ;;  %4037 = vrot.lane.b32.xlu0 %v3882_v54, %s8058_s11  ;;  %7759 = vtanh.f32 %v3046_v17  ;;  %10904 = vst [vmem:[#allocation68_spill] sm:$0xff] %v9617_v9  ;;  %v3857_v9 = vmax.bf16 %v9031_v14, %v10905_v63 }
 0x35a   :  { %v2421_v18 = vpop.f32.mrb[48].mxu0  ;;  %v3576_v22 = vpack.c.bf16 %v7750_v59, %v7748_v12  ;;  %v7752_v52 = vpop.eup %7751  ;;  %7761 = vtanh.f32 %v3049_v13 }
 0x35b   :  { %v2422_v44 = vadd.f32 %v9575_v2, %v2421_v18  ;;  %v6623_v33 = vpop.f32.mrb[49].mxu0  ;;  %v4134_v17 = vpop.permute.xlu0 %4133 }
 0x35c   :  { %v2424_v23 = vpop.f32.mrb[50].mxu0  ;;  %v9620_v5 = vmax.bf16 %v3576_v22, %v3575_v3  ;;  %v7754_v62 = vpop.eup %7753 }
 0x35d   :  { %v2425_v34 = vadd.f32 %v9575_v2, %v2424_v23  ;;  %v6624_v54 = vpop.f32.mrb[51].mxu0  ;;  %7763 = vtanh.f32 %v2422_v44  ;;  %v3053_v31 = vpop.f32.mrb[220].mxu1  ;;  %v3655_v55 = vpack.c.bf16 %v7754_v62, %v7752_v52  ;;  %v4325_v23 = vsel %vm4295_vm3, %v3857_v9, %v9460_v1 }
 0x35e   :  { %v3054_v12 = vadd.f32 %v9575_v2, %v3053_v31  ;;  %v6939_v59 = vpop.f32.mrb[221].mxu1  ;;  %v4424_v52 = vsel %vm4404_vm2, %v4325_v23, %v4134_v17 }
 0x35f   :  { %7765 = vtanh.f32 %v2425_v34  ;;  %v3056_v13 = vpop.f32.mrb[222].mxu1  ;;  %v9626_v18 = vmax.bf16 %v3655_v55, %v3654_v11 }
 0x360   :  { %v7756_v33 = vpop.eup %7755  ;;  %7767 = vtanh.f32 %v3054_v12  ;;  %v3057_v44 = vadd.f32 %v9575_v2, %v3056_v13  ;;  %v6940_v54 = vpop.f32.mrb[223].mxu1 }
 0x361   :  { %10906 = vst [vmem:[#allocation13_spill] sm:$0xff] %v9626_v18 }
 0x362   :  { %v7758_v3 = vpop.eup %7757  ;;  %v4242_v62 = vpop.permute.xlu0 %4241  ;;  %7769 = vtanh.f32 %v3057_v44 }
 0x363   :  { %v2429_v14 = vpop.f32.mrb[52].mxu0  ;;  %v3577_v34 = vpack.c.bf16 %v7758_v3, %v7756_v33  ;;  %v7760_v63 = vpop.eup %7759  ;;  %v9634_v11 = vsel %vm4477_vm4, %v4424_v52, %v4242_v62 }
 0x364   :  { %v2430_v31 = vadd.f32 %v9575_v2, %v2429_v14  ;;  %v6627_v59 = vpop.f32.mrb[53].mxu0  ;;  %10907 = vst [vmem:[#allocation69_spill] sm:$0xff] %v9634_v11  ;;  %4589 = vrot.lane.b32.xlu1 %v9634_v11, %s8054_s20  ;;  %v7762_v12 = vpop.eup %7761 }
 0x365   :  { %v2432_v1 = vpop.f32.mrb[54].mxu0  ;;  %v9638_v9 = vmax.bf16 %v3577_v34, %v3576_v22  ;;  %v3656_v3 = vpack.c.bf16 %v7762_v12, %v7760_v63  ;;  %v3061_v23 = vpop.f32.mrb[224].mxu1 }
 0x366   :  { %v2433_v17 = vadd.f32 %v9575_v2, %v2432_v1  ;;  %v6628_v13 = vpop.f32.mrb[55].mxu0  ;;  %7771 = vtanh.f32 %v2430_v31  ;;  %v6943_v44 = vpop.f32.mrb[225].mxu1  ;;  %v3062_v22 = vadd.f32 %v9575_v2, %v3061_v23 }
 0x367   :  { %v3884_v33 = vmax.bf16 %v9638_v9, %v9383_v32  ;;  %v7764_v54 = vpop.eup %7763  ;;  %v9644_v52 = vmax.bf16 %v3656_v3, %v3655_v55  ;;  %v3064_v63 = vpop.f32.mrb[226].mxu1 }
 0x368   :  { %7773 = vtanh.f32 %v2433_v17  ;;  %v3065_v55 = vadd.f32 %v9575_v2, %v3064_v63  ;;  %v6944_v44 = vpop.f32.mrb[227].mxu1 }
 0x369   :  { %4039 = vrot.lane.b32.xlu1 %v3884_v33, %s8058_s11  ;;  %10908 = vst [vmem:[#allocation70_spill] sm:$0xff] %v9644_v52  ;;  %v7766_v62 = vpop.eup %7765  ;;  %7775 = vtanh.f32 %v3062_v22 }
 0x36a   :  { %v2437_v14 = vpop.f32.mrb[56].mxu0  ;;  %v3578_v59 = vpack.c.bf16 %v7766_v62, %v7764_v54  ;;  %v7768_v1 = vpop.eup %7767 }
 0x36b   :  { %v2438_v31 = vadd.f32 %v9575_v2, %v2437_v14  ;;  %v6631_v13 = vpop.f32.mrb[57].mxu0  ;;  %v3069_v23 = vpop.f32.mrb[228].mxu1 }
 0x36c   :  { %v2440_v11 = vpop.f32.mrb[58].mxu0  ;;  %v9648_v32 = vmax.bf16 %v3578_v59, %v3577_v34  ;;  %v7770_v12 = vpop.eup %7769  ;;  %v3070_v54 = vadd.f32 %v9575_v2, %v3069_v23 }
 0x36d   :  { %v2441_v17 = vadd.f32 %v9575_v2, %v2440_v11  ;;  %v6632_v33 = vpop.f32.mrb[59].mxu0  ;;  %7777 = vtanh.f32 %v2438_v31  ;;  %v3657_v52 = vpack.c.bf16 %v7770_v12, %v7768_v1  ;;  %v6947_v62 = vpop.f32.mrb[229].mxu1 }
 0x36e   :  { %v3072_v34 = vpop.f32.mrb[230].mxu1 }
 0x36f   :  { %7779 = vtanh.f32 %v2441_v17  ;;  %v9653_v13 = vmax.bf16 %v3657_v52, %v3656_v3  ;;  %v3073_v11 = vadd.f32 %v9575_v2, %v3072_v34  ;;  %v6948_v22 = vpop.f32.mrb[231].mxu1 }
 0x370   :  { %v7772_v14 = vpop.eup %7771  ;;  %7781 = vtanh.f32 %v3065_v55 }
 0x371   :  { %10909 = vst [vmem:[#allocation71_spill] sm:$0xff] %v9653_v13  ;;  %7783 = vtanh.f32 %v3070_v54 }
 0x372   :  { %v7774_v26 = vpop.eup %7773  ;;  %v2445_v33 = vpop.f32.mrb[60].mxu0  ;;  %7785 = vtanh.f32 %v3073_v11 }
 0x373   :  { %v3579_v63 = vpack.c.bf16 %v7774_v26, %v7772_v14  ;;  %v2446_v31 = vadd.f32 %v9575_v2, %v2445_v33  ;;  %v6635_v44 = vpop.f32.mrb[61].mxu0  ;;  %v3077_v52 = vpop.f32.mrb[232].mxu1 }
 0x374   :  { %v2448_v1 = vpop.f32.mrb[62].mxu0  ;;  %v7776_v23 = vpop.eup %7775  ;;  %v3078_v54 = vadd.f32 %v9575_v2, %v3077_v52 }
 0x375   :  { %v9657_v12 = vmax.bf16 %v3579_v63, %v3578_v59  ;;  %v2449_v17 = vadd.f32 %v9575_v2, %v2448_v1  ;;  %v6636_v55 = vpop.f32.mrb[63].mxu0  ;;  %7787 = vtanh.f32 %v2446_v31  ;;  %v6951_v26 = vpop.f32.mrb[233].mxu1 }
 0x376   :  { %v3080_v14 = vpop.f32.mrb[234].mxu1 }
 0x377   :  { %10910 = vst [vmem:[#allocation72_spill] sm:$0xff] %v9657_v12  ;;  %v3886_v3 = vmax.bf16 %v9657_v12, %v9415_v21  ;;  %7789 = vtanh.f32 %v2449_v17  ;;  %v7778_v62 = vpop.eup %7777  ;;  %v3081_v59 = vadd.f32 %v9575_v2, %v3080_v14  ;;  %v6952_v11 = vpop.f32.mrb[235].mxu1 }
 0x378   :  { %7791 = vtanh.f32 %v3078_v54 }
 0x379   :  { %4041 = vrot.lane.b32.xlu0 %v3886_v3, %s8058_s11  ;;  %v7780_v34 = vpop.eup %7779  ;;  %7793 = vtanh.f32 %v3081_v59 }
 0x37a   :  { %v7782_v22 = vpop.eup %7781  ;;  %v2453_v33 = vpop.f32.mrb[64].mxu0  ;;  %v3580_v63 = vpack.c.bf16 %v7780_v34, %v7778_v62 }
 0x37b   :  { %v7784_v31 = vpop.eup %7783  ;;  %v2454_v21 = vadd.f32 %v9575_v2, %v2453_v33  ;;  %v6639_v44 = vpop.f32.mrb[65].mxu0  ;;  %v3658_v54 = vpack.c.bf16 %v7782_v22, %v7776_v23 }
 0x37c   :  { %v2456_v1 = vpop.f32.mrb[66].mxu0  ;;  %v7786_v17 = vpop.eup %7785 }
 0x37d   :  { %v2457_v55 = vadd.f32 %v9575_v2, %v2456_v1  ;;  %v6640_v52 = vpop.f32.mrb[67].mxu0  ;;  %7795 = vtanh.f32 %v2454_v21  ;;  %v3085_v3 = vpop.f32.mrb[236].mxu1  ;;  %v3659_v26 = vpack.c.bf16 %v7786_v17, %v7784_v31 }
 0x37e   :  { %v3086_v14 = vadd.f32 %v9575_v2, %v3085_v3  ;;  %v6955_v11 = vpop.f32.mrb[237].mxu1 }
 0x37f   :  { %7797 = vtanh.f32 %v2457_v55  ;;  %v7788_v12 = vpop.eup %7787  ;;  %v3088_v62 = vpop.f32.mrb[238].mxu1  ;;  %v9668_v34 = vmax.bf16 %v3659_v26, %v3658_v54 }
 0x380   :  { %7799 = vtanh.f32 %v3086_v14  ;;  %v3089_v59 = vadd.f32 %v9575_v2, %v3088_v62  ;;  %v6956_v44 = vpop.f32.mrb[239].mxu1 }
 0x381   :  { %10911 = vst [vmem:[#allocation73_spill] sm:$0xff] %v9668_v34  ;;  %v7790_v33 = vpop.eup %7789  ;;  %v9690_v34 = vpop.permute.xlu0 %4135 }
 0x382   :  { %v2461_v13 = vpop.f32.mrb[68].mxu0  ;;  %v3581_v1 = vpack.c.bf16 %v7790_v33, %v7788_v12  ;;  %v7792_v52 = vpop.eup %7791  ;;  %7801 = vtanh.f32 %v3089_v59 }
 0x383   :  { %v2462_v21 = vadd.f32 %v9575_v2, %v2461_v13  ;;  %v6643_v31 = vpop.f32.mrb[69].mxu0  ;;  %v7794_v17 = vpop.eup %7793 }
 0x384   :  { %v2464_v23 = vpop.f32.mrb[70].mxu0  ;;  %v9672_v22 = vmax.bf16 %v3581_v1, %v3580_v63  ;;  %v3093_v54 = vpop.f32.mrb[240].mxu1  ;;  %v9675_v14 = vpack.c.bf16 %v7794_v17, %v7792_v52 }
 0x385   :  { %v2465_v55 = vadd.f32 %v9575_v2, %v2464_v23  ;;  %v6644_v3 = vpop.f32.mrb[71].mxu0  ;;  %7803 = vtanh.f32 %v2462_v21  ;;  %v3094_v11 = vadd.f32 %v9575_v2, %v3093_v54  ;;  %v6959_v12 = vpop.f32.mrb[241].mxu1 }
 0x386   :  { %10912 = vst [vmem:[#allocation74_spill] sm:$0xff] %v9672_v22  ;;  %10913 = vst [vmem:[#allocation75_spill] sm:$0xff] %v9675_v14  ;;  %v3096_v33 = vpop.f32.mrb[242].mxu1  ;;  %v3816_v13 = vmax.bf16 %v9675_v14, %v3659_v26 }
 0x387   :  { %7805 = vtanh.f32 %v2465_v55  ;;  %v7796_v62 = vpop.eup %7795  ;;  %v3097_v63 = vadd.f32 %v9575_v2, %v3096_v33  ;;  %v6960_v44 = vpop.f32.mrb[243].mxu1 }
 0x388   :  { %7807 = vtanh.f32 %v3094_v11  ;;  %v9681_v21 = vmax.bf16 %v3816_v13, %v9467_v24 }
 0x389   :  { %v7798_v59 = vpop.eup %7797  ;;  %7809 = vtanh.f32 %v3097_v63 }
 0x38a   :  { %v2469_v31 = vpop.f32.mrb[72].mxu0  ;;  %v3582_v23 = vpack.c.bf16 %v7798_v59, %v7796_v62  ;;  %10914 = vst [vmem:[#allocation76_spill] sm:$0xff] %v9681_v21  ;;  %v7800_v52 = vpop.eup %7799 }
 0x38b   :  { %v2470_v17 = vadd.f32 %v9575_v2, %v2469_v31  ;;  %v6647_v55 = vpop.f32.mrb[73].mxu0  ;;  %v3101_v33 = vpop.f32.mrb[244].mxu1 }
 0x38c   :  { %v2472_v3 = vpop.f32.mrb[74].mxu0  ;;  %v9684_v54 = vmax.bf16 %v3582_v23, %v3581_v1  ;;  %v7802_v12 = vpop.eup %7801  ;;  %v3102_v62 = vadd.f32 %v9575_v2, %v3101_v33 }
 0x38d   :  { %v2473_v26 = vadd.f32 %v9575_v2, %v2472_v3  ;;  %v6648_v11 = vpop.f32.mrb[75].mxu0  ;;  %7811 = vtanh.f32 %v2470_v17  ;;  %v9687_v44 = vpack.c.bf16 %v7802_v12, %v7800_v52  ;;  %v6963_v13 = vpop.f32.mrb[245].mxu1 }
 0x38e   :  { %v3104_v31 = vpop.f32.mrb[246].mxu1  ;;  %v9696_v33 = vpop.permute.xlu0 %4243 }
 0x38f   :  { %10915 = vst [vmem:[#allocation77_spill] sm:$0xff] %v9687_v44  ;;  %7813 = vtanh.f32 %v2473_v26  ;;  %v7804_v59 = vpop.eup %7803  ;;  %v3105_v55 = vadd.f32 %v9575_v2, %v3104_v31  ;;  %v6964_v3 = vpop.f32.mrb[247].mxu1 }
 0x390   :  { %7815 = vtanh.f32 %v3102_v62  ;;  %v10916_v62 = vld [vmem:[#allocation8_spill] sm:$0xff] }
 0x391   :  { %v7806_v63 = vpop.eup %7805  ;;  %7817 = vtanh.f32 %v3105_v55  ;;  %v10918_v31 = vmax.bf16 %v10916_v62, %v10917_v48  ;;  %v3861_v62 = vmax.bf16 %v9111_v27, %v8819_v39 }
 0x392   :  { %v2477_v17 = vpop.f32.mrb[76].mxu0  ;;  %v3583_v11 = vpack.c.bf16 %v7806_v63, %v7804_v59  ;;  %v7808_v52 = vpop.eup %7807 }
 0x393   :  { %v2478_v12 = vadd.f32 %v9575_v2, %v2477_v17  ;;  %v6651_v26 = vpop.f32.mrb[77].mxu0  ;;  %v7810_v24 = vpop.eup %7809  ;;  %v3835_v3 = vmax.bf16 %v8535_v7, %v10918_v31 }
 0x394   :  { %v2480_v13 = vpop.f32.mrb[78].mxu0  ;;  %v9698_v21 = vmax.bf16 %v3583_v11, %v3582_v23  ;;  %v3109_v63 = vpop.f32.mrb[248].mxu1  ;;  %v9707_v55 = vpack.c.bf16 %v7810_v24, %v7808_v52 }
 0x395   :  { %v2481_v1 = vadd.f32 %v9575_v2, %v2480_v13  ;;  %v6652_v14 = vpop.f32.mrb[79].mxu0  ;;  %7819 = vtanh.f32 %v2478_v12  ;;  %v6967_v17 = vpop.f32.mrb[249].mxu1  ;;  %v4310_v26 = vsel %vm4295_vm3, %v3835_v3, %v9090_v10  ;;  %v3110_v48 = vadd.f32 %v9575_v2, %v3109_v63 }
 0x396   :  { %v3889_v59 = vmax.bf16 %v9698_v21, %v9501_v0  ;;  %v4138_v13 = vpop.permute.xlu0 %4137  ;;  %v3112_v14 = vpop.f32.mrb[250].mxu1  ;;  %v3818_v7 = vmax.bf16 %v9707_v55, %v9687_v44  ;;  %v4414_v24 = vsel %vm4404_vm2, %v4310_v26, %v9508_v25  ;;  %v4331_v25 = vsel %vm4295_vm3, %v3861_v62, %v9485_v46 }
 0x397   :  { %7821 = vtanh.f32 %v2481_v1  ;;  %v7812_v23 = vpop.eup %7811  ;;  %v3113_v1 = vadd.f32 %v9575_v2, %v3112_v14  ;;  %v6968_v52 = vpop.f32.mrb[251].mxu1  ;;  %v9726_v44 = vsel %vm4477_vm4, %v4414_v24, %v9525_v56 }
 0x398   :  { %4141 = vrot.lane.b32.xlu1 %v3889_v59, %s8059_s14  ;;  %7823 = vtanh.f32 %v3110_v48  ;;  %v9721_v3 = vmax.bf16 %v3818_v7, %v9515_v4  ;;  %v4428_v48 = vsel %vm4404_vm2, %v4331_v25, %v4138_v13 }
 0x399   :  { %v7814_v12 = vpop.eup %7813  ;;  %7825 = vtanh.f32 %v3113_v1 }
 0x39a   :  { %v2485_v10 = vpop.f32.mrb[80].mxu0  ;;  %v3584_v31 = vpack.c.bf16 %v7814_v12, %v7812_v23  ;;  %v7816_v59 = vpop.eup %7815 }
 0x39b   :  { %v2486_v63 = vadd.f32 %v9575_v2, %v2485_v10  ;;  %v6655_v17 = vpop.f32.mrb[81].mxu0  ;;  %v4246_v26 = vpop.permute.xlu0 %4245 }
 0x39c   :  { %4581 = vrot.lane.b32.xlu1 %v9726_v44, %s8054_s20  ;;  %v2488_v39 = vpop.f32.mrb[82].mxu0  ;;  %v9732_v27 = vmax.bf16 %v3584_v31, %v3583_v11  ;;  %v7818_v23 = vpop.eup %7817  ;;  %v4501_v11 = vsel %vm4477_vm4, %v4428_v48, %v4246_v26 }
 0x39d   :  { %v2489_v14 = vadd.f32 %v9575_v2, %v2488_v39  ;;  %v6656_v7 = vpop.f32.mrb[83].mxu0  ;;  %v3117_v12 = vpop.f32.mrb[252].mxu1  ;;  %7827 = vtanh.f32 %v2486_v63  ;;  %v9739_v1 = vpack.c.bf16 %v7818_v23, %v7816_v59  ;;  %v3876_v59 = vmax.bf16 %v9478_v38, %v9220_v60 }
 0x39e   :  { %v3890_v56 = vmax.bf16 %v9732_v27, %v9528_v45  ;;  %v3118_v46 = vadd.f32 %v9575_v2, %v3117_v12  ;;  %v6971_v24 = vpop.f32.mrb[253].mxu1  ;;  %v9750_v48 = vpop.permute.xlu1 %4127 }
 0x39f   :  { %7829 = vtanh.f32 %v2489_v14  ;;  %v3120_v52 = vpop.f32.mrb[254].mxu1  ;;  %v7820_v62 = vpop.eup %7819 }
 0x3a0   :  { %4593 = vrot.lane.b32.xlu1 %v4501_v11, %s8054_s20  ;;  %4249 = vrot.lane.b32.xlu0 %v3890_v56, %s8060_s15  ;;  %v3121_v13 = vadd.f32 %v9575_v2, %v3120_v52  ;;  %v6972_v10 = vpop.f32.mrb[255].mxu1  ;;  %7831 = vtanh.f32 %v3118_v46 }
 0x3a1   :  { %v7822_v63 = vpop.eup %7821 }
 0x3a2   :  { %v2493_v17 = vpop.f32.mrb[84].mxu0  ;;  %v3585_v25 = vpack.c.bf16 %v7822_v63, %v7820_v62  ;;  %7833 = vtanh.f32 %v3121_v13  ;;  %v7824_v23 = vpop.eup %7823  ;;  %v3859_v13 = vmax.bf16 %v9069_v58, %v8766_v57 }
 0x3a3   :  { %v2494_v26 = vadd.f32 %v9575_v2, %v2493_v17  ;;  %v6659_v39 = vpop.f32.mrb[85].mxu0  ;;  %v7826_v12 = vpop.eup %7825 }
 0x3a4   :  { %4031 = vrot.lane.b32.xlu1 %v3876_v59, %s8058_s11  ;;  %v2496_v14 = vpop.f32.mrb[86].mxu0  ;;  %v9753_v7 = vmax.bf16 %v3585_v25, %v3584_v31  ;;  %v3125_v24 = vpop.f32.mrb[0].mxu1  ;;  %v9759_v62 = vpack.c.bf16 %v7826_v12, %v7824_v23  ;;  %v4328_v39 = vsel %vm4295_vm3, %v3859_v13, %v9473_v16 }
 0x3a5   :  { %v2497_v56 = vadd.f32 %v9575_v2, %v2496_v14  ;;  %v6660_v46 = vpop.f32.mrb[87].mxu0  ;;  %7835 = vtanh.f32 %v2494_v26  ;;  %v3126_v11 = vadd.f32 %v9575_v2, %v3125_v24  ;;  %v6975_v52 = vpop.f32.mrb[1].mxu1  ;;  %v4426_v23 = vsel %vm4404_vm2, %v4328_v39, %v9690_v34 }
 0x3a6   :  { %v3891_v60 = vmax.bf16 %v9753_v7, %v9552_v28  ;;  %10919 = vst [vmem:[#allocation8_spill] sm:$0xff] %v9759_v62  ;;  %v3128_v31 = vpop.f32.mrb[2].mxu1  ;;  %v3820_v59 = vmax.bf16 %v9759_v62, %v9739_v1  ;;  %v10921_v46 = vld [vmem:[#allocation9_spill] sm:$0xff]  ;;  %v4236_v52 = vpop.permute.xlu1 %4235 }
 0x3a7   :  { %7837 = vtanh.f32 %v2497_v56  ;;  %v7828_v10 = vpop.eup %7827  ;;  %v3129_v63 = vadd.f32 %v9575_v2, %v3128_v31  ;;  %v6976_v17 = vpop.f32.mrb[3].mxu1  ;;  %v10920_v56 = vld [vmem:[#allocation10_spill] sm:$0xff] }
 0x3a8   :  { %4143 = vrot.lane.b32.xlu0 %v3891_v60, %s8059_s14  ;;  %7839 = vtanh.f32 %v3126_v11  ;;  %v9772_v14 = vmax.bf16 %v3820_v59, %v9561_v43  ;;  %v10922_v24 = vmax.bf16 %v10920_v56, %v10921_v46  ;;  %v9781_v11 = vsel %vm4477_vm4, %v4426_v23, %v9696_v33 }
 0x3a9   :  { %v7830_v26 = vpop.eup %7829  ;;  %7841 = vtanh.f32 %v3129_v63  ;;  %v3851_v46 = vmax.bf16 %v8891_v37, %v8604_v47 }
 0x3aa   :  { %v2501_v57 = vpop.f32.mrb[88].mxu0  ;;  %v3586_v58 = vpack.c.bf16 %v7830_v26, %v7828_v10  ;;  %v7832_v12 = vpop.eup %7831  ;;  %v3837_v60 = vmax.bf16 %v8560_v49, %v10922_v24 }
 0x3ab   :  { %v2502_v31 = vadd.f32 %v9575_v2, %v2501_v57  ;;  %v6663_v16 = vpop.f32.mrb[89].mxu0  ;;  %v3133_v39 = vpop.f32.mrb[4].mxu1  ;;  %v4316_v37 = vsel %vm4295_vm3, %v3851_v46, %v9429_v53 }
 0x3ac   :  { %v7834_v34 = vpop.eup %7833  ;;  %4591 = vrot.lane.b32.xlu0 %v9781_v11, %s8054_s20  ;;  %v2504_v13 = vpop.f32.mrb[90].mxu0  ;;  %v9785_v10 = vmax.bf16 %v3586_v58, %v3585_v25  ;;  %v4313_v63 = vsel %vm4295_vm3, %v3837_v60, %v9104_v36  ;;  %v3134_v36 = vadd.f32 %v9575_v2, %v3133_v39 }
 0x3ad   :  { %v2505_v49 = vadd.f32 %v9575_v2, %v2504_v13  ;;  %v6664_v17 = vpop.f32.mrb[91].mxu0  ;;  %v4416_v59 = vsel %vm4404_vm2, %v4313_v63, %v9537_v8  ;;  %7843 = vtanh.f32 %v2502_v31  ;;  %v9794_v26 = vpack.c.bf16 %v7834_v34, %v7832_v12  ;;  %v6979_v57 = vpop.f32.mrb[5].mxu1 }
 0x3ae   :  { %v3892_v33 = vmax.bf16 %v9785_v10, %v9580_v40  ;;  %v4489_v25 = vsel %vm4477_vm4, %v4416_v59, %v9549_v51  ;;  %v10923_v40 = vld [vmem:[#allocation6_spill] sm:$0xff]  ;;  %v9807_v51 = vpop.permute.xlu1 %4577  ;;  %v3136_v24 = vpop.f32.mrb[6].mxu1  ;;  %v3888_v31 = vmax.bf16 %v9684_v54, %v9478_v38 }
 0x3af   :  { %7845 = vtanh.f32 %v2505_v49  ;;  %v7836_v23 = vpop.eup %7835  ;;  %v3827_v12 = vmax.bf16 %v8435_v15, %v10923_v40  ;;  %v3137_v34 = vadd.f32 %v9575_v2, %v3136_v24  ;;  %v6980_v13 = vpop.f32.mrb[7].mxu1 }
 0x3b0   :  { %4583 = vrot.lane.b32.xlu0 %v4489_v25, %s8054_s20  ;;  %4251 = vrot.lane.b32.xlu1 %v3892_v33, %s8060_s15  ;;  %7847 = vtanh.f32 %v3134_v36  ;;  %v4418_v25 = vsel %vm4404_vm2, %v4316_v37, %v9750_v48 }
 0x3b1   :  { %v7838_v56 = vpop.eup %7837  ;;  %v4298_v47 = vsel %vm4295_vm3, %v3827_v12, %v9149_v29  ;;  %7849 = vtanh.f32 %v3137_v34  ;;  %v4491_v29 = vsel %vm4477_vm4, %v4418_v25, %v4236_v52 }
 0x3b2   :  { %v2509_v60 = vpop.f32.mrb[92].mxu0  ;;  %v3587_v16 = vpack.c.bf16 %v7838_v56, %v7836_v23  ;;  %v7840_v63 = vpop.eup %7839  ;;  %v4406_v33 = vsel %vm4404_vm2, %v4298_v47, %v9499_v30 }
 0x3b3   :  { %v2510_v49 = vadd.f32 %v9575_v2, %v2509_v60  ;;  %v6667_v17 = vpop.f32.mrb[93].mxu0  ;;  %v7842_v15 = vpop.eup %7841 }
 0x3b4   :  { %4247 = vrot.lane.b32.xlu0 %v3888_v31, %s8060_s15  ;;  %v2512_v59 = vpop.f32.mrb[94].mxu0  ;;  %v9818_v38 = vmax.bf16 %v3587_v16, %v3586_v58  ;;  %v9828_v57 = vpack.c.bf16 %v7842_v15, %v7840_v63  ;;  %v4479_v58 = vsel %vm4477_vm4, %v4406_v33, %v9521_v20  ;;  %v3141_v48 = vpop.f32.mrb[8].mxu1 }
 0x3b5   :  { %v2513_v39 = vadd.f32 %v9575_v2, %v2512_v59  ;;  %v6668_v23 = vpop.f32.mrb[95].mxu0  ;;  %7851 = vtanh.f32 %v2510_v49  ;;  %v4641_v40 = vsel %vm1271_vm1, %v4479_v58, %v9541_v61  ;;  %v3142_v52 = vadd.f32 %v9575_v2, %v3141_v48  ;;  %v6983_v12 = vpop.f32.mrb[9].mxu1 }
 0x3b6   :  { %v4586_v36 = vpop.permute.xlu1 %4585  ;;  %v3893_v53 = vmax.bf16 %v9818_v38, %v9591_v50  ;;  %v3144_v24 = vpop.f32.mrb[10].mxu1 }
 0x3b7   :  { %7853 = vtanh.f32 %v2513_v39  ;;  %v9833_v30 = vsel %vm1271_vm1, %v4491_v29, %v4586_v36  ;;  %v7844_v56 = vpop.eup %7843  ;;  %v3145_v34 = vadd.f32 %v9575_v2, %v3144_v24  ;;  %v6984_v63 = vpop.f32.mrb[11].mxu1 }
 0x3b8   :  { %4897 = vmatprep.mubr.bf16.mxu1 %v9833_v30  ;;  %4145 = vrot.lane.b32.xlu1 %v3893_v53, %s8059_s14  ;;  %7855 = vtanh.f32 %v3142_v52  ;;  %v9853_v53 = vpop.permute.xlu0 %4033 }
 0x3b9   :  { %v7846_v20 = vpop.eup %7845  ;;  %4898 = vmatmul.mubr.bf16.vlgmr.msra.gmra.mrb[20].mxu1 %v4641_v40  ;;  %7857 = vtanh.f32 %v3145_v34 }
 0x3ba   :  { %v2517_v60 = vpop.f32.mrb[96].mxu0  ;;  %v3588_v31 = vpack.c.bf16 %v7846_v20, %v7844_v56  ;;  %v7848_v49 = vpop.eup %7847 }
 0x3bb   :  { %v2518_v61 = vadd.f32 %v9575_v2, %v2517_v60  ;;  %v6671_v13 = vpop.f32.mrb[97].mxu0  ;;  %v7850_v59 = vpop.eup %7849 }
 0x3bc   :  { %v2520_v17 = vpop.f32.mrb[98].mxu0  ;;  %v9844_v15 = vmax.bf16 %v3588_v31, %v3587_v16  ;;  %v3149_v25 = vpop.f32.mrb[12].mxu1  ;;  %v9849_v39 = vpack.c.bf16 %v7850_v59, %v7848_v49 }
 0x3bd   :  { %v2521_v47 = vadd.f32 %v9575_v2, %v2520_v17  ;;  %v6672_v37 = vpop.f32.mrb[99].mxu0  ;;  %7859 = vtanh.f32 %v2518_v61  ;;  %v3150_v29 = vadd.f32 %v9575_v2, %v3149_v25  ;;  %v6987_v16 = vpop.f32.mrb[13].mxu1  ;;  %v10926_v25 = vld [vmem:[#allocation16_spill] sm:$0xff] }
 0x3be   :  { %v3894_v33 = vmax.bf16 %v9844_v15, %v9610_v41  ;;  %v3152_v58 = vpop.f32.mrb[14].mxu1  ;;  %v3887_v41 = vmax.bf16 %v9672_v22, %v9454_v35  ;;  %v10924_v37 = vld [vmem:[#allocation14_spill] sm:$0xff] }
 0x3bf   :  { %7861 = vtanh.f32 %v2521_v47  ;;  %v7852_v23 = vpop.eup %7851  ;;  %v3153_v52 = vadd.f32 %v9575_v2, %v3152_v58  ;;  %v6988_v12 = vpop.f32.mrb[15].mxu1  ;;  %v3764_v59 = vmax.bf16 %v10924_v37, %v8773_v42  ;;  %v4644_v58 = vsel %vm1271_vm1, %v9188_v6, %v9807_v51 }
 0x3c0   :  { %4253 = vrot.lane.b32.xlu1 %v3894_v33, %s8060_s15  ;;  %7863 = vtanh.f32 %v3150_v29  ;;  %v10925_v33 = vld [vmem:[#allocation15_spill] sm:$0xff] }
 0x3c1   :  { %v7854_v36 = vpop.eup %7853  ;;  %7865 = vtanh.f32 %v3153_v52 }
 0x3c2   :  { %v2525_v56 = vpop.f32.mrb[100].mxu0  ;;  %v3589_v40 = vpack.c.bf16 %v7854_v36, %v7852_v23  ;;  %v7856_v60 = vpop.eup %7855  ;;  %v9871_v23 = vmax.bf16 %v10926_v25, %v10925_v33 }
 0x3c3   :  { %v2526_v20 = vadd.f32 %v9575_v2, %v2525_v56  ;;  %v6675_v24 = vpop.f32.mrb[101].mxu0  ;;  %v7858_v49 = vpop.eup %7857 }
 0x3c4   :  { %4139 = vrot.lane.b32.xlu1 %v3887_v41, %s8059_s14  ;;  %v2528_v34 = vpop.f32.mrb[102].mxu0  ;;  %v9862_v61 = vmax.bf16 %v3589_v40, %v3588_v31  ;;  %v3157_v29 = vpop.f32.mrb[16].mxu1  ;;  %v9877_v16 = vpack.c.bf16 %v7858_v49, %v7856_v60  ;;  %v3920_v24 = vmax.bf16 %v9871_v23, %v3764_v59 }
 0x3c5   :  { %v2529_v13 = vadd.f32 %v9575_v2, %v2528_v34  ;;  %v6676_v63 = vpop.f32.mrb[103].mxu0  ;;  %7867 = vtanh.f32 %v2526_v20  ;;  %v3158_v56 = vadd.f32 %v9575_v2, %v3157_v29  ;;  %v6991_v41 = vpop.f32.mrb[17].mxu1 }
 0x3c6   :  { %v4588_v17 = vpop.permute.xlu0 %4587  ;;  %v3895_v47 = vmax.bf16 %v9862_v61, %v9620_v5  ;;  %v3160_v12 = vpop.f32.mrb[18].mxu1 }
 0x3c7   :  { %7869 = vtanh.f32 %v2529_v13  ;;  %v9875_v31 = vsel %vm1271_vm1, %v9570_v19, %v4588_v17  ;;  %v7860_v36 = vpop.eup %7859  ;;  %v3824_v19 = vmax.bf16 %v9877_v16, %v9849_v39  ;;  %v3161_v6 = vadd.f32 %v9575_v2, %v3160_v12  ;;  %v6992_v51 = vpop.f32.mrb[19].mxu1 }
 0x3c8   :  { %4905 = vmatprep.mubr.bf16.mxu1 %v9875_v31  ;;  %4147 = vrot.lane.b32.xlu0 %v3895_v47, %s8059_s14  ;;  %7871 = vtanh.f32 %v3158_v56  ;;  %v9902_v12 = vpop.permute.xlu1 %4035 }
 0x3c9   :  { %v7862_v52 = vpop.eup %7861  ;;  %4906 = vmatmul.mubr.bf16.gmra.mrb[24].mxu1 %v4644_v58  ;;  %v9891_v63 = vmax.bf16 %v3824_v19, %v9626_v18  ;;  %7873 = vtanh.f32 %v3161_v6 }
 0x3ca   :  { %v2533_v20 = vpop.f32.mrb[104].mxu0  ;;  %v3590_v60 = vpack.c.bf16 %v7862_v52, %v7860_v36  ;;  %v7864_v49 = vpop.eup %7863 }
 0x3cb   :  { %v2534_v34 = vadd.f32 %v9575_v2, %v2533_v20  ;;  %v6679_v13 = vpop.f32.mrb[105].mxu0  ;;  %10927 = vst [vmem:[#allocation7_spill] sm:$0xff] %v9891_v63  ;;  %v7866_v29 = vpop.eup %7865  ;;  %v10940_v63 = vld [vmem:[#allocation47_spill] sm:$0xff] }
 0x3cc   :  { %4267 = vrot.lane.b32.xlu0 %v3920_v24, %s8060_s15  ;;  %v2536_v17 = vpop.f32.mrb[106].mxu0  ;;  %v3752_v47 = vmax.bf16 %v3590_v60, %v3589_v40  ;;  %v9896_v56 = vpack.c.bf16 %v7866_v29, %v7864_v49 }
 0x3cd   :  { %v2537_v37 = vadd.f32 %v9575_v2, %v2536_v17  ;;  %v6680_v25 = vpop.f32.mrb[107].mxu0  ;;  %7875 = vtanh.f32 %v2534_v34 }
 0x3ce   :  { %v3908_v36 = vmax.bf16 %v3764_v59, %v3752_v47  ;;  %v3896_v58 = vmax.bf16 %v3752_v47, %v9638_v9  ;;  %v9907_v9 = vld [vmem:[%s10733_s2] ss:$0 sm:$0xff] }
 0x3cf   :  { %7877 = vtanh.f32 %v2537_v37  ;;  %v7868_v41 = vpop.eup %7867  ;;  %v10928_v37 = vld [vmem:[#allocation67_spill] sm:$0xff] }
 0x3d0   :  { %4051 = vrot.lane.b32.xlu0 %v3908_v36, %s8058_s11  ;;  %4255 = vrot.lane.b32.xlu1 %v3896_v58, %s8060_s15  ;;  %v10930_v58 = vld [vmem:[#allocation66_spill] sm:$0xff] }
 0x3d1   :  { %v7870_v52 = vpop.eup %7869 }
 0x3d2   :  { %v2541_v2 = vpop.f32.mrb[108].mxu0  ;;  %v3591_v19 = vpack.c.bf16 %v7870_v52, %v7868_v41  ;;  %v7872_v24 = vpop.eup %7871  ;;  %v10931_v41 = vld [vmem:[#allocation50_spill] sm:$0xff] }
 0x3d3   :  { %v2542_v59 = vadd.f32 %v9907_v9, %v2541_v2  ;;  %v6683_v20 = vpop.f32.mrb[109].mxu0  ;;  %v7874_v49 = vpop.eup %7873 }
 0x3d4   :  { %v2544_v6 = vpop.f32.mrb[110].mxu0  ;;  %v9910_v51 = vmax.bf16 %v3591_v19, %v3590_v60  ;;  %v3670_v29 = vpack.c.bf16 %v7874_v49, %v7872_v24  ;;  %v4647_v60 = vsel %vm1271_vm1, %v10931_v41, %v10930_v58 }
 0x3d5   :  { %v2545_v34 = vadd.f32 %v9907_v9, %v2544_v6  ;;  %v6684_v13 = vpop.f32.mrb[111].mxu0  ;;  %7879 = vtanh.f32 %v2542_v59 }
 0x3d6   :  { %v4590_v17 = vpop.permute.xlu1 %4589  ;;  %v3897_v47 = vmax.bf16 %v9910_v51, %v9648_v32  ;;  %v9925_v2 = vmax.bf16 %v3670_v29, %v9896_v56  ;;  %v10935_v29 = vld [vmem:[#allocation19_spill] sm:$0xff] }
 0x3d7   :  { %7881 = vtanh.f32 %v2545_v34  ;;  %v9917_v25 = vsel %vm1271_vm1, %v10928_v37, %v4590_v17  ;;  %v7876_v36 = vpop.eup %7875 }
 0x3d8   :  { %10929 = vst [vmem:[#allocation10_spill] sm:$0xff] %v9917_v25  ;;  %4913 = vmatprep.mubr.bf16.mxu1 %v9917_v25  ;;  %4149 = vrot.lane.b32.xlu1 %v3897_v47, %s8059_s14  ;;  %10932 = vst [vmem:[#allocation9_spill] sm:$0xff] %v9925_v2  ;;  %v10934_v47 = vld [vmem:[#allocation72_spill] sm:$0xff] }
 0x3d9   :  { %v7878_v52 = vpop.eup %7877  ;;  %4914 = vmatmul.mubr.bf16.gmra.mrb[28].mxu1 %v4647_v60 }
 0x3da   :  { %v2549_v59 = vpop.f32.mrb[112].mxu0  ;;  %v3592_v20 = vpack.c.bf16 %v7878_v52, %v7876_v36 }
 0x3db   :  { %v2550_v6 = vadd.f32 %v9907_v9, %v2549_v59  ;;  %v6687_v34 = vpop.f32.mrb[113].mxu0  ;;  %v9962_v2 = vpop.permute.xlu1 %4039 }
 0x3dc   :  { %v2552_v49 = vpop.f32.mrb[114].mxu0  ;;  %v9930_v17 = vmax.bf16 %v3592_v20, %v3591_v19 }
 0x3dd   :  { %v2553_v37 = vadd.f32 %v9907_v9, %v2552_v49  ;;  %v6688_v58 = vpop.f32.mrb[115].mxu0  ;;  %7883 = vtanh.f32 %v2550_v6 }
 0x3de   :  { %v3898_v41 = vmax.bf16 %v9930_v17, %v10934_v47  ;;  %v3910_v60 = vmax.bf16 %v10935_v29, %v9930_v17 }
 0x3df   :  { %7885 = vtanh.f32 %v2553_v37  ;;  %v7880_v36 = vpop.eup %7879 }
 0x3e0   :  { %4257 = vrot.lane.b32.xlu0 %v3898_v41, %s8060_s15 }
 0x3e1   :  { %v7882_v52 = vpop.eup %7881 }
 0x3e2   :  { %v2557_v59 = vpop.f32.mrb[116].mxu0  ;;  %v3593_v34 = vpack.c.bf16 %v7882_v52, %v7880_v36 }
 0x3e3   :  { %v2558_v19 = vadd.f32 %v9907_v9, %v2557_v59  ;;  %v6691_v20 = vpop.f32.mrb[117].mxu0 }
 0x3e4   :  { %v2560_v13 = vpop.f32.mrb[118].mxu0 }
 0x3e5   :  { %v2561_v49 = vadd.f32 %v9907_v9, %v2560_v13  ;;  %v6692_v6 = vpop.f32.mrb[119].mxu0  ;;  %7887 = vtanh.f32 %v2558_v19 }
 0x3e7   :  { %7889 = vtanh.f32 %v2561_v49  ;;  %v7884_v58 = vpop.eup %7883 }
 0x3e9   :  { %v7886_v47 = vpop.eup %7885 }
 0x3ea   :  { %v2565_v46 = vpop.f32.mrb[120].mxu0  ;;  %v3594_v17 = vpack.c.bf16 %v7886_v47, %v7884_v58 }
 0x3eb   :  { %v2566_v37 = vadd.f32 %v9907_v9, %v2565_v46  ;;  %v6695_v8 = vpop.f32.mrb[121].mxu0 }
 0x3ec   :  { %v2568_v41 = vpop.f32.mrb[122].mxu0  ;;  %v9941_v40 = vmax.bf16 %v3594_v17, %v3593_v34  ;;  %v10936_v34 = vld [vmem:[#allocation23_spill] sm:$0xff] }
 0x3ed   :  { %v2569_v36 = vadd.f32 %v9907_v9, %v2568_v41  ;;  %v6696_v52 = vpop.f32.mrb[123].mxu0  ;;  %7891 = vtanh.f32 %v2566_v37 }
 0x3ef   :  { %7893 = vtanh.f32 %v2569_v36  ;;  %v7888_v59 = vpop.eup %7887 }
 0x3f1   :  { %v7890_v13 = vpop.eup %7889 }
 0x3f2   :  { %v2573_v20 = vpop.f32.mrb[124].mxu0  ;;  %v3595_v19 = vpack.c.bf16 %v7890_v13, %v7888_v59 }
 0x3f3   :  { %v2574_v49 = vadd.f32 %v9907_v9, %v2573_v20  ;;  %v6699_v6 = vpop.f32.mrb[125].mxu0 }
 0x3f4   :  { %v2576_v45 = vpop.f32.mrb[126].mxu0  ;;  %v9945_v58 = vmax.bf16 %v3595_v19, %v3594_v17 }
 0x3f5   :  { %v2577_v8 = vadd.f32 %v9907_v9, %v2576_v45  ;;  %v6700_v46 = vpop.f32.mrb[127].mxu0  ;;  %7895 = vtanh.f32 %v2574_v49  ;;  %v10937_v45 = vld [vmem:[#allocation25_spill] sm:$0xff] }
 0x3f7   :  { %7897 = vtanh.f32 %v2577_v8  ;;  %v7892_v37 = vpop.eup %7891 }
 0x3f9   :  { %v7894_v41 = vpop.eup %7893 }
 0x3fa   :  { %v2581_v36 = vpop.f32.mrb[128].mxu0  ;;  %v3596_v52 = vpack.c.bf16 %v7894_v41, %v7892_v37 }
 0x3fb   :  { %v2582_v59 = vadd.f32 %v9907_v9, %v2581_v36  ;;  %v6703_v13 = vpop.f32.mrb[129].mxu0 }
 0x3fc   :  { %v2584_v20 = vpop.f32.mrb[130].mxu0  ;;  %v9951_v6 = vmax.bf16 %v3596_v52, %v3595_v19 }
 0x3fd   :  { %v2585_v17 = vadd.f32 %v9907_v9, %v2584_v20  ;;  %v6704_v48 = vpop.f32.mrb[131].mxu0  ;;  %7899 = vtanh.f32 %v2582_v59 }
 0x3fe   :  { %v3913_v49 = vmax.bf16 %v10937_v45, %v9951_v6 }
 0x3ff   :  { %7901 = vtanh.f32 %v2585_v17  ;;  %v7896_v46 = vpop.eup %7895  ;;  %v10938_v17 = vld [vmem:[#allocation27_spill] sm:$0xff] }
 0x400   :  { %4153 = vrot.lane.b32.xlu0 %v3913_v49, %s8059_s14 }
 0x401   :  { %v7898_v8 = vpop.eup %7897 }
 0x402   :  { %v2589_v47 = vpop.f32.mrb[132].mxu0  ;;  %v3597_v37 = vpack.c.bf16 %v7898_v8, %v7896_v46  ;;  %v9965_v46 = vpop.permute.xlu0 %4037 }
 0x403   :  { %v2590_v41 = vadd.f32 %v9907_v9, %v2589_v47  ;;  %v6707_v36 = vpop.f32.mrb[133].mxu0 }
 0x404   :  { %4053 = vrot.lane.b32.xlu0 %v3910_v60, %s8058_s11  ;;  %v2592_v19 = vpop.f32.mrb[134].mxu0  ;;  %v3758_v13 = vmax.bf16 %v3597_v37, %v3596_v52 }
 0x405   :  { %v2593_v48 = vadd.f32 %v9907_v9, %v2592_v19  ;;  %v6708_v59 = vpop.f32.mrb[135].mxu0  ;;  %7903 = vtanh.f32 %v2590_v41 }
 0x406   :  { %v3902_v20 = vmax.bf16 %v3758_v13, %v9732_v27  ;;  %v3914_v22 = vmax.bf16 %v10938_v17, %v3758_v13  ;;  %v9972_v59 = vpop.permute.xlu0 %4041 }
 0x407   :  { %7905 = vtanh.f32 %v2593_v48  ;;  %v7900_v49 = vpop.eup %7899 }
 0x408   :  { %4045 = vrot.lane.b32.xlu1 %v3902_v20, %s8058_s11  ;;  %v10939_v20 = vld [vmem:[#allocation29_spill] sm:$0xff] }
 0x409   :  { %v7902_v47 = vpop.eup %7901 }
 0x40a   :  { %v2597_v60 = vpop.f32.mrb[136].mxu0  ;;  %v3598_v8 = vpack.c.bf16 %v7902_v47, %v7900_v49  ;;  %v4142_v19 = vpop.permute.xlu1 %4141  ;;  %v3877_v49 = vmax.bf16 %v9501_v0, %v10940_v63 }
 0x40b   :  { %v2598_v52 = vadd.f32 %v9907_v9, %v2597_v60  ;;  %v6711_v36 = vpop.f32.mrb[137].mxu0 }
 0x40c   :  { %4261 = vrot.lane.b32.xlu1 %v3914_v22, %s8060_s15  ;;  %v2600_v27 = vpop.f32.mrb[138].mxu0  ;;  %v9969_v41 = vmax.bf16 %v3598_v8, %v3597_v37  ;;  %v4337_v37 = vsel %vm4295_vm3, %v3877_v49, %v9853_v53  ;;  %v10941_v49 = vld [vmem:[#allocation31_spill] sm:$0xff] }
 0x40d   :  { %v2601_v13 = vadd.f32 %v9907_v9, %v2600_v27  ;;  %v6712_v48 = vpop.f32.mrb[139].mxu0  ;;  %7907 = vtanh.f32 %v2598_v52  ;;  %v4432_v60 = vsel %vm4404_vm2, %v4337_v37, %v4142_v19 }
 0x40e   :  { %v3915_v24 = vmax.bf16 %v10939_v20, %v9969_v41  ;;  %v4582_v36 = vpop.permute.xlu1 %4581 }
 0x40f   :  { %7909 = vtanh.f32 %v2601_v13  ;;  %v7904_v47 = vpop.eup %7903 }
 0x410   :  { %4155 = vrot.lane.b32.xlu1 %v3915_v24, %s8059_s14 }
 0x411   :  { %v7906_v22 = vpop.eup %7905 }
 0x412   :  { %v4250_v27 = vpop.permute.xlu0 %4249  ;;  %v3599_v48 = vpack.c.bf16 %v7906_v22, %v7904_v47  ;;  %v2605_v52 = vpop.f32.mrb[140].mxu0 }
 0x413   :  { %v9983_v18 = vsel %vm4477_vm4, %v4432_v60, %v4250_v27  ;;  %v2606_v25 = vadd.f32 %v9907_v9, %v2605_v52  ;;  %v6715_v0 = vpop.f32.mrb[141].mxu0  ;;  %v4594_v22 = vpop.permute.xlu1 %4593 }
 0x414   :  { %4595 = vrot.lane.b32.xlu1 %v9983_v18, %s8054_s20  ;;  %v3760_v63 = vmax.bf16 %v3599_v48, %v3598_v8  ;;  %v2608_v24 = vpop.f32.mrb[142].mxu0 }
 0x415   :  { %v2609_v13 = vadd.f32 %v9907_v9, %v2608_v24  ;;  %v6716_v53 = vpop.f32.mrb[143].mxu0  ;;  %7911 = vtanh.f32 %v2606_v25  ;;  %v10942_v24 = vld [vmem:[#allocation33_spill] sm:$0xff] }
 0x416   :  { %v3904_v19 = vmax.bf16 %v3760_v63, %v9785_v10  ;;  %v3916_v37 = vmax.bf16 %v10941_v49, %v3760_v63  ;;  %v10943_v53 = vld [vmem:[#allocation51_spill] sm:$0xff]  ;;  %v10944_v63 = vld [vmem:[#allocation69_spill] sm:$0xff] }
 0x417   :  { %v7908_v47 = vpop.eup %7907  ;;  %7913 = vtanh.f32 %v2609_v13  ;;  %v4032_v0 = vpop.permute.xlu1 %4031  ;;  %v3879_v25 = vmax.bf16 %v9552_v28, %v10943_v53 }
 0x418   :  { %4047 = vrot.lane.b32.xlu0 %v3904_v19, %s8058_s11  ;;  %v10945_v19 = vld [vmem:[#allocation44_spill] sm:$0xff] }
 0x419   :  { %v7910_v60 = vpop.eup %7909  ;;  %v4650_v62 = vsel %vm1271_vm1, %v10945_v19, %v4582_v36 }
 0x41a   :  { %v4144_v27 = vpop.permute.xlu0 %4143  ;;  %v3600_v52 = vpack.c.bf16 %v7910_v60, %v7908_v47  ;;  %v10011_v47 = vsel %vm1271_vm1, %v9781_v11, %v4594_v22 }
 0x41c   :  { %4263 = vrot.lane.b32.xlu0 %v3916_v37, %s8060_s15  ;;  %v9993_v8 = vmax.bf16 %v3600_v52, %v3599_v48  ;;  %v4340_v37 = vsel %vm4295_vm3, %v3879_v25, %v9902_v12 }
 0x41d   :  { %v4434_v60 = vsel %vm4404_vm2, %v4340_v37, %v4144_v27  ;;  %v10947_v27 = vld [vmem:[#allocation17_spill] sm:$0xff] }
 0x41e   :  { %v4592_v9 = vpop.permute.xlu0 %4591  ;;  %v3917_v10 = vmax.bf16 %v10942_v24, %v9993_v8 }
 0x41f   :  { %v10001_v13 = vsel %vm1271_vm1, %v10944_v63, %v4592_v9  ;;  %v7912_v48 = vpop.eup %7911  ;;  %v10948_v63 = vld [vmem:[#allocation18_spill] sm:$0xff] }
 0x420   :  { %4921 = vmatprep.mubr.bf16.mxu1 %v10001_v13  ;;  %4157 = vrot.lane.b32.xlu0 %v3917_v10, %s8059_s14  ;;  %v3921_v19 = vmax.bf16 %v10948_v63, %v10947_v27 }
 0x421   :  { %4922 = vmatmul.mubr.bf16.gmra.mrb[32].mxu1 %v4650_v62  ;;  %v7914_v28 = vpop.eup %7913  ;;  %v10946_v62 = vld [vmem:[#allocation36_spill] sm:$0xff] }
 0x422   :  { %4929 = vmatprep.mubr.bf16.mxu1 %v10011_v47  ;;  %v4252_v9 = vpop.permute.xlu1 %4251  ;;  %v3601_v53 = vpack.c.bf16 %v7914_v28, %v7912_v48  ;;  %v4584_v12 = vpop.permute.xlu0 %4583  ;;  %v10949_v48 = vld [vmem:[#allocation20_spill] sm:$0xff]  ;;  %v10952_v28 = vld [vmem:[#allocation46_spill] sm:$0xff] }
 0x423   :  { %v10016_v36 = vsel %vm4477_vm4, %v4434_v60, %v4252_v9  ;;  %v4653_v22 = vsel %vm1271_vm1, %v9726_v44, %v4584_v12  ;;  %v10953_v9 = vld [vmem:[#allocation28_spill] sm:$0xff]  ;;  %v10955_v12 = vld [vmem:[#allocation35_spill] sm:$0xff] }
 0x424   :  { %4597 = vrot.lane.b32.xlu1 %v10016_v36, %s8054_s20  ;;  %v3762_v10 = vmax.bf16 %v3601_v53, %v3600_v52  ;;  %v10950_v52 = vmax.bf16 %v10949_v48, %v10935_v29  ;;  %v3763_v44 = vmax.bf16 %v8773_v42, %v3601_v53 }
 0x426   :  { %v3918_v25 = vmax.bf16 %v10946_v62, %v3762_v10  ;;  %v3906_v11 = vmax.bf16 %v3762_v10, %v9844_v15  ;;  %v10951_v15 = vld [vmem:[#allocation26_spill] sm:$0xff]  ;;  %v10954_v10 = vmax.bf16 %v10953_v9, %v10938_v17  ;;  %v4248_v53 = vpop.permute.xlu0 %4247 }
 0x427   :  { %v3937_v60 = vmax.bf16 %v10952_v28, %v10951_v15 }
 0x428   :  { %4265 = vrot.lane.b32.xlu0 %v3918_v25, %s8060_s15  ;;  %4049 = vrot.lane.b32.xlu1 %v3906_v11, %s8058_s11  ;;  %v10043_v25 = vmax.bf16 %v10925_v33, %v10955_v12  ;;  %v10960_v12 = vld [vmem:[#allocation49_spill] sm:$0xff] }
 0x429   :  { %4930 = vmatmul.mubr.bf16.gmra.mrb[36].mxu1 %v4653_v22  ;;  %v10956_v22 = vld [vmem:[#allocation43_spill] sm:$0xff] }
 0x42a   :  { %v4146_v37 = vpop.permute.xlu1 %4145  ;;  %v3919_v11 = vmax.bf16 %v10043_v25, %v3763_v44 }
 0x42c   :  { %4269 = vrot.lane.b32.xlu0 %v10950_v52, %s8060_s15  ;;  %4161 = vrot.lane.b32.xlu1 %v3921_v19, %s8059_s14  ;;  %v3875_v19 = vmax.bf16 %v9454_v35, %v10956_v22  ;;  %v10957_v52 = vld [vmem:[#allocation48_spill] sm:$0xff] }
 0x42d   :  { %v10958_v42 = vmax.bf16 %v10957_v52, %v10953_v9  ;;  %v10961_v35 = vld [vmem:[#allocation32_spill] sm:$0xff] }
 0x42e   :  { %v4334_v17 = vsel %vm4295_vm3, %v3875_v19, %v4032_v0  ;;  %v10962_v22 = vmax.bf16 %v10961_v35, %v10941_v49  ;;  %v10964_v0 = vld [vmem:[#allocation53_spill] sm:$0xff] }
 0x430   :  { %4057 = vrot.lane.b32.xlu0 %v10954_v10, %s8058_s11  ;;  %4165 = vrot.lane.b32.xlu1 %v3937_v60, %s8059_s14  ;;  %v10959_v10 = vld [vmem:[#allocation30_spill] sm:$0xff] }
 0x431   :  { %v3939_v28 = vmax.bf16 %v10960_v12, %v10959_v10 }
 0x432   :  { %v4254_v29 = vpop.permute.xlu1 %4253 }
 0x434   :  { %4273 = vrot.lane.b32.xlu0 %v10958_v42, %s8060_s15  ;;  %4159 = vrot.lane.b32.xlu1 %v3919_v11, %s8059_s14  ;;  %v10963_v11 = vld [vmem:[#allocation34_spill] sm:$0xff] }
 0x435   :  { %v3941_v19 = vmax.bf16 %v10964_v0, %v10963_v11  ;;  %v10965_v42 = vld [vmem:[#allocation54_spill] sm:$0xff] }
 0x436   :  { %v4140_v60 = vpop.permute.xlu1 %4139 }
 0x437   :  { %v4430_v33 = vsel %vm4404_vm2, %v4334_v17, %v4140_v60  ;;  %v3881_v17 = vmax.bf16 %v9591_v50, %v10965_v42  ;;  %v10966_v60 = vld [vmem:[#allocation52_spill] sm:$0xff] }
 0x438   :  { %v10058_v63 = vsel %vm4477_vm4, %v4430_v33, %v4248_v53  ;;  %4059 = vrot.lane.b32.xlu0 %v10962_v22, %s8058_s11  ;;  %4167 = vrot.lane.b32.xlu1 %v3939_v28, %s8059_s14  ;;  %v10967_v12 = vmax.bf16 %v10966_v60, %v10961_v35  ;;  %v10968_v22 = vld [vmem:[#allocation37_spill] sm:$0xff] }
 0x439   :  { %v4343_v49 = vsel %vm4295_vm3, %v3881_v17, %v9965_v46  ;;  %v10969_v50 = vmax.bf16 %v10968_v22, %v10946_v62  ;;  %v10971_v62 = vld [vmem:[#allocation55_spill] sm:$0xff] }
 0x43a   :  { %v4148_v9 = vpop.permute.xlu0 %4147  ;;  %v4436_v28 = vsel %vm4404_vm2, %v4343_v49, %v4146_v37  ;;  %v3900_v37 = vmax.bf16 %v9945_v58, %v9684_v54  ;;  %v10972_v17 = vmax.bf16 %v10971_v62, %v10968_v22  ;;  %v10973_v49 = vld [vmem:[#allocation21_spill] sm:$0xff] }
 0x43b   :  { %v10080_v33 = vsel %vm4477_vm4, %v4436_v28, %v4254_v29  ;;  %v3911_v28 = vmax.bf16 %v10973_v49, %v9941_v40 }
 0x43c   :  { %4275 = vrot.lane.b32.xlu0 %v10967_v12, %s8060_s15  ;;  %4169 = vrot.lane.b32.xlu1 %v3941_v19, %s8059_s14  ;;  %v3907_v12 = vmax.bf16 %v3763_v44, %v9862_v61  ;;  %v10970_v19 = vld [vmem:[#allocation57_spill] sm:$0xff] }
 0x43d   :  { %v3883_v29 = vmax.bf16 %v9620_v5, %v10970_v19  ;;  %v10974_v5 = vld [vmem:[#allocation38_spill] sm:$0xff] }
 0x43e   :  { %v10076_v53 = vpop.permute.xlu0 %4267 }
 0x43f   :  { %v4346_v61 = vsel %vm4295_vm3, %v3883_v29, %v9962_v2  ;;  %v10976_v2 = vmax.bf16 %v10936_v34, %v9945_v58  ;;  %v10979_v58 = vld [vmem:[#allocation58_spill] sm:$0xff] }
 0x440   :  { %4061 = vrot.lane.b32.xlu0 %v10969_v50, %s8058_s11  ;;  %4599 = vrot.lane.b32.xlu1 %v10080_v33, %s8054_s20  ;;  %v4438_v44 = vsel %vm4404_vm2, %v4346_v61, %v4148_v9  ;;  %v10975_v50 = vld [vmem:[#allocation56_spill] sm:$0xff] }
 0x441   :  { %v3943_v22 = vmax.bf16 %v10975_v50, %v10974_v5  ;;  %v10977_v9 = vld [vmem:[#allocation60_spill] sm:$0xff] }
 0x442   :  { %v4052_v35 = vpop.permute.xlu0 %4051  ;;  %v4256_v42 = vpop.permute.xlu1 %4255 }
 0x443   :  { %v10090_v46 = vsel %vm4295_vm3, %v3907_v12, %v4052_v35  ;;  %v10107_v54 = vsel %vm4477_vm4, %v4438_v44, %v4256_v42  ;;  %v3885_v12 = vmax.bf16 %v9648_v32, %v10977_v9  ;;  %v10980_v32 = vld [vmem:[#allocation41_spill] sm:$0xff] }
 0x444   :  { %4043 = vrot.lane.b32.xlu0 %v3900_v37, %s8058_s11  ;;  %4277 = vrot.lane.b32.xlu1 %v10972_v17, %s8060_s15  ;;  %v10978_v17 = vld [vmem:[#allocation39_spill] sm:$0xff] }
 0x445   :  { %v4349_v37 = vsel %vm4295_vm3, %v3885_v12, %v9972_v59  ;;  %v3932_v61 = vmax.bf16 %v10978_v17, %v9871_v23  ;;  %v3944_v44 = vmax.bf16 %v10979_v58, %v10978_v17  ;;  %v10981_v59 = vmax.bf16 %v10980_v32, %v10949_v48  ;;  %v10985_v48 = vld [vmem:[#allocation12_spill] sm:$0xff] }
 0x446   :  { %v10983_v23 = vmax.bf16 %v9515_v4, %v10957_v52  ;;  %v3954_v9 = vmax.bf16 %v10985_v48, %v10971_v62  ;;  %v3901_v4 = vmax.bf16 %v9951_v6, %v9698_v21  ;;  %v10986_v12 = vld [vmem:[#allocation24_spill] sm:$0xff]  ;;  %v10990_v6 = vld [vmem:[#allocation59_spill] sm:$0xff] }
 0x448   :  { %4151 = vrot.lane.b32.xlu0 %v3911_v28, %s8059_s14  ;;  %4601 = vrot.lane.b32.xlu1 %v10107_v54, %s8054_s20  ;;  %v10982_v28 = vld [vmem:[#allocation61_spill] sm:$0xff] }
 0x44a   :  { %v4150_v35 = vpop.permute.xlu1 %4149 }
 0x44b   :  { %v4440_v19 = vsel %vm4404_vm2, %v4349_v37, %v4150_v35  ;;  %v10987_v37 = vld [vmem:[#allocation22_spill] sm:$0xff] }
 0x44c   :  { %4171 = vrot.lane.b32.xlu0 %v3943_v22, %s8059_s14  ;;  %4259 = vrot.lane.b32.xlu1 %v10976_v2, %s8060_s15  ;;  %v3946_v22 = vmax.bf16 %v10982_v28, %v10980_v32  ;;  %v10984_v2 = vmax.bf16 %v9561_v43, %v10966_v60  ;;  %v3903_v32 = vmax.bf16 %v9969_v41, %v9753_v7  ;;  %v10991_v41 = vld [vmem:[#allocation64_spill] sm:$0xff] }
 0x452   :  { %v4258_v29 = vpop.permute.xlu0 %4257 }
 0x453   :  { %v4513_v42 = vsel %vm4477_vm4, %v4440_v19, %v4258_v29  ;;  %v10988_v19 = vld [vmem:[#allocation42_spill] sm:$0xff] }
 0x454   :  { %4603 = vrot.lane.b32.xlu1 %v4513_v42, %s8054_s20  ;;  %v3935_v62 = vmax.bf16 %v10988_v19, %v10987_v37 }
 0x458   :  { %4063 = vrot.lane.b32.xlu1 %v3932_v61, %s8058_s11 }
 0x45c   :  { %4279 = vrot.lane.b32.xlu1 %v3944_v44, %s8060_s15 }
 0x460   :  { %4065 = vrot.lane.b32.xlu1 %v10981_v59, %s8058_s11 }
 0x464   :  { %4281 = vrot.lane.b32.xlu1 %v3946_v22, %s8060_s15  ;;  %v10185_v22 = vld [vmem:[%s10735_s4] ss:$0 sm:$0xff] }
 0x468   :  { %4069 = vrot.lane.b32.xlu1 %v10983_v23, %s8058_s11 }
 0x46c   :  { %4285 = vrot.lane.b32.xlu1 %v9721_v3, %s8060_s15  ;;  %v3924_v3 = vmax.bf16 %v10986_v12, %v10936_v34  ;;  %v10989_v34 = vld [vmem:[#allocation40_spill] sm:$0xff] }
 0x46d   :  { %v3945_v42 = vmax.bf16 %v10990_v6, %v10989_v34 }
 0x470   :  { %4071 = vrot.lane.b32.xlu1 %v10984_v2, %s8058_s11 }
 0x472   :  { %v4154_v43 = vpop.permute.xlu0 %4153 }
 0x474   :  { %4287 = vrot.lane.b32.xlu1 %v9772_v14, %s8060_s15 }
 0x476   :  { %v10172_v17 = vpop.permute.xlu0 %4053 }
 0x478   :  { %4073 = vrot.lane.b32.xlu1 %v3954_v9, %s8058_s11 }
 0x47a   :  { %v4046_v52 = vpop.permute.xlu1 %4045 }
 0x47b   :  { %v4355_v35 = vsel %vm4295_vm3, %v3901_v4, %v4046_v52 }
 0x47c   :  { %4055 = vrot.lane.b32.xlu1 %v3924_v3, %s8058_s11  ;;  %v4444_v14 = vsel %vm4404_vm2, %v4355_v35, %v4154_v43  ;;  %v10992_v43 = vld [vmem:[#allocation77_spill] sm:$0xff] }
 0x47e   :  { %v4262_v60 = vpop.permute.xlu1 %4261 }
 0x47f   :  { %v10164_v29 = vsel %vm4477_vm4, %v4444_v14, %v4262_v60  ;;  %v10993_v60 = vld [vmem:[#allocation75_spill] sm:$0xff] }
 0x480   :  { %4605 = vrot.lane.b32.xlu0 %v10164_v29, %s8054_s20  ;;  %4163 = vrot.lane.b32.xlu1 %v3935_v62, %s8059_s14  ;;  %v10994_v14 = vmax.bf16 %v10992_v43, %v10993_v60 }
 0x482   :  { %v4156_v21 = vpop.permute.xlu1 %4155  ;;  %v3961_v62 = vmax.bf16 %v10994_v14, %v10991_v41  ;;  %v3925_v14 = vmax.bf16 %v10951_v15, %v10937_v45 }
 0x484   :  { %4173 = vrot.lane.b32.xlu0 %v3945_v42, %s8059_s14 }
 0x486   :  { %v4596_v61 = vpop.permute.xlu1 %4595 }
 0x487   :  { %v10176_v44 = vsel %vm1271_vm1, %v10058_v63, %v4596_v61 }
 0x488   :  { %4937 = vmatprep.mubr.bf16.mxu1 %v10176_v44 }
 0x489   :  { %4938 = vmatmul.mubr.bf16.gmra.mrb[40].mxu1 %v9833_v30 }
 0x48a   :  { %v4048_v59 = vpop.permute.xlu0 %4047 }
 0x48b   :  { %v4358_v23 = vsel %vm4295_vm3, %v3903_v32, %v4048_v59  ;;  %v3905_v59 = vmax.bf16 %v9993_v8, %v9818_v38 }
 0x48c   :  { %v4899_v2 = vpop.f32.mrb[20].mxu1  ;;  %v4446_v3 = vsel %vm4404_vm2, %v4358_v23, %v4156_v21 }
 0x48d   :  { %v4900_v9 = vadd.f32 %v10185_v22, %v4899_v2  ;;  %v4901_v63 = vpop.f32.mrb[21].mxu1 }
 0x48e   :  { %v4902_v4 = vpop.f32.mrb[22].mxu1  ;;  %v4264_v52 = vpop.permute.xlu0 %4263 }
 0x48f   :  { %v4903_v30 = vadd.f32 %v10185_v22, %v4902_v4  ;;  %v4904_v35 = vpop.f32.mrb[23].mxu1  ;;  %v10192_v7 = vsel %vm4477_vm4, %v4446_v3, %v4264_v52  ;;  %7915 = vtanh.f32 %v4900_v9 }
 0x490   :  { %4607 = vrot.lane.b32.xlu0 %v10192_v7, %s8054_s20 }
 0x491   :  { %7917 = vtanh.f32 %v4903_v30 }
 0x492   :  { %v4158_v21 = vpop.permute.xlu0 %4157 }
 0x494   :  { %4177 = vrot.lane.b32.xlu0 %v3961_v62, %s8059_s14 }
 0x496   :  { %v4598_v42 = vpop.permute.xlu1 %4597 }
 0x497   :  { %v10203_v61 = vsel %vm1271_vm1, %v9983_v18, %v4598_v42 }
 0x498   :  { %4945 = vmatprep.mubr.bf16.mxu1 %v10203_v61 }
 0x499   :  { %4946 = vmatmul.mubr.bf16.gmra.mrb[44].mxu1 %v9875_v31  ;;  %v7916_v32 = vpop.eup %7915 }
 0x49a   :  { %v4266_v2 = vpop.permute.xlu0 %4265  ;;  %v4050_v9 = vpop.permute.xlu1 %4049 }
 0x49b   :  { %v7918_v23 = vpop.eup %7917  ;;  %v4361_v63 = vsel %vm4295_vm3, %v3905_v59, %v4050_v9 }
 0x49c   :  { %v4907_v4 = vpop.f32.mrb[24].mxu1  ;;  %v5148_v52 = vpack.c.bf16 %v7918_v23, %v7916_v32  ;;  %v4448_v18 = vsel %vm4404_vm2, %v4361_v63, %v4158_v21  ;;  %v3927_v63 = vmax.bf16 %v10959_v10, %v10939_v20 }
 0x49d   :  { %v4908_v3 = vadd.f32 %v10185_v22, %v4907_v4  ;;  %v4909_v30 = vpop.f32.mrb[25].mxu1  ;;  %v10213_v43 = vsel %vm4477_vm4, %v4448_v18, %v4266_v2  ;;  %v10995_v18 = vld [vmem:[#allocation68_spill] sm:$0xff] }
 0x49e   :  { %v4910_v35 = vpop.f32.mrb[26].mxu1  ;;  %v4270_v60 = vpop.permute.xlu0 %4269  ;;  %4609 = vrot.lane.b32.xlu0 %v10213_v43, %s8054_s20 }
 0x49f   :  { %v4911_v31 = vadd.f32 %v10185_v22, %v4910_v35  ;;  %v4162_v38 = vpop.permute.xlu1 %4161  ;;  %7919 = vtanh.f32 %v4908_v3  ;;  %v4912_v8 = vpop.f32.mrb[27].mxu1  ;;  %v10996_v35 = vmax.bf16 %v9849_v39, %v9828_v57 }
 0x4a1   :  { %7921 = vtanh.f32 %v4911_v31  ;;  %v3967_v31 = vmax.bf16 %v10996_v35, %v10995_v18 }
 0x4a2   :  { %v4058_v62 = vpop.permute.xlu0 %4057 }
 0x4a3   :  { %v4166_v42 = vpop.permute.xlu1 %4165  ;;  %v4373_v21 = vsel %vm4295_vm3, %v3925_v14, %v4058_v62  ;;  %v10997_v14 = vld [vmem:[#allocation65_spill] sm:$0xff]  ;;  %v10998_v62 = vmax.bf16 %v9739_v1, %v9707_v55 }
 0x4a4   :  { %v4456_v32 = vsel %vm4404_vm2, %v4373_v21, %v4166_v42 }
 0x4a5   :  { %v3963_v42 = vmax.bf16 %v10998_v62, %v10997_v14 }
 0x4a6   :  { %v4274_v59 = vpop.permute.xlu0 %4273 }
 0x4a7   :  { %v4160_v23 = vpop.permute.xlu1 %4159  ;;  %v10225_v9 = vsel %vm4477_vm4, %v4456_v32, %v4274_v59 }
 0x4a8   :  { %v4450_v2 = vsel %vm4404_vm2, %v10090_v46, %v4160_v23  ;;  %4615 = vrot.lane.b32.xlu1 %v10225_v9, %s8054_s20  ;;  %v3909_v46 = vmax.bf16 %v10947_v27, %v9910_v51 }
 0x4a9   :  { %v10231_v45 = vsel %vm4477_vm4, %v4450_v2, %v10076_v53  ;;  %v7920_v15 = vpop.eup %7919 }
 0x4aa   :  { %4611 = vrot.lane.b32.xlu0 %v10231_v45, %s8054_s20  ;;  %v4060_v3 = vpop.permute.xlu0 %4059  ;;  %v4367_v51 = vsel %vm4295_vm3, %v3909_v46, %v10172_v17  ;;  %v11000_v46 = vmax.bf16 %v9896_v56, %v9877_v16 }
 0x4ab   :  { %v7922_v4 = vpop.eup %7921  ;;  %v4168_v30 = vpop.permute.xlu1 %4167  ;;  %v4376_v53 = vsel %vm4295_vm3, %v3927_v63, %v4060_v3  ;;  %v4452_v39 = vsel %vm4404_vm2, %v4367_v51, %v4162_v38 }
 0x4ac   :  { %v4915_v8 = vpop.f32.mrb[28].mxu1  ;;  %v10248_v20 = vpack.c.bf16 %v7922_v4, %v7920_v15  ;;  %4183 = vrot.lane.b32.xlu1 %v3967_v31, %s8059_s14  ;;  %v4458_v55 = vsel %vm4404_vm2, %v4376_v53, %v4168_v30  ;;  %v4525_v38 = vsel %vm4477_vm4, %v4452_v39, %v4270_v60  ;;  %v10999_v4 = vld [vmem:[#allocation70_spill] sm:$0xff]  ;;  %v11001_v31 = vld [vmem:[#allocation11_spill] sm:$0xff]  ;;  %v11002_v60 = vld [vmem:[#allocation8_spill] sm:$0xff] }
 0x4ad   :  { %v4916_v27 = vadd.f32 %v10185_v22, %v4915_v8  ;;  %v4917_v10 = vpop.f32.mrb[29].mxu1  ;;  %v3969_v3 = vmax.bf16 %v11000_v46, %v10999_v4  ;;  %v11003_v53 = vmax.bf16 %v9794_v26, %v11002_v60  ;;  %v11006_v39 = vld [vmem:[#allocation45_spill] sm:$0xff] }
 0x4ae   :  { %4179 = vrot.lane.b32.xlu0 %v3963_v42, %s8059_s14  ;;  %v4918_v21 = vpop.f32.mrb[30].mxu1  ;;  %v10257_v32 = vmax.bf16 %v10248_v20, %v5148_v52  ;;  %v4276_v59 = vpop.permute.xlu0 %4275  ;;  %v3929_v52 = vmax.bf16 %v10963_v11, %v10942_v24  ;;  %v11004_v24 = vld [vmem:[#allocation10_spill] sm:$0xff]  ;;  %v11010_v46 = vld [vmem:[#allocation9_spill] sm:$0xff] }
 0x4af   :  { %v4919_v1 = vadd.f32 %v10185_v22, %v4918_v21  ;;  %v4170_v23 = vpop.permute.xlu1 %4169  ;;  %7923 = vtanh.f32 %v4916_v27  ;;  %v4920_v17 = vpop.f32.mrb[31].mxu1  ;;  %v10262_v2 = vsel %vm4477_vm4, %v4458_v55, %v4276_v59  ;;  %v3965_v8 = vmax.bf16 %v11003_v53, %v11001_v31  ;;  %v11015_v53 = vld [vmem:[#allocation74_spill] sm:$0xff] }
 0x4b0   :  { %4617 = vrot.lane.b32.xlu1 %v10262_v2, %s8054_s20  ;;  %v3936_v21 = vmax.bf16 %v11006_v39, %v10986_v12  ;;  %v11008_v12 = vld [vmem:[#allocation7_spill] sm:$0xff] }
 0x4b1   :  { %7925 = vtanh.f32 %v4919_v1 }
 0x4b2   :  { %4613 = vrot.lane.b32.xlu0 %v4525_v38, %s8054_s20  ;;  %v4062_v15 = vpop.permute.xlu0 %4061 }
 0x4b3   :  { %v4600_v63 = vpop.permute.xlu1 %4599  ;;  %v4379_v30 = vsel %vm4295_vm3, %v3929_v52, %v4062_v15 }
 0x4b4   :  { %v10277_v35 = vsel %vm1271_vm1, %v10016_v36, %v4600_v63  ;;  %4185 = vrot.lane.b32.xlu1 %v3969_v3, %s8059_s14  ;;  %v4460_v56 = vsel %vm4404_vm2, %v4379_v30, %v4170_v23  ;;  %v11005_v36 = vmax.bf16 %v9828_v57, %v9794_v26  ;;  %v11007_v57 = vld [vmem:[#allocation13_spill] sm:$0xff] }
 0x4b5   :  { %4953 = vmatprep.mubr.bf16.mxu1 %v10277_v35 }
 0x4b6   :  { %4181 = vrot.lane.b32.xlu0 %v3965_v8, %s8059_s14  ;;  %4954 = vmatmul.mubr.bf16.gmra.mrb[48].mxu1 %v11004_v24  ;;  %v3966_v62 = vmax.bf16 %v11005_v36, %v10985_v48  ;;  %v3956_v48 = vmax.bf16 %v11007_v57, %v10979_v58  ;;  %v4044_v1 = vpop.permute.xlu0 %4043  ;;  %v3931_v58 = vmax.bf16 %v10974_v5, %v10043_v25  ;;  %v11014_v5 = vld [vmem:[#allocation76_spill] sm:$0xff] }
 0x4b7   :  { %v4278_v16 = vpop.permute.xlu1 %4277  ;;  %v3899_v8 = vmax.bf16 %v9941_v40, %v11015_v53 }
 0x4b8   :  { %v10289_v11 = vsel %vm4477_vm4, %v4460_v56, %v4278_v16 }
 0x4b9   :  { %4619 = vrot.lane.b32.xlu1 %v10289_v11, %s8054_s20  ;;  %v7924_v42 = vpop.eup %7923  ;;  %v4352_v24 = vsel %vm4295_vm3, %v3899_v8, %v4044_v1 }
 0x4ba   :  { %4289 = vrot.lane.b32.xlu0 %v3966_v62, %s8060_s15  ;;  %v4152_v23 = vpop.permute.xlu0 %4151 }
 0x4bb   :  { %v7926_v51 = vpop.eup %7925  ;;  %v4602_v27 = vpop.permute.xlu1 %4601  ;;  %v4442_v16 = vsel %vm4404_vm2, %v4352_v24, %v4152_v23 }
 0x4bc   :  { %v10300_v10 = vsel %vm1271_vm1, %v10080_v33, %v4602_v27  ;;  %v10304_v55 = vpack.c.bf16 %v7926_v51, %v7924_v42  ;;  %v11016_v51 = vld [vmem:[#allocation18_spill] sm:$0xff] }
 0x4bd   :  { %4961 = vmatprep.mubr.bf16.mxu1 %v10300_v10  ;;  %v3933_v27 = vmax.bf16 %v10989_v34, %v11016_v51 }
 0x4be   :  { %4271 = vrot.lane.b32.xlu0 %v3936_v21, %s8060_s15  ;;  %4962 = vmatmul.mubr.bf16.gmra.mrb[52].mxu1 %v10001_v13  ;;  %v5174_v26 = vmax.bf16 %v10304_v55, %v10248_v20  ;;  %v11009_v13 = vld [vmem:[#allocation71_spill] sm:$0xff]  ;;  %v4172_v63 = vpop.permute.xlu0 %4171 }
 0x4bf   :  { %v4260_v33 = vpop.permute.xlu1 %4259  ;;  %v3958_v38 = vmax.bf16 %v11009_v13, %v10982_v28 }
 0x4c0   :  { %v4515_v56 = vsel %vm4477_vm4, %v4442_v16, %v4260_v33 }
 0x4c2   :  { %4075 = vrot.lane.b32.xlu0 %v3956_v48, %s8058_s11 }
 0x4c6   :  { %4291 = vrot.lane.b32.xlu0 %v11008_v12, %s8060_s15  ;;  %v4604_v59 = vpop.permute.xlu1 %4603 }
 0x4c7   :  { %v10318_v17 = vsel %vm1271_vm1, %v10107_v54, %v4604_v59  ;;  %v11011_v54 = vmax.bf16 %v11010_v46, %v11009_v13  ;;  %v11017_v13 = vld [vmem:[#allocation62_spill] sm:$0xff] }
 0x4c8   :  { %4969 = vmatprep.mubr.bf16.mxu1 %v10318_v17 }
 0x4c9   :  { %4970 = vmatmul.mubr.bf16.gmra.mrb[56].mxu1 %v10011_v47  ;;  %v11012_v47 = vld [vmem:[#allocation63_spill] sm:$0xff] }
 0x4ca   :  { %4077 = vrot.lane.b32.xlu0 %v3958_v38, %s8058_s11  ;;  %v4064_v52 = vpop.permute.xlu1 %4063  ;;  %v11013_v25 = vmax.bf16 %v11012_v47, %v11006_v39  ;;  %v11018_v38 = vld [vmem:[#allocation73_spill] sm:$0xff] }
 0x4cb   :  { %v4382_v15 = vsel %vm4295_vm3, %v3931_v58, %v4064_v52  ;;  %v3959_v58 = vmax.bf16 %v11018_v38, %v11017_v13 }
 0x4cc   :  { %v4462_v30 = vsel %vm4404_vm2, %v4382_v15, %v4172_v63 }
 0x4ce   :  { %4293 = vrot.lane.b32.xlu0 %v11011_v54, %s8060_s15  ;;  %v4280_v3 = vpop.permute.xlu1 %4279 }
 0x4cf   :  { %v10334_v28 = vsel %vm4477_vm4, %v4462_v30, %v4280_v3 }
 0x4d2   :  { %4621 = vrot.lane.b32.xlu0 %v10334_v28, %s8054_s20  ;;  %v4066_v60 = vpop.permute.xlu1 %4065 }
 0x4d3   :  { %v4385_v57 = vsel %vm4295_vm3, %v3933_v27, %v4066_v60  ;;  %v11019_v60 = vld [vmem:[#allocation46_spill] sm:$0xff] }
 0x4d4   :  { %v3949_v53 = vmax.bf16 %v10991_v41, %v11019_v60 }
 0x4d6   :  { %4067 = vrot.lane.b32.xlu0 %v11013_v25, %s8058_s11  ;;  %v4282_v62 = vpop.permute.xlu1 %4281 }
 0x4da   :  { %4283 = vrot.lane.b32.xlu0 %v11014_v5, %s8060_s15  ;;  %v4070_v23 = vpop.permute.xlu1 %4069 }
 0x4db   :  { %v4391_v16 = vsel %vm4295_vm3, %v3949_v53, %v4070_v23 }
 0x4de   :  { %v4286_v63 = vpop.permute.xlu1 %4285 }
 0x4e2   :  { %v4072_v24 = vpop.permute.xlu1 %4071 }
 0x4e6   :  { %v4288_v51 = vpop.permute.xlu1 %4287 }
 0x4f2   :  { %v4606_v36 = vpop.permute.xlu0 %4605 }
 0x4f3   :  { %v10350_v42 = vsel %vm1271_vm1, %v4515_v56, %v4606_v36 }
 0x4f4   :  { %v4923_v39 = vpop.f32.mrb[32].mxu1  ;;  %4977 = vmatprep.mubr.bf16.mxu1 %v10350_v42 }
 0x4f5   :  { %v4924_v21 = vadd.f32 %v10185_v22, %v4923_v39  ;;  %v4925_v40 = vpop.f32.mrb[33].mxu1  ;;  %4978 = vmatmul.mubr.bf16.gmra.mrb[60].mxu1 %v10176_v44 }
 0x4f6   :  { %v4926_v48 = vpop.f32.mrb[34].mxu1  ;;  %v4174_v1 = vpop.permute.xlu0 %4173 }
 0x4f7   :  { %v4927_v33 = vadd.f32 %v10185_v22, %v4926_v48  ;;  %v4464_v12 = vsel %vm4404_vm2, %v4385_v57, %v4174_v1  ;;  %v4928_v59 = vpop.f32.mrb[35].mxu1  ;;  %7927 = vtanh.f32 %v4924_v21  ;;  %v4074_v21 = vpop.permute.xlu1 %4073 }
 0x4f8   :  { %v4537_v34 = vsel %vm4477_vm4, %v4464_v12, %v4282_v62  ;;  %v11020_v59 = vld [vmem:[#allocation49_spill] sm:$0xff] }
 0x4f9   :  { %7929 = vtanh.f32 %v4927_v33  ;;  %4623 = vrot.lane.b32.xlu1 %v4537_v34, %s8054_s20  ;;  %v3951_v34 = vmax.bf16 %v10997_v14, %v11020_v59 }
 0x4fb   :  { %v4056_v48 = vpop.permute.xlu1 %4055  ;;  %v4394_v23 = vsel %vm4295_vm3, %v3951_v34, %v4072_v24 }
 0x4fc   :  { %v4931_v44 = vpop.f32.mrb[36].mxu1 }
 0x4fd   :  { %4175 = vrot.lane.b32.xlu1 %v3959_v58, %s8059_s14  ;;  %v4932_v52 = vadd.f32 %v10185_v22, %v4931_v44  ;;  %v4933_v15 = vpop.f32.mrb[37].mxu1 }
 0x4fe   :  { %v4934_v46 = vpop.f32.mrb[38].mxu1 }
 0x4ff   :  { %v4935_v54 = vadd.f32 %v10185_v22, %v4934_v46  ;;  %v4936_v3 = vpop.f32.mrb[39].mxu1  ;;  %7931 = vtanh.f32 %v4932_v52  ;;  %v4164_v33 = vpop.permute.xlu1 %4163  ;;  %v3953_v52 = vmax.bf16 %v11001_v31, %v10964_v0 }
 0x501   :  { %v7928_v30 = vpop.eup %7927  ;;  %7933 = vtanh.f32 %v4935_v54  ;;  %v4397_v15 = vsel %vm4295_vm3, %v3953_v52, %v4074_v21  ;;  %v3923_v54 = vmax.bf16 %v10987_v37, %v10973_v49  ;;  %v3955_v49 = vmax.bf16 %v10995_v18, %v10975_v50 }
 0x502   :  { %v4608_v47 = vpop.permute.xlu0 %4607  ;;  %v3957_v50 = vmax.bf16 %v10999_v4, %v10990_v6 }
 0x503   :  { %v7930_v25 = vpop.eup %7929  ;;  %v10369_v5 = vsel %vm1271_vm1, %v10164_v29, %v4608_v47 }
 0x504   :  { %4985 = vmatprep.mubr.bf16.mxu1 %v10369_v5  ;;  %v10374_v8 = vpack.c.bf16 %v7930_v25, %v7928_v30 }
 0x505   :  { %4986 = vmatmul.mubr.bf16.gmra.mrb[64].mxu1 %v10203_v61 }
 0x506   :  { %v4178_v56 = vpop.permute.xlu0 %4177  ;;  %v5175_v36 = vmax.bf16 %v10374_v8, %v10304_v55 }
 0x507   :  { %v4468_v62 = vsel %vm4404_vm2, %v4391_v16, %v4178_v56 }
 0x508   :  { %v10382_v29 = vsel %vm4477_vm4, %v4468_v62, %v4286_v63 }
 0x509   :  { %4630 = vrot.lane.b32.xlu1 %v10382_v29, %s8054_s20  ;;  %v7932_v41 = vpop.eup %7931 }
 0x50b   :  { %v7934_v27 = vpop.eup %7933 }
 0x50c   :  { %v5152_v39 = vpack.c.bf16 %v7934_v27, %v7932_v41 }
 0x50e   :  { %v10387_v61 = vmax.bf16 %v5152_v39, %v10374_v8 }
 0x510   :  { %v4610_v40 = vpop.permute.xlu0 %4609 }
 0x511   :  { %v4692_v57 = vsel %vm1271_vm1, %v10192_v7, %v4610_v40 }
 0x512   :  { %4993 = vmatprep.mubr.bf16.mxu1 %v4692_v57 }
 0x513   :  { %4994 = vmatmul.mubr.bf16.gmra.mrb[68].mxu1 %v10277_v35 }
 0x51a   :  { %v4616_v58 = vpop.permute.xlu1 %4615 }
 0x51c   :  { %v4612_v1 = vpop.permute.xlu0 %4611 }
 0x51d   :  { %v4695_v12 = vsel %vm1271_vm1, %v10213_v43, %v4612_v1 }
 0x51e   :  { %5001 = vmatprep.mubr.bf16.mxu1 %v4695_v12  ;;  %v4184_v14 = vpop.permute.xlu1 %4183 }
 0x51f   :  { %5002 = vmatmul.mubr.bf16.gmra.mrb[72].mxu1 %v10300_v10 }
 0x520   :  { %v4180_v38 = vpop.permute.xlu0 %4179 }
 0x521   :  { %v4470_v7 = vsel %vm4404_vm2, %v4394_v23, %v4180_v38 }
 0x522   :  { %v10400_v35 = vsel %vm4477_vm4, %v4470_v7, %v4288_v51  ;;  %v4618_v3 = vpop.permute.xlu1 %4617 }
 0x523   :  { %4632 = vrot.lane.b32.xlu0 %v10400_v35, %s8054_s20  ;;  %v10433_v60 = vsel %vm1271_vm1, %v10225_v9, %v4618_v3 }
 0x524   :  { %v4614_v44 = vpop.permute.xlu0 %4613 }
 0x525   :  { %v10406_v43 = vsel %vm1271_vm1, %v10231_v45, %v4614_v44 }
 0x526   :  { %5009 = vmatprep.mubr.bf16.mxu1 %v10406_v43  ;;  %v4186_v25 = vpop.permute.xlu1 %4185 }
 0x527   :  { %5010 = vmatmul.mubr.bf16.gmra.mrb[76].mxu1 %v10318_v17  ;;  %v4370_v17 = vsel %vm4295_vm3, %v3923_v54, %v4056_v48 }
 0x528   :  { %v4182_v10 = vpop.permute.xlu0 %4181  ;;  %v4454_v30 = vsel %vm4404_vm2, %v4370_v17, %v4164_v33 }
 0x529   :  { %v4472_v63 = vsel %vm4404_vm2, %v4397_v15, %v4182_v10 }
 0x52b   :  { %v4620_v56 = vpop.permute.xlu1 %4619 }
 0x52c   :  { %v4290_v46 = vpop.permute.xlu0 %4289  ;;  %v10448_v9 = vsel %vm1271_vm1, %v10262_v2, %v4620_v56 }
 0x52d   :  { %v10417_v45 = vsel %vm4477_vm4, %v4472_v63, %v4290_v46 }
 0x52e   :  { %4634 = vrot.lane.b32.xlu1 %v10417_v45, %s8054_s20 }
 0x530   :  { %v4272_v0 = vpop.permute.xlu0 %4271 }
 0x531   :  { %v4527_v31 = vsel %vm4477_vm4, %v4454_v30, %v4272_v0 }
 0x532   :  { %v10425_v47 = vsel %vm1271_vm1, %v4527_v31, %v4616_v58 }
 0x533   :  { %5017 = vmatprep.mubr.bf16.mxu1 %v10425_v47 }
 0x534   :  { %v4076_v37 = vpop.permute.xlu0 %4075  ;;  %5018 = vmatmul.mubr.bf16.gmra.mrb[80].mxu1 %v10350_v42 }
 0x535   :  { %v4400_v53 = vsel %vm4295_vm3, %v3955_v49, %v4076_v37  ;;  %5025 = vmatprep.mubr.bf16.mxu1 %v10433_v60 }
 0x536   :  { %v4474_v16 = vsel %vm4404_vm2, %v4400_v53, %v4184_v14  ;;  %v3947_v14 = vmax.bf16 %v11017_v13, %v10988_v19 }
 0x538   :  { %v4292_v24 = vpop.permute.xlu0 %4291 }
 0x539   :  { %v10439_v62 = vsel %vm4477_vm4, %v4474_v16, %v4292_v24 }
 0x53a   :  { %4636 = vrot.lane.b32.xlu0 %v10439_v62, %s8054_s20 }
 0x53c   :  { %v4078_v18 = vpop.permute.xlu0 %4077  ;;  %5026 = vmatmul.mubr.bf16.gmra.mrb[84].mxu1 %v10369_v5 }
 0x53d   :  { %v4403_v42 = vsel %vm4295_vm3, %v3957_v50, %v4078_v18  ;;  %5033 = vmatprep.mubr.bf16.mxu1 %v10448_v9 }
 0x53e   :  { %v4476_v51 = vsel %vm4404_vm2, %v4403_v42, %v4186_v25 }
 0x540   :  { %v4294_v41 = vpop.permute.xlu0 %4293 }
 0x541   :  { %v4549_v27 = vsel %vm4477_vm4, %v4476_v51, %v4294_v41 }
 0x542   :  { %4638 = vrot.lane.b32.xlu1 %v4549_v27, %s8054_s20 }
 0x544   :  { %v4622_v39 = vpop.permute.xlu0 %4621  ;;  %5034 = vmatmul.mubr.bf16.gmra.mrb[88].mxu1 %v4692_v57 }
 0x545   :  { %v10457_v6 = vsel %vm1271_vm1, %v10289_v11, %v4622_v39 }
 0x546   :  { %5041 = vmatprep.mubr.bf16.mxu1 %v10457_v6 }
 0x548   :  { %v4068_v44 = vpop.permute.xlu0 %4067 }
 0x549   :  { %v4388_v10 = vsel %vm4295_vm3, %v3947_v14, %v4068_v44 }
 0x54c   :  { %5042 = vmatmul.mubr.bf16.gmra.mrb[92].mxu1 %v4695_v12  ;;  %v4284_v63 = vpop.permute.xlu0 %4283 }
 0x55c   :  { %v4939_v2 = vpop.f32.mrb[40].mxu1 }
 0x55d   :  { %v4940_v4 = vadd.f32 %v10185_v22, %v4939_v2  ;;  %v4941_v5 = vpop.f32.mrb[41].mxu1 }
 0x55e   :  { %v4942_v21 = vpop.f32.mrb[42].mxu1 }
 0x55f   :  { %v4943_v40 = vadd.f32 %v10185_v22, %v4942_v21  ;;  %v4944_v48 = vpop.f32.mrb[43].mxu1  ;;  %7935 = vtanh.f32 %v4940_v4 }
 0x561   :  { %7937 = vtanh.f32 %v4943_v40 }
 0x569   :  { %v7936_v1 = vpop.eup %7935 }
 0x56b   :  { %v7938_v33 = vpop.eup %7937  ;;  %v4624_v57 = vpop.permute.xlu1 %4623 }
 0x56c   :  { %v4947_v59 = vpop.f32.mrb[44].mxu1  ;;  %v10464_v11 = vsel %vm1271_vm1, %v10334_v28, %v4624_v57  ;;  %v5153_v34 = vpack.c.bf16 %v7938_v33, %v7936_v1 }
 0x56d   :  { %v4948_v12 = vadd.f32 %v10185_v22, %v4947_v59  ;;  %v4949_v23 = vpop.f32.mrb[45].mxu1  ;;  %5049 = vmatprep.mubr.bf16.mxu1 %v10464_v11 }
 0x56e   :  { %v4950_v38 = vpop.f32.mrb[46].mxu1  ;;  %5050 = vmatmul.mubr.bf16.gmra.mrb[96].mxu1 %v10406_v43 }
 0x56f   :  { %v4951_v58 = vadd.f32 %v10185_v22, %v4950_v38  ;;  %v4952_v7 = vpop.f32.mrb[47].mxu1  ;;  %7939 = vtanh.f32 %v4948_v12  ;;  %v4176_v28 = vpop.permute.xlu1 %4175 }
 0x570   :  { %v4466_v52 = vsel %vm4404_vm2, %v4388_v10, %v4176_v28  ;;  %v7209_v7 = vld [vmem:[%s10736_s5 + $0x48] sm:$0xff]  }
 0x571   :  { %7941 = vtanh.f32 %v4951_v58  ;;  %v4539_v43 = vsel %vm4477_vm4, %v4466_v52, %v4284_v63  ;;  %v7208_v58 = vld [vmem:[%s10736_s5] sm:$0xff]   ;;  %v7212_v63 = vld [vmem:[%s10736_s5 + $0x10] sm:$0xff]  }
 0x579   :  { %v7940_v15 = vpop.eup %7939 }
 0x57b   :  { %v7942_v46 = vpop.eup %7941  ;;  %v4631_v54 = vpop.permute.xlu1 %4630 }
 0x57c   :  { %v4716_v3 = vsel %vm1271_vm1, %v4539_v43, %v4631_v54  ;;  %v5154_v17 = vpack.c.bf16 %v7942_v46, %v7940_v15  ;;  %v7211_v15 = vld [vmem:[%s10736_s5 + $0x50] sm:$0xff]  }
 0x57d   :  { %5057 = vmatprep.mubr.bf16.mxu1 %v4716_v3 }
 0x57e   :  { %5058 = vmatmul.mubr.bf16.gmra.mrb[100].mxu1 %v10425_v47  ;;  %v10477_v30 = vmax.bf16 %v5154_v17, %v5153_v34 }
 0x580   :  { %v5193_v19 = vmax.bf16 %v10477_v30, %v10257_v32  ;;  %v7225_v32 = vld [vmem:[%s10736_s5 + $0xc8] sm:$0xff]  }
 0x589   :  { %v4955_v13 = vpop.f32.mrb[48].mxu1 }
 0x58a   :  { %v4956_v0 = vadd.f32 %v10185_v22, %v4955_v13  ;;  %v4957_v31 = vpop.f32.mrb[49].mxu1 }
 0x58b   :  { %v4958_v25 = vpop.f32.mrb[50].mxu1 }
 0x58c   :  { %v4959_v49 = vadd.f32 %v10185_v22, %v4958_v25  ;;  %v4960_v37 = vpop.f32.mrb[51].mxu1  ;;  %7943 = vtanh.f32 %v4956_v0 }
 0x58e   :  { %7945 = vtanh.f32 %v4959_v49 }
 0x591   :  { %v4963_v53 = vpop.f32.mrb[52].mxu1 }
 0x592   :  { %v4964_v24 = vadd.f32 %v10185_v22, %v4963_v53  ;;  %v4965_v16 = vpop.f32.mrb[53].mxu1 }
 0x593   :  { %v4966_v47 = vpop.f32.mrb[54].mxu1 }
 0x594   :  { %v4967_v56 = vadd.f32 %v10185_v22, %v4966_v47  ;;  %v4968_v50 = vpop.f32.mrb[55].mxu1  ;;  %7947 = vtanh.f32 %v4964_v24 }
 0x595   :  { %v4633_v18 = vpop.permute.xlu0 %4632 }
 0x596   :  { %7949 = vtanh.f32 %v4967_v56  ;;  %v4719_v42 = vsel %vm1271_vm1, %v10382_v29, %v4633_v18  ;;  %v7944_v41 = vpop.eup %7943 }
 0x597   :  { %5065 = vmatprep.mubr.bf16.mxu1 %v4719_v42  ;;  %v7213_v42 = vld [vmem:[%s10736_s5 + $0x58] sm:$0xff]  }
 0x598   :  { %v7946_v51 = vpop.eup %7945  ;;  %5066 = vmatmul.mubr.bf16.gmra.mrb[104].mxu1 %v10433_v60 }
 0x599   :  { %v5155_v27 = vpack.c.bf16 %v7946_v51, %v7944_v41  ;;  %v7214_v41 = vld [vmem:[%s10736_s5 + $0x18] sm:$0xff]   ;;  %v7215_v51 = vld [vmem:[%s10736_s5 + $0x60] sm:$0xff]  }
 0x59b   :  { %v10488_v39 = vmax.bf16 %v5155_v27, %v5154_v17 }
 0x59c   :  { %v4971_v2 = vpop.f32.mrb[56].mxu1 }
 0x59d   :  { %v4972_v4 = vadd.f32 %v10185_v22, %v4971_v2  ;;  %v4973_v5 = vpop.f32.mrb[57].mxu1  ;;  %v5194_v21 = vmax.bf16 %v10488_v39, %v5174_v26 }
 0x59e   :  { %v4974_v40 = vpop.f32.mrb[58].mxu1  ;;  %v7948_v48 = vpop.eup %7947 }
 0x59f   :  { %v4975_v29 = vadd.f32 %v10185_v22, %v4974_v40  ;;  %5210 = vrot.lane.b32.xlu1 %v5194_v21, %s8059_s14  ;;  %v4976_v1 = vpop.f32.mrb[59].mxu1  ;;  %7951 = vtanh.f32 %v4972_v4  ;;  %v7216_v21 = vld [vmem:[%s10736_s5 + $0x20] sm:$0xff]  }
 0x5a0   :  { %v7950_v60 = vpop.eup %7949  ;;  %v4635_v33 = vpop.permute.xlu1 %4634 }
 0x5a1   :  { %7953 = vtanh.f32 %v4975_v29  ;;  %v4722_v57 = vsel %vm1271_vm1, %v10400_v35, %v4635_v33  ;;  %v5156_v59 = vpack.c.bf16 %v7950_v60, %v7948_v48  ;;  %v7217_v33 = vld [vmem:[%s10736_s5 + $0x68] sm:$0xff]  }
 0x5a2   :  { %5073 = vmatprep.mubr.bf16.mxu1 %v4722_v57  ;;  %v7218_v57 = vld [vmem:[%s10736_s5 + $0x28] sm:$0xff]  }
 0x5a3   :  { %5074 = vmatmul.mubr.bf16.gmra.mrb[108].mxu1 %v10448_v9  ;;  %v10500_v20 = vmax.bf16 %v5156_v59, %v5155_v27  ;;  %v7207_v9 = vld [vmem:[%s10736_s5 + $0x40] sm:$0xff]  }
 0x5a4   :  { %6263 = vmatprep.subr.bf16.mxu1 %v7207_v9  ;;  %v7221_v9 = vld [vmem:[%s10736_s5 + $0x78] sm:$0xff]  }
 0x5a5   :  { %v5195_v26 = vmax.bf16 %v10500_v20, %v5175_v36  ;;  %6264 = vmatpush3.bf16.msra.mxu1 %v7208_v58 }
 0x5a6   :  { %6265 = vmatprep.subr.bf16.mxu1 %v7209_v7 }
 0x5a7   :  { %5213 = vrot.lane.b32.xlu1 %v5195_v26, %s8054_s20 }
 0x5a9   :  { %v7952_v34 = vpop.eup %7951 }
 0x5ab   :  { %v7954_v12 = vpop.eup %7953 }
 0x5ac   :  { %v4637_v23 = vpop.permute.xlu0 %4636  ;;  %v5157_v38 = vpack.c.bf16 %v7954_v12, %v7952_v34 }
 0x5ad   :  { %v4725_v35 = vsel %vm1271_vm1, %v10417_v45, %v4637_v23 }
 0x5ae   :  { %5081 = vmatprep.mubr.bf16.mxu1 %v4725_v35  ;;  %v10515_v55 = vmax.bf16 %v5157_v38, %v5156_v59  ;;  %v7219_v38 = vld [vmem:[%s10736_s5 + $0x70] sm:$0xff]  }
 0x5af   :  { %5082 = vmatmul.mubr.bf16.gmra.mrb[112].mxu1 %v10457_v6  ;;  %v7210_v6 = vld [vmem:[%s10736_s5 + $0x8] sm:$0xff]   ;;  %v7220_v35 = vld [vmem:[%s10736_s5 + $0x30] sm:$0xff]  }
 0x5b0   :  { %v5196_v8 = vmax.bf16 %v10515_v55, %v10387_v61  ;;  %6266 = vmatpush3.bf16.msra.mxu1 %v7210_v6 }
 0x5b1   :  { %6267 = vmatprep.subr.bf16.mxu1 %v7211_v15 }
 0x5b2   :  { %5216 = vrot.lane.b32.xlu1 %v5196_v8, %s8062_s18 }
 0x5b4   :  { %v4639_v36 = vpop.permute.xlu1 %4638  ;;  %6268 = vmatpush3.bf16.msra.mxu1 %v7212_v63 }
 0x5b5   :  { %v4728_v45 = vsel %vm1271_vm1, %v10439_v62, %v4639_v36  ;;  %6269 = vmatprep.subr.bf16.mxu1 %v7213_v42 }
 0x5b6   :  { %5089 = vmatprep.mubr.bf16.mxu1 %v4728_v45 }
 0x5b7   :  { %5090 = vmatmul.mubr.bf16.gmra.mrb[116].mxu1 %v10464_v11 }
 0x5b8   :  { %6270 = vmatpush3.bf16.msra.mxu1 %v7214_v41 }
 0x5b9   :  { %6271 = vmatprep.subr.bf16.mxu1 %v7215_v51 }
 0x5bc   :  { %6272 = vmatpush3.bf16.msra.mxu1 %v7216_v21 }
 0x5bd   :  { %6273 = vmatprep.subr.bf16.mxu1 %v7217_v33 }
 0x5c0   :  { %6274 = vmatpush3.bf16.msra.mxu1 %v7218_v57 }
 0x5c1   :  { %6275 = vmatprep.subr.bf16.mxu1 %v7219_v38 }
 0x5c4   :  { %6276 = vmatpush3.bf16.msra.mxu1 %v7220_v35 }
 0x5c5   :  { %6277 = vmatprep.subr.bf16.mxu1 %v7221_v9 }
 0x5c8   :  { %v4979_v61 = vpop.f32.mrb[60].mxu1 }
 0x5c9   :  { %v4980_v44 = vadd.f32 %v10185_v22, %v4979_v61  ;;  %v4981_v14 = vpop.f32.mrb[61].mxu1 }
 0x5ca   :  { %v4982_v28 = vpop.f32.mrb[62].mxu1 }
 0x5cb   :  { %v4983_v62 = vadd.f32 %v10185_v22, %v4982_v28  ;;  %v4984_v10 = vpop.f32.mrb[63].mxu1  ;;  %7955 = vtanh.f32 %v4980_v44 }
 0x5cd   :  { %7957 = vtanh.f32 %v4983_v62 }
 0x5d5   :  { %v7956_v11 = vpop.eup %7955 }
 0x5d7   :  { %v7958_v52 = vpop.eup %7957 }
 0x5d8   :  { %v4987_v46 = vpop.f32.mrb[64].mxu1  ;;  %v5158_v54 = vpack.c.bf16 %v7958_v52, %v7956_v11 }
 0x5d9   :  { %v4988_v43 = vadd.f32 %v10185_v22, %v4987_v46  ;;  %v4989_v3 = vpop.f32.mrb[65].mxu1 }
 0x5da   :  { %v4990_v17 = vpop.f32.mrb[66].mxu1 }
 0x5db   :  { %v4991_v13 = vadd.f32 %v10185_v22, %v4990_v17  ;;  %v4992_v0 = vpop.f32.mrb[67].mxu1  ;;  %7959 = vtanh.f32 %v4988_v43 }
 0x5dd   :  { %7961 = vtanh.f32 %v4991_v13 }
 0x5e5   :  { %v7960_v31 = vpop.eup %7959 }
 0x5e6   :  { %v4995_v49 = vpop.f32.mrb[68].mxu1 }
 0x5e7   :  { %v7962_v25 = vpop.eup %7961  ;;  %v4996_v37 = vadd.f32 %v10185_v22, %v4995_v49  ;;  %v4997_v53 = vpop.f32.mrb[69].mxu1 }
 0x5e8   :  { %v5159_v24 = vpack.c.bf16 %v7962_v25, %v7960_v31  ;;  %v4998_v16 = vpop.f32.mrb[70].mxu1 }
 0x5e9   :  { %v4999_v47 = vadd.f32 %v10185_v22, %v4998_v16  ;;  %v5000_v56 = vpop.f32.mrb[71].mxu1  ;;  %7963 = vtanh.f32 %v4996_v37 }
 0x5ea   :  { %v10542_v50 = vmax.bf16 %v5159_v24, %v5158_v54 }
 0x5eb   :  { %7965 = vtanh.f32 %v4999_v47 }
 0x5ec   :  { %v5197_v18 = vmax.bf16 %v10542_v50, %v10477_v30 }
 0x5f2   :  { %v5003_v27 = vpop.f32.mrb[72].mxu1 }
 0x5f3   :  { %v5004_v2 = vadd.f32 %v10185_v22, %v5003_v27  ;;  %v5005_v4 = vpop.f32.mrb[73].mxu1  ;;  %v7964_v40 = vpop.eup %7963 }
 0x5f4   :  { %v5006_v5 = vpop.f32.mrb[74].mxu1 }
 0x5f5   :  { %v5007_v48 = vadd.f32 %v10185_v22, %v5006_v5  ;;  %v5008_v29 = vpop.f32.mrb[75].mxu1  ;;  %v7966_v1 = vpop.eup %7965  ;;  %7967 = vtanh.f32 %v5004_v2 }
 0x5f6   :  { %v5160_v60 = vpack.c.bf16 %v7966_v1, %v7964_v40 }
 0x5f7   :  { %7969 = vtanh.f32 %v5007_v48 }
 0x5f8   :  { %v10566_v59 = vmax.bf16 %v5160_v60, %v5159_v24 }
 0x5fa   :  { %v5011_v26 = vpop.f32.mrb[76].mxu1  ;;  %v5198_v23 = vmax.bf16 %v10566_v59, %v10488_v39  ;;  %v7222_v39 = vld [vmem:[%s10736_s5 + $0x38] sm:$0xff]  }
 0x5fb   :  { %v5012_v34 = vadd.f32 %v10185_v22, %v5011_v26  ;;  %v5013_v12 = vpop.f32.mrb[77].mxu1  ;;  %6278 = vmatpush3.bf16.msra.mxu1 %v7222_v39 }
 0x5fc   :  { %v5014_v58 = vpop.f32.mrb[78].mxu1  ;;  %5219 = vrot.lane.b32.xlu0 %v5198_v23, %s8059_s14 }
 0x5fd   :  { %v5015_v8 = vadd.f32 %v10185_v22, %v5014_v58  ;;  %v5016_v36 = vpop.f32.mrb[79].mxu1  ;;  %7971 = vtanh.f32 %v5012_v34 }
 0x5ff   :  { %7973 = vtanh.f32 %v5015_v8  ;;  %v7968_v45 = vpop.eup %7967 }
 0x601   :  { %v7970_v7 = vpop.eup %7969 }
 0x602   :  { %v5161_v6 = vpack.c.bf16 %v7970_v7, %v7968_v45 }
 0x604   :  { %v5183_v61 = vmax.bf16 %v5161_v6, %v5160_v60 }
 0x606   :  { %v5199_v44 = vmax.bf16 %v5183_v61, %v10500_v20 }
 0x607   :  { %v5019_v14 = vpop.f32.mrb[80].mxu1  ;;  %v7972_v28 = vpop.eup %7971 }
 0x608   :  { %v5020_v62 = vadd.f32 %v10185_v22, %v5019_v14  ;;  %v5021_v10 = vpop.f32.mrb[81].mxu1  ;;  %5222 = vrot.lane.b32.xlu0 %v5199_v44, %s8054_s20  ;;  %v10621_v14 = vld [vmem:[%s10735_s4] ss:$0 sm:$0xff] }
 0x609   :  { %v7974_v11 = vpop.eup %7973  ;;  %v5022_v52 = vpop.f32.mrb[82].mxu1 }
 0x60a   :  { %v5023_v15 = vadd.f32 %v10185_v22, %v5022_v52  ;;  %v5024_v63 = vpop.f32.mrb[83].mxu1  ;;  %v5162_v46 = vpack.c.bf16 %v7974_v11, %v7972_v28  ;;  %7975 = vtanh.f32 %v5020_v62 }
 0x60c   :  { %7977 = vtanh.f32 %v5023_v15  ;;  %v10589_v54 = vmax.bf16 %v5162_v46, %v5161_v6 }
 0x60e   :  { %v5200_v20 = vmax.bf16 %v10589_v54, %v10515_v55 }
 0x60f   :  { %v5027_v43 = vpop.f32.mrb[84].mxu1 }
 0x610   :  { %v5028_v3 = vadd.f32 %v10185_v22, %v5027_v43  ;;  %5225 = vrot.lane.b32.xlu0 %v5200_v20, %s8062_s18  ;;  %v5029_v17 = vpop.f32.mrb[85].mxu1 }
 0x611   :  { %v5030_v13 = vpop.f32.mrb[86].mxu1 }
 0x612   :  { %v5031_v0 = vadd.f32 %v10185_v22, %v5030_v13  ;;  %v5032_v31 = vpop.f32.mrb[87].mxu1  ;;  %7979 = vtanh.f32 %v5028_v3 }
 0x614   :  { %7981 = vtanh.f32 %v5031_v0  ;;  %v7976_v25 = vpop.eup %7975 }
 0x616   :  { %v7978_v49 = vpop.eup %7977 }
 0x617   :  { %v5035_v37 = vpop.f32.mrb[88].mxu1  ;;  %v5163_v53 = vpack.c.bf16 %v7978_v49, %v7976_v25 }
 0x618   :  { %v5036_v24 = vadd.f32 %v10185_v22, %v5035_v37  ;;  %v5037_v16 = vpop.f32.mrb[89].mxu1 }
 0x619   :  { %v5038_v55 = vpop.f32.mrb[90].mxu1 }
 0x61a   :  { %v5039_v47 = vadd.f32 %v10185_v22, %v5038_v55  ;;  %v5040_v56 = vpop.f32.mrb[91].mxu1  ;;  %7983 = vtanh.f32 %v5036_v24  ;;  %v5211_v24 = vpop.permute.xlu1 %5210 }
 0x61c   :  { %7985 = vtanh.f32 %v5039_v47  ;;  %v7980_v42 = vpop.eup %7979 }
 0x61e   :  { %v7982_v41 = vpop.eup %7981 }
 0x61f   :  { %v5043_v51 = vpop.f32.mrb[92].mxu1  ;;  %v5164_v27 = vpack.c.bf16 %v7982_v41, %v7980_v42  ;;  %v5214_v41 = vpop.permute.xlu1 %5213 }
 0x620   :  { %v5044_v2 = vadd.f32 %v10185_v22, %v5043_v51  ;;  %v5045_v4 = vpop.f32.mrb[93].mxu1 }
 0x621   :  { %v5046_v5 = vpop.f32.mrb[94].mxu1  ;;  %v10599_v21 = vmax.bf16 %v5164_v27, %v5163_v53 }
 0x622   :  { %v5047_v40 = vadd.f32 %v10185_v22, %v5046_v5  ;;  %v5048_v48 = vpop.f32.mrb[95].mxu1  ;;  %7987 = vtanh.f32 %v5044_v2 }
 0x623   :  { %v5201_v29 = vmax.bf16 %v10599_v21, %v10542_v50 }
 0x624   :  { %7989 = vtanh.f32 %v5047_v40  ;;  %v7984_v1 = vpop.eup %7983  ;;  %v5217_v4 = vpop.permute.xlu1 %5216  ;;  %v5247_v40 = vsel %vm4404_vm2, %v5193_v19, %v5211_v24  ;;  %v11021_v24 = vmov 0.0  }
 0x626   :  { %v7986_v60 = vpop.eup %7985 }
 0x627   :  { %v5165_v33 = vpack.c.bf16 %v7986_v60, %v7984_v1 }
 0x629   :  { %v10604_v57 = vmax.bf16 %v5165_v33, %v5164_v27 }
 0x62b   :  { %v5202_v26 = vmax.bf16 %v10604_v57, %v10566_v59  ;;  %v7223_v59 = vld [vmem:[%s10736_s5 + $0xc0] sm:$0xff]  }
 0x62c   :  { %v7988_v34 = vpop.eup %7987  ;;  %6285 = vmatprep.subr.bf16.mxu1 %v7223_v59 }
 0x62d   :  { %5228 = vrot.lane.b32.xlu1 %v5202_v26, %s8059_s14  ;;  %v5249_v26 = vsel %vm1271_vm1, %v5247_v40, %v5214_v41 }
 0x62e   :  { %v7990_v12 = vpop.eup %7989  ;;  %v5252_v19 = vsel %vm5250_vm5, %v5249_v26, %v5217_v4 }
 0x62f   :  { %v5166_v23 = vpack.c.bf16 %v7990_v12, %v7988_v34 }
 0x631   :  { %v10609_v38 = vmax.bf16 %v5166_v23, %v5165_v33  ;;  %v7224_v33 = vld [vmem:[%s10736_s5 + $0x80] sm:$0xff]  }
 0x633   :  { %v5203_v35 = vmax.bf16 %v10609_v38, %v5183_v61 }
 0x635   :  { %5231 = vrot.lane.b32.xlu1 %v5203_v35, %s8054_s20 }
 0x641   :  { %v5051_v9 = vpop.f32.mrb[96].mxu1 }
 0x642   :  { %v5052_v58 = vadd.f32 %v10185_v22, %v5051_v9  ;;  %v5053_v8 = vpop.f32.mrb[97].mxu1 }
 0x643   :  { %v5054_v36 = vpop.f32.mrb[98].mxu1 }
 0x644   :  { %v5055_v39 = vadd.f32 %v10185_v22, %v5054_v36  ;;  %v5056_v45 = vpop.f32.mrb[99].mxu1  ;;  %7991 = vtanh.f32 %v5052_v58  ;;  %v7226_v36 = vld [vmem:[%s10736_s5 + $0x88] sm:$0xff]  }
 0x646   :  { %7993 = vtanh.f32 %v5055_v39  ;;  %v7227_v39 = vld [vmem:[%s10736_s5 + $0xd0] sm:$0xff]  }
 0x64e   :  { %v7992_v7 = vpop.eup %7991 }
 0x650   :  { %v7994_v6 = vpop.eup %7993 }
 0x651   :  { %v5059_v61 = vpop.f32.mrb[100].mxu1  ;;  %v5167_v44 = vpack.c.bf16 %v7994_v6, %v7992_v7  ;;  %v7228_v6 = vld [vmem:[%s10736_s5 + $0x90] sm:$0xff]  }
 0x652   :  { %v5060_v28 = vadd.f32 %v10621_v14, %v5059_v61  ;;  %v5061_v22 = vpop.f32.mrb[101].mxu1 }
 0x653   :  { %v5062_v62 = vpop.f32.mrb[102].mxu1  ;;  %v10624_v10 = vmax.bf16 %v5167_v44, %v5166_v23 }
 0x654   :  { %v5063_v11 = vadd.f32 %v10621_v14, %v5062_v62  ;;  %v5064_v52 = vpop.f32.mrb[103].mxu1  ;;  %7995 = vtanh.f32 %v5060_v28  ;;  %v7229_v28 = vld [vmem:[%s10736_s5 + $0xd8] sm:$0xff]  }
 0x655   :  { %v5204_v15 = vmax.bf16 %v10624_v10, %v10589_v54  ;;  %v7231_v52 = vld [vmem:[%s10736_s5 + $0xe0] sm:$0xff]  }
 0x656   :  { %7997 = vtanh.f32 %v5063_v11 }
 0x657   :  { %5234 = vrot.lane.b32.xlu1 %v5204_v15, %s8062_s18 }
 0x65e   :  { %v7996_v63 = vpop.eup %7995 }
 0x660   :  { %v7998_v46 = vpop.eup %7997 }
 0x661   :  { %v5168_v20 = vpack.c.bf16 %v7998_v46, %v7996_v63 }
 0x66b   :  { %v5067_v43 = vpop.f32.mrb[104].mxu1 }
 0x66c   :  { %v5068_v3 = vadd.f32 %v10621_v14, %v5067_v43  ;;  %v5069_v17 = vpop.f32.mrb[105].mxu1 }
 0x66d   :  { %v5070_v13 = vpop.f32.mrb[106].mxu1  ;;  %v7234_v17 = vld [vmem:[%s10736_s5 + $0xa8] sm:$0xff]  }
 0x66e   :  { %v5071_v0 = vadd.f32 %v10621_v14, %v5070_v13  ;;  %v5072_v31 = vpop.f32.mrb[107].mxu1  ;;  %7999 = vtanh.f32 %v5068_v3  ;;  %v5220_v56 = vpop.permute.xlu0 %5219  ;;  %v7235_v13 = vld [vmem:[%s10736_s5 + $0xf0] sm:$0xff]  }
 0x66f   :  { %v5256_v5 = vsel %vm4404_vm2, %v5197_v18, %v5220_v56 }
 0x670   :  { %8001 = vtanh.f32 %v5071_v0 }
 0x676   :  { %v5075_v25 = vpop.f32.mrb[108].mxu1 }
 0x677   :  { %v5076_v49 = vadd.f32 %v10621_v14, %v5075_v25  ;;  %v5077_v54 = vpop.f32.mrb[109].mxu1 }
 0x678   :  { %v5078_v37 = vpop.f32.mrb[110].mxu1  ;;  %v8000_v53 = vpop.eup %7999 }
 0x679   :  { %v5079_v16 = vadd.f32 %v10621_v14, %v5078_v37  ;;  %v5080_v55 = vpop.f32.mrb[111].mxu1  ;;  %8003 = vtanh.f32 %v5076_v49  ;;  %v7237_v49 = vld [vmem:[%s10736_s5 + $0xf8] sm:$0xff]  }
 0x67a   :  { %v8002_v47 = vpop.eup %8001  ;;  %v5223_v27 = vpop.permute.xlu0 %5222 }
 0x67b   :  { %8005 = vtanh.f32 %v5079_v16  ;;  %v5169_v42 = vpack.c.bf16 %v8002_v47, %v8000_v53  ;;  %v5258_v48 = vsel %vm1271_vm1, %v5256_v5, %v5223_v27  ;;  %v7238_v53 = vld [vmem:[%s10736_s5 + $0xb8] sm:$0xff]  }
 0x67d   :  { %v10634_v51 = vmax.bf16 %v5169_v42, %v5168_v20  ;;  %v7233_v20 = vld [vmem:[%s10736_s5 + $0xe8] sm:$0xff]  }
 0x67f   :  { %v5205_v2 = vmax.bf16 %v10634_v51, %v10599_v21 }
 0x682   :  { %v5226_v1 = vpop.permute.xlu0 %5225  ;;  %v5083_v60 = vpop.f32.mrb[112].mxu1 }
 0x683   :  { %v5084_v34 = vadd.f32 %v10621_v14, %v5083_v60  ;;  %v5085_v12 = vpop.f32.mrb[113].mxu1  ;;  %v5260_v18 = vsel %vm5250_vm5, %v5258_v48, %v5226_v1  ;;  %v8004_v30 = vpop.eup %8003  ;;  %v5627_v60 = vld [vmem:[#allocation2] sm:$0x1] }
 0x684   :  { %v5086_v23 = vpop.f32.mrb[114].mxu1  ;;  %5573 = vmatprep.mubr.bf16.mxu1 %v5260_v18 }
 0x685   :  { %v8006_v35 = vpop.eup %8005  ;;  %v5087_v9 = vadd.f32 %v10621_v14, %v5086_v23  ;;  %v5088_v58 = vpop.f32.mrb[115].mxu1  ;;  %5574 = vmatmul.mubr.bf16.vlgmr.msra.gmra.mrb[120].mxu1 %v5252_v19  ;;  %8007 = vtanh.f32 %v5084_v34 }
 0x686   :  { %v5170_v8 = vpack.c.bf16 %v8006_v35, %v8004_v30  ;;  %6286 = vmatpush3.bf16.msra.mxu1 %v7224_v33  ;;  %v6056_v33 = vld [vmem:[%s10737_s6] ss:$0 sm:$0xff] }
 0x687   :  { %8009 = vtanh.f32 %v5087_v9  ;;  %6287 = vmatprep.subr.bf16.mxu1 %v7225_v32 }
 0x688   :  { %v5190_v45 = vmax.bf16 %v5170_v8, %v5169_v42 }
 0x68a   :  { %v5091_v59 = vpop.f32.mrb[116].mxu1  ;;  %v5206_v7 = vmax.bf16 %v5190_v45, %v10604_v57  ;;  %6288 = vmatpush3.bf16.msra.mxu1 %v7226_v36  ;;  %v7230_v57 = vld [vmem:[%s10736_s5 + $0x98] sm:$0xff]   ;;  %v5625_v45 = vld [vmem:[%s10738_s7] sm:$0x1] }
 0x68b   :  { %v5092_v61 = vadd.f32 %v10621_v14, %v5091_v59  ;;  %v5093_v44 = vpop.f32.mrb[117].mxu1  ;;  %6289 = vmatprep.subr.bf16.mxu1 %v7227_v39  ;;  %v5633_v59 = vlaneseq }
 0x68c   :  { %5237 = vrot.lane.b32.xlu0 %v5206_v7, %s8059_s14  ;;  %v5094_v22 = vpop.f32.mrb[118].mxu1 }
 0x68d   :  { %v5095_v62 = vadd.f32 %v10621_v14, %v5094_v22  ;;  %v5096_v11 = vpop.f32.mrb[119].mxu1  ;;  %8011 = vtanh.f32 %v5092_v61  ;;  %v7232_v14 = vld [vmem:[%s10736_s5 + $0xa0] sm:$0xff]   ;;  %v5634_v7 = vshrl.u32 %v5633_v59, 7 }
 0x68e   :  { %6290 = vmatpush3.bf16.msra.mxu1 %v7228_v6 }
 0x68f   :  { %8013 = vtanh.f32 %v5095_v62  ;;  %6291 = vmatprep.subr.bf16.mxu1 %v7229_v28  ;;  %v8008_v15 = vpop.eup %8007  ;;  %v5635_v6 = vsub.s32 0, %v5634_v7 }
 0x691   :  { %v8010_v63 = vpop.eup %8009 }
 0x692   :  { %v5171_v46 = vpack.c.bf16 %v8010_v63, %v8008_v15  ;;  %6292 = vmatpush3.bf16.msra.mxu1 %v7230_v57 }
 0x693   :  { %6293 = vmatprep.subr.bf16.mxu1 %v7231_v52 }
 0x694   :  { %v5191_v43 = vmax.bf16 %v5171_v46, %v5170_v8 }
 0x696   :  { %v5207_v3 = vmax.bf16 %v5191_v43, %v10609_v38  ;;  %6294 = vmatpush3.bf16.msra.mxu1 %v7232_v14  ;;  %v7236_v38 = vld [vmem:[%s10736_s5 + $0xb0] sm:$0xff]  }
 0x697   :  { %6295 = vmatprep.subr.bf16.mxu1 %v7233_v20  ;;  %v8012_v0 = vpop.eup %8011 }
 0x698   :  { %5240 = vrot.lane.b32.xlu0 %v5207_v3, %s8054_s20 }
 0x699   :  { %v8014_v31 = vpop.eup %8013 }
 0x69a   :  { %v5172_v25 = vpack.c.bf16 %v8014_v31, %v8012_v0  ;;  %6296 = vmatpush3.bf16.msra.mxu1 %v7234_v17 }
 0x69b   :  { %6297 = vmatprep.subr.bf16.mxu1 %v7235_v13 }
 0x69c   :  { %v5192_v54 = vmax.bf16 %v5172_v25, %v5171_v46 }
 0x69e   :  { %v5208_v37 = vmax.bf16 %v5192_v54, %v10624_v10  ;;  %6298 = vmatpush3.bf16.msra.mxu1 %v7236_v38 }
 0x69f   :  { %6299 = vmatprep.subr.bf16.mxu1 %v7237_v49  ;;  %v5229_v16 = vpop.permute.xlu1 %5228 }
 0x6a0   :  { %5243 = vrot.lane.b32.xlu0 %v5208_v37, %s8062_s18  ;;  %v5264_v41 = vsel %vm4404_vm2, %v5201_v29, %v5229_v16 }
 0x6a2   :  { %6300 = vmatpush3.bf16.msra.mxu1 %v7238_v53 }
 0x6a3   :  { %6993 = vmatprep.subr.bf16.mxu1 %v11021_v24 }
 0x6a4   :  { %5630 = vperm.xlu0 %7017, %v5627_v60  }
 0x6a7   :  { %v5232_v47 = vpop.permute.xlu1 %5231 }
 0x6a8   :  { %v5266_v5 = vsel %vm1271_vm1, %v5264_v41, %v5232_v47 }
 0x6c9   :  { %v5235_v42 = vpop.permute.xlu1 %5234 }
 0x6ca   :  { %v5268_v48 = vsel %vm5250_vm5, %v5266_v5, %v5235_v42 }
 0x6fe   :  { %v5238_v55 = vpop.permute.xlu0 %5237 }
 0x6ff   :  { %v5272_v10 = vsel %vm4404_vm2, %v5205_v2, %v5238_v55 }
 0x70a   :  { %v5241_v56 = vpop.permute.xlu0 %5240 }
 0x70b   :  { %v5274_v27 = vsel %vm1271_vm1, %v5272_v10, %v5241_v56 }
 0x712   :  { %v5244_v4 = vpop.permute.xlu0 %5243 }
 0x713   :  { %v5276_v40 = vsel %vm5250_vm5, %v5274_v27, %v5244_v4 }
 0x714   :  { %5614 = vmatprep.mubr.bf16.mxu1 %v5276_v40 }
 0x715   :  { %5615 = vmatmul.mubr.bf16.vlgmr.msra.gmra.mrb[124].mxu1 %v5268_v48 }
 0x716   :  { %6995 = vmatprep.mubr.msk.bf16.mxu1 %vm8057_vm0, %v11021_v24 }
 0x723   :  { %v5631_v61 = vpop.permute.xlu0 %5630 }
 0x724   :  { %v5636_v44 = vrot.slane %v5631_v61, %v5635_v6 }
 0x758   :  { %v6279_v51 = vpop.f32.mrb[120].mxu1 }
 0x759   :  { %v6280_v2 = vpop.f32.mrb[121].mxu1 }
 0x75a   :  { %v6281_v1 = vadd.f32 %v6280_v2, %v6279_v51  ;;  %v6282_v50 = vpop.f32.mrb[122].mxu1 }
 0x75b   :  { %v6283_v21 = vpop.f32.mrb[123].mxu1 }
 0x75c   :  { %v6284_v29 = vadd.f32 %v6283_v21, %v6282_v50  ;;  %v5576_v12 = vadd.f32 %v6281_v1, %v6056_v33 }
 0x75e   :  { %v5579_v19 = vadd.f32 %v6284_v29, %v6056_v33 }
 0x7e8   :  { %v6301_v26 = vpop.f32.mrb[124].mxu1 }
 0x7e9   :  { %v6302_v34 = vpop.f32.mrb[125].mxu1 }
 0x7ea   :  { %v6303_v18 = vadd.f32 %v6302_v34, %v6301_v26  ;;  %v6304_v32 = vpop.f32.mrb[126].mxu1 }
 0x7eb   :  { %v6305_v30 = vpop.f32.mrb[127].mxu1 }
 0x7ec   :  { %v5617_v23 = vadd.f32 %v6303_v18, %v5576_v12  ;;  %v6306_v35 = vadd.f32 %v6305_v30, %v6304_v32 }
 0x7ee   :  { %v5620_v9 = vadd.f32 %v6306_v35, %v5579_v19  ;;  %8015 = vtanh.f32 %v5617_v23 }
 0x7f0   :  { %8017 = vtanh.f32 %v5620_v9 }
 0x7f8   :  { %v8016_v58 = vpop.eup %8015 }
 0x7fa   :  { %v8018_v8 = vpop.eup %8017 }
 0x7fb   :  { %v5626_v36 = vpack.c.bf16 %v8018_v8, %v8016_v58 }
 0x7fd   :  { %v5641_v39 = vsel %vm4404_vm2, %v5626_v36, 0 }
 0x7fe   :  { %6994 = vmatpush3.bf16.xpose.msra.mxu1 %v5641_v39 }
 0x805   :  { %6996 = vmatmul.mubr.msk.bf16.vlgmr.msra.gmra.mrb[128].mxu1 %vm4404_vm2, %v5625_v45 }
 0x8d8   :  { %v5677_v28 = vpop.f32.mrb[128].mxu1 }
 0x8d9   :  { %v5678_v22 = vadd.f32 %v5677_v28, %v5636_v44  ;;  %v6997_v62 = vpop.f32.mrb[129].mxu1 }
 0x8da   :  { %v5680_v11 = vpop.f32.mrb[130].mxu1 }
 0x8db   :  { %v5683_v57 = vsub.f32 0.0, %v5678_v22  ;;  %v6998_v52 = vpop.f32.mrb[131].mxu1 }
 0x8dd   :  { %v5684_v15 = vmul.f32 1.442695, %v5683_v57 }
 0x8df   :  { %8019 = vpow2.f32 %v5684_v15 }
 0x8e9   :  { %v8020_v63 = vpop.eup %8019 }
 0x8ea   :  { %v5686_v46 = vadd.f32 1.0, %v8020_v63 }
 0x8ec   :  { %8021 = vrcp.f32 %v5686_v46 }
 0x8f6   :  { %v8022_v14 = vpop.eup %8021 }
 0x8f7   :  { %5690 = vst.msk [vmem:[%s10740_s9] sm:$0x1] %vm5689_vm6, %v8022_v14 }
 0x8f8   :  { %5695 = vsyncpa [#allocation4], 1 }

</bundles_post_ra>
